<compile_context>
chip_gen: v5e
topology: v5e:2x2
jax: 0.10.0
libtpu: 0.0.40
codegen_flags: <defaults>
</compile_context>

<pallas_src>
import math
import functools

import jax
import jax.numpy as jnp
from jax.experimental import pallas as pl
from jax.experimental.pallas import tpu as pltpu

MATMUL_DTYPE = jnp.float32   # set to jnp.bfloat16 on v6e/v7x for faster MXU matmuls


# ----------------------------------------------------------------------------
# Kernels
# ----------------------------------------------------------------------------
def _decoder_layer_kernel(
        x_ref, enc_ref, srcm_ref,
        sa_wq_ref, sa_wk_ref, sa_wv_ref, sa_fw_ref, sa_fb_ref,
        n0g_ref, n0b_ref,
        ca_wq_ref, ca_wk_ref, ca_wv_ref, ca_fw_ref, ca_fb_ref,
        n1g_ref, n1b_ref,
        ff_w1_ref, ff_b1_ref, ff_w2_ref, ff_b2_ref,
        n2g_ref, n2b_ref,
        o_ref, *, heads, head_dim, embed_size, eps, matmul_dtype):
    """Full DecoderBlock for one batch element (whole sequence resident in VMEM)."""
    scale = 1.0 / math.sqrt(embed_size)

    def mm(a, b):
        return jnp.dot(a.astype(matmul_dtype), b.astype(matmul_dtype),
                       preferred_element_type=jnp.float32)

    def layernorm(y, g, b):
        mean = jnp.mean(y, axis=-1, keepdims=True)
        var = jnp.mean(jnp.square(y - mean), axis=-1, keepdims=True)
        return (y - mean) * jax.lax.rsqrt(var + eps) * g + b

    def mha(xq, xk, xv, keep, wq, wk, wv, fw, fb):
        # Q/K/V: single full-E matmuls (block-diagonal per-head weights built in glue).
        q = mm(xq, wq)                               # (Lq, E)
        k = mm(xk, wk)                               # (Lk, E)
        v = mm(xv, wv)                               # (Lk, E)
        ctx = []
        for h in range(heads):                       # softmax is inherently per-head
            s = h * head_dim
            qh = q[:, s:s + head_dim]
            kh = k[:, s:s + head_dim]
            vh = v[:, s:s + head_dim]
            e = mm(qh, kh.T)                         # (Lq, Lk)
            e = jnp.where(keep, e, jnp.float32(-1e20))
            e = e * scale                            # torch order: mask, then /sqrt(E)
            m = jnp.max(e, axis=-1, keepdims=True)
            p = jnp.exp(e - m)
            attn = p * pl.reciprocal(jnp.sum(p, axis=-1, keepdims=True), approx=True)
            ctx.append(mm(attn, vh))                 # (Lq, D)
        ctx = jnp.concatenate(ctx, axis=-1)          # (Lq, E) concat-heads
        return mm(ctx, fw) + fb                      # single fc_out matmul

    x = x_ref[...]                                   # (L, E)
    enc = enc_ref[...]                               # (Lk, E)
    lq = x.shape[0]
    lk = enc.shape[0]

    # causal target mask generated in-kernel (row >= col  <=>  mask != 0 kept)
    row = jax.lax.broadcasted_iota(jnp.int32, (lq, lq), 0)
    col = jax.lax.broadcasted_iota(jnp.int32, (lq, lq), 1)
    causal_keep = row >= col

    # source mask: compact per-key (1, Lk) vector broadcast over queries
    src_keep = jnp.broadcast_to(srcm_ref[...] != 0.0, (lq, lk))

    # masked self-attention + residual + LayerNorm (DecoderBlock.norm)
    attn = mha(x, x, x, causal_keep,
               sa_wq_ref[...], sa_wk_ref[...], sa_wv_ref[...],
               sa_fw_ref[...], sa_fb_ref[...])
    query = layernorm(attn + x, n0g_ref[...], n0b_ref[...])

    # cross-attention (K/V from encoder) + residual + LayerNorm (TransformerBlock.norm1)
    attn2 = mha(query, enc, enc, src_keep,
                ca_wq_ref[...], ca_wk_ref[...], ca_wv_ref[...],
                ca_fw_ref[...], ca_fb_ref[...])
    xb = layernorm(attn2 + query, n1g_ref[...], n1b_ref[...])

    # FFN + residual + LayerNorm (TransformerBlock.norm2)
    h = jnp.maximum(mm(xb, ff_w1_ref[...]) + ff_b1_ref[...], 0.0)
    fwd = mm(h, ff_w2_ref[...]) + ff_b2_ref[...]
    o_ref[...] = layernorm(fwd + xb, n2g_ref[...], n2b_ref[...]).astype(o_ref.dtype)


def _linear_kernel(x_ref, w_ref, b_ref, o_ref, *, matmul_dtype):
    """Final vocab projection on a flattened, lane-dense (rows, Vpad) slab."""
    o_ref[...] = (jnp.dot(x_ref[...].astype(matmul_dtype),
                          w_ref[...].astype(matmul_dtype),
                          preferred_element_type=jnp.float32)
                  + b_ref[...]).astype(o_ref.dtype)


# ----------------------------------------------------------------------------
# Pallas-call wrappers
# ----------------------------------------------------------------------------
def decoder_block(x, enc_out, src_kmask, lp, *, heads, eps=1e-5,
                  matmul_dtype=MATMUL_DTYPE):
    N, L, E = x.shape
    Lk = enc_out.shape[1]
    D = E // heads

    kernel = functools.partial(_decoder_layer_kernel, heads=heads, head_dim=D,
                               embed_size=E, eps=eps, matmul_dtype=matmul_dtype)

    weights = [lp["sa_wq"], lp["sa_wk"], lp["sa_wv"], lp["sa_fw"], lp["sa_fb"],
               lp["n0_g"], lp["n0_b"],
               lp["ca_wq"], lp["ca_wk"], lp["ca_wv"], lp["ca_fw"], lp["ca_fb"],
               lp["n1_g"], lp["n1_b"],
               lp["ff_w1"], lp["ff_b1"], lp["ff_w2"], lp["ff_b2"],
               lp["n2_g"], lp["n2_b"]]
    w_specs = [pl.BlockSpec(w.shape, lambda n: (0, 0)) for w in weights]

    return pl.pallas_call(
        kernel,
        out_shape=jax.ShapeDtypeStruct((N, L, E), x.dtype),
        grid=(N,),
        in_specs=[pl.BlockSpec((None, L, E), lambda n: (n, 0, 0)),
                  pl.BlockSpec((None, Lk, E), lambda n: (n, 0, 0)),
                  pl.BlockSpec((None, 1, Lk), lambda n: (n, 0, 0))] + w_specs,
        out_specs=pl.BlockSpec((None, L, E), lambda n: (n, 0, 0)),
        compiler_params=pltpu.CompilerParams(
            dimension_semantics=("parallel",)),
    )(x, enc_out, src_kmask, *weights)


def linear_out(x, w_t_pad, b_pad, *, matmul_dtype=MATMUL_DTYPE):
    # flatten (N, L) rows; vocab dim already padded to a multiple of 128 (lane-dense)
    N, L, E = x.shape
    vp = w_t_pad.shape[1]
    x2 = x.reshape(N * L, E)
    kernel = functools.partial(_linear_kernel, matmul_dtype=matmul_dtype)
    return pl.pallas_call(
        kernel,
        out_shape=jax.ShapeDtypeStruct((N * L, vp), x.dtype),
    )(x2, w_t_pad, b_pad)


# ----------------------------------------------------------------------------
# Decoder forward (embedding gather / mask compaction in plain JAX glue)
# ----------------------------------------------------------------------------
def decoder_forward(prepared, tokens, enc_out, src_mask, trg_mask, *,
                    heads, vocab, matmul_dtype=MATMUL_DTYPE):
    N, L = tokens.shape
    Lk = enc_out.shape[1]

    # word + position embedding (gather glue); dropout == identity (inference)
    positions = jnp.arange(L)
    x = prepared["word_emb"][tokens] + prepared["pos_emb"][positions][None, :, :]

    # trg_mask is the standard causal mask; it is generated inside the kernel.
    # TODO(synk): support arbitrary (non-causal) trg_mask by passing it densely.
    del trg_mask
    # src_mask: (N, 1, 1, Lk) per-key mask -> compact (N, 1, Lk) float32
    src_kmask = src_mask.astype(jnp.float32).reshape(N, 1, Lk)

    for lp in prepared["layers"]:
        x = decoder_block(x, enc_out, src_kmask, lp,
                          heads=heads, matmul_dtype=matmul_dtype)

    logits = linear_out(x, prepared["fc_out_w_t"], prepared["fc_out_b_p"],
                        matmul_dtype=matmul_dtype)
    return logits[:, :vocab].reshape(N, L, vocab)


# ----------------------------------------------------------------------------
# Parameter init (PyTorch layouts) + one-time conversion to kernel layout
# ----------------------------------------------------------------------------
def init_params(key, *, vocab, embed, num_layers, heads, fexp, max_length):
    D = embed // heads
    F = fexp * embed

    def dense(k, shape, scale=0.1):
        return scale * jax.random.normal(k, shape, jnp.float32)

    keys = jax.random.split(key, 4 + num_layers)
    params = {
        "word_emb": dense(keys[0], (vocab, embed)),
        "pos_emb": dense(keys[1], (max_length, embed)),
        "fc_out_w": dense(keys[2], (vocab, embed)),       # torch (out, in)
        "fc_out_b": dense(keys[3], (1, vocab)),
        "layers": [],
    }
    for i in range(num_layers):
        lk = jax.random.split(keys[4 + i], 12)
        attn = {"wv": dense(lk[0], (D, D)), "wk": dense(lk[1], (D, D)),
                "wq": dense(lk[2], (D, D)), "fc_w": dense(lk[3], (embed, embed)),
                "fc_b": dense(lk[4], (1, embed))}
        tb_attn = {"wv": dense(lk[5], (D, D)), "wk": dense(lk[6], (D, D)),
                   "wq": dense(lk[7], (D, D)), "fc_w": dense(lk[8], (embed, embed)),
                   "fc_b": dense(lk[9], (1, embed))}
        ff = {"w1": dense(lk[10], (F, embed)), "b1": jnp.zeros((1, F), jnp.float32),
              "w2": dense(lk[11], (embed, F)), "b2": jnp.zeros((1, embed), jnp.float32)}
        params["layers"].append({
            "attn": attn,
            "norm_g": jnp.ones((1, embed), jnp.float32),
            "norm_b": jnp.zeros((1, embed), jnp.float32),
            "tb_attn": tb_attn,
            "tb_norm1_g": jnp.ones((1, embed), jnp.float32),
            "tb_norm1_b": jnp.zeros((1, embed), jnp.float32),
            "tb_norm2_g": jnp.ones((1, embed), jnp.float32),
            "tb_norm2_b": jnp.zeros((1, embed), jnp.float32),
            "ff": ff,
        })
    return params


def prepare_params(params, *, heads):
    """One-time conversion of torch-layout weights into kernel-friendly layout:
    block-diagonal per-head projections, pre-transposed (in, out) matrices, and a
    lane-dense (128-multiple) padded vocab projection."""
    eye = jnp.eye(heads, dtype=jnp.float32)

    def block_diag_t(w):   # (D, D) torch (out, in) -> (E, E) so x @ w_bd == per-head x_h @ w.T
        return jnp.kron(eye, w.T)

    def attn_p(a):
        return {"wq": block_diag_t(a["wq"]), "wk": block_diag_t(a["wk"]),
                "wv": block_diag_t(a["wv"]), "fw": a["fc_w"].T, "fb": a["fc_b"]}

    V = params["fc_out_w"].shape[0]
    vp = ((V + 127) // 128) * 128

    prepared = {
        "word_emb": params["word_emb"],
        "pos_emb": params["pos_emb"],
        "fc_out_w_t": jnp.pad(params["fc_out_w"].T, ((0, 0), (0, vp - V))),
        "fc_out_b_p": jnp.pad(params["fc_out_b"], ((0, 0), (0, vp - V))),
        "layers": [],
    }
    for layer in params["layers"]:
        sa = attn_p(layer["attn"])
        ca = attn_p(layer["tb_attn"])
        ff = layer["ff"]
        prepared["layers"].append({
            "sa_wq": sa["wq"], "sa_wk": sa["wk"], "sa_wv": sa["wv"],
            "sa_fw": sa["fw"], "sa_fb": sa["fb"],
            "n0_g": layer["norm_g"], "n0_b": layer["norm_b"],
            "ca_wq": ca["wq"], "ca_wk": ca["wk"], "ca_wv": ca["wv"],
            "ca_fw": ca["fw"], "ca_fb": ca["fb"],
            "n1_g": layer["tb_norm1_g"], "n1_b": layer["tb_norm1_b"],
            "ff_w1": ff["w1"].T, "ff_b1": ff["b1"],
            "ff_w2": ff["w2"].T, "ff_b2": ff["b2"],
            "n2_g": layer["tb_norm2_g"], "n2_b": layer["tb_norm2_b"],
        })
    return prepared


# ----------------------------------------------------------------------------
if __name__ == "__main__":
    TRG_VOCAB = 16
    EMBED = 32
    NUM_LAYERS = 2
    HEADS = 4
    FEXP = 4
    MAX_LEN = 16
    N, L_TRG, L_SRC = 2, 8, 8

    key = jax.random.PRNGKey(0)
    kp, kt, ke = jax.random.split(key, 3)

    params = init_params(kp, vocab=TRG_VOCAB, embed=EMBED, num_layers=NUM_LAYERS,
                         heads=HEADS, fexp=FEXP, max_length=MAX_LEN)
    prepared = prepare_params(params, heads=HEADS)

    tokens = jax.random.randint(kt, (N, L_TRG), 0, TRG_VOCAB, dtype=jnp.int32)
    enc_out = jax.random.normal(ke, (N, L_SRC, EMBED), jnp.float32)

    # src mask: all ones (N, 1, 1, L_src); trg mask: causal (N, 1, L_trg, L_trg)
    src_mask = jnp.ones((N, 1, 1, L_SRC), jnp.float32)
    trg_mask = jnp.tril(jnp.ones((L_TRG, L_TRG), jnp.float32))[None, None]
    trg_mask = jnp.broadcast_to(trg_mask, (N, 1, L_TRG, L_TRG))

    fwd = jax.jit(functools.partial(decoder_forward, heads=HEADS, vocab=TRG_VOCAB))
    out = fwd(prepared, tokens, enc_out, src_mask, trg_mask)
    out = jax.block_until_ready(out)
    assert out.shape == (N, L_TRG, TRG_VOCAB)
    print("KERNEL_OK")
</pallas_src>

<mosaic_0001>
module attributes {stable_mosaic.version = 11 : i64} {
  func.func @_decoder_layer_kernel(%arg0: i32, %arg1: memref<1x8x32xf32, #tpu.memory_space<vmem>>, %arg2: memref<1x8x32xf32, #tpu.memory_space<vmem>>, %arg3: memref<1x1x8xf32, #tpu.memory_space<vmem>>, %arg4: memref<32x32xf32, #tpu.memory_space<vmem>>, %arg5: memref<32x32xf32, #tpu.memory_space<vmem>>, %arg6: memref<32x32xf32, #tpu.memory_space<vmem>>, %arg7: memref<32x32xf32, #tpu.memory_space<vmem>>, %arg8: memref<1x32xf32, #tpu.memory_space<vmem>>, %arg9: memref<1x32xf32, #tpu.memory_space<vmem>>, %arg10: memref<1x32xf32, #tpu.memory_space<vmem>>, %arg11: memref<32x32xf32, #tpu.memory_space<vmem>>, %arg12: memref<32x32xf32, #tpu.memory_space<vmem>>, %arg13: memref<32x32xf32, #tpu.memory_space<vmem>>, %arg14: memref<32x32xf32, #tpu.memory_space<vmem>>, %arg15: memref<1x32xf32, #tpu.memory_space<vmem>>, %arg16: memref<1x32xf32, #tpu.memory_space<vmem>>, %arg17: memref<1x32xf32, #tpu.memory_space<vmem>>, %arg18: memref<32x128xf32, #tpu.memory_space<vmem>>, %arg19: memref<1x128xf32, #tpu.memory_space<vmem>>, %arg20: memref<128x32xf32, #tpu.memory_space<vmem>>, %arg21: memref<1x32xf32, #tpu.memory_space<vmem>>, %arg22: memref<1x32xf32, #tpu.memory_space<vmem>>, %arg23: memref<1x32xf32, #tpu.memory_space<vmem>>, %arg24: memref<1x8x32xf32, #tpu.memory_space<vmem>>) attributes {dimension_semantics = [#tpu.dimension_semantics<parallel>], iteration_bounds = array<i64: 2>, scalar_prefetch = 0 : i64, scratch_operands = 0 : i64, tpu.core_type = #tpu.core_type<tc>, window_params = [{transform_indices = @transform_0, window_bounds = array<i64: 1, 8, 32>}, {transform_indices = @transform_1, window_bounds = array<i64: 1, 8, 32>}, {transform_indices = @transform_2, window_bounds = array<i64: 1, 1, 8>}, {pipeline_mode = #tpu.pipeline_mode<synchronous>, transform_indices = @transform_3, window_bounds = array<i64: 32, 32>}, {pipeline_mode = #tpu.pipeline_mode<synchronous>, transform_indices = @transform_4, window_bounds = array<i64: 32, 32>}, {pipeline_mode = #tpu.pipeline_mode<synchronous>, transform_indices = @transform_5, window_bounds = array<i64: 32, 32>}, {pipeline_mode = #tpu.pipeline_mode<synchronous>, transform_indices = @transform_6, window_bounds = array<i64: 32, 32>}, {pipeline_mode = #tpu.pipeline_mode<synchronous>, transform_indices = @transform_7, window_bounds = array<i64: 1, 32>}, {pipeline_mode = #tpu.pipeline_mode<synchronous>, transform_indices = @transform_8, window_bounds = array<i64: 1, 32>}, {pipeline_mode = #tpu.pipeline_mode<synchronous>, transform_indices = @transform_9, window_bounds = array<i64: 1, 32>}, {pipeline_mode = #tpu.pipeline_mode<synchronous>, transform_indices = @transform_10, window_bounds = array<i64: 32, 32>}, {pipeline_mode = #tpu.pipeline_mode<synchronous>, transform_indices = @transform_11, window_bounds = array<i64: 32, 32>}, {pipeline_mode = #tpu.pipeline_mode<synchronous>, transform_indices = @transform_12, window_bounds = array<i64: 32, 32>}, {pipeline_mode = #tpu.pipeline_mode<synchronous>, transform_indices = @transform_13, window_bounds = array<i64: 32, 32>}, {pipeline_mode = #tpu.pipeline_mode<synchronous>, transform_indices = @transform_14, window_bounds = array<i64: 1, 32>}, {pipeline_mode = #tpu.pipeline_mode<synchronous>, transform_indices = @transform_15, window_bounds = array<i64: 1, 32>}, {pipeline_mode = #tpu.pipeline_mode<synchronous>, transform_indices = @transform_16, window_bounds = array<i64: 1, 32>}, {pipeline_mode = #tpu.pipeline_mode<synchronous>, transform_indices = @transform_17, window_bounds = array<i64: 32, 128>}, {pipeline_mode = #tpu.pipeline_mode<synchronous>, transform_indices = @transform_18, window_bounds = array<i64: 1, 128>}, {pipeline_mode = #tpu.pipeline_mode<synchronous>, transform_indices = @transform_19, window_bounds = array<i64: 128, 32>}, {pipeline_mode = #tpu.pipeline_mode<synchronous>, transform_indices = @transform_20, window_bounds = array<i64: 1, 32>}, {pipeline_mode = #tpu.pipeline_mode<synchronous>, transform_indices = @transform_21, window_bounds = array<i64: 1, 32>}, {pipeline_mode = #tpu.pipeline_mode<synchronous>, transform_indices = @transform_22, window_bounds = array<i64: 1, 32>}, {transform_indices = @transform_23, window_bounds = array<i64: 1, 8, 32>}]} {
    %c0 = arith.constant 0 : index
    %c0_0 = arith.constant 0 : index
    %c0_1 = arith.constant 0 : index
    %0 = vector.load %arg1[%c0, %c0_0, %c0_1] : memref<1x8x32xf32, #tpu.memory_space<vmem>>, vector<1x8x32xf32>
    %1 = vector.shape_cast %0 : vector<1x8x32xf32> to vector<8x32xf32>
    %c0_2 = arith.constant 0 : index
    %c0_3 = arith.constant 0 : index
    %c0_4 = arith.constant 0 : index
    %2 = vector.load %arg2[%c0_2, %c0_3, %c0_4] : memref<1x8x32xf32, #tpu.memory_space<vmem>>, vector<1x8x32xf32>
    %3 = vector.shape_cast %2 : vector<1x8x32xf32> to vector<8x32xf32>
    %4 = tpu.iota {dimensions = array<i32: 0>} : vector<8x8xi32>
    %5 = tpu.iota {dimensions = array<i32: 1>} : vector<8x8xi32>
    %6 = arith.cmpi sge, %4, %5 : vector<8x8xi32>
    %c0_5 = arith.constant 0 : index
    %c0_6 = arith.constant 0 : index
    %c0_7 = arith.constant 0 : index
    %7 = vector.load %arg3[%c0_5, %c0_6, %c0_7] : memref<1x1x8xf32, #tpu.memory_space<vmem>>, vector<1x1x8xf32>
    %8 = vector.shape_cast %7 : vector<1x1x8xf32> to vector<1x8xf32>
    %cst = arith.constant 0.000000e+00 : f32
    %9 = vector.broadcast %cst : f32 to vector<1x8xf32>
    %10 = arith.cmpf one, %8, %9 : vector<1x8xf32>
    %11 = vector.shape_cast %10 : vector<1x8xi1> to vector<1x8xi1>
    %12 = vector.broadcast %11 : vector<1x8xi1> to vector<8x8xi1>
    %c0_8 = arith.constant 0 : index
    %c0_9 = arith.constant 0 : index
    %13 = vector.load %arg4[%c0_8, %c0_9] : memref<32x32xf32, #tpu.memory_space<vmem>>, vector<32x32xf32>
    %c0_10 = arith.constant 0 : index
    %c0_11 = arith.constant 0 : index
    %14 = vector.load %arg5[%c0_10, %c0_11] : memref<32x32xf32, #tpu.memory_space<vmem>>, vector<32x32xf32>
    %c0_12 = arith.constant 0 : index
    %c0_13 = arith.constant 0 : index
    %15 = vector.load %arg6[%c0_12, %c0_13] : memref<32x32xf32, #tpu.memory_space<vmem>>, vector<32x32xf32>
    %c0_14 = arith.constant 0 : index
    %c0_15 = arith.constant 0 : index
    %16 = vector.load %arg7[%c0_14, %c0_15] : memref<32x32xf32, #tpu.memory_space<vmem>>, vector<32x32xf32>
    %c0_16 = arith.constant 0 : index
    %c0_17 = arith.constant 0 : index
    %17 = vector.load %arg8[%c0_16, %c0_17] : memref<1x32xf32, #tpu.memory_space<vmem>>, vector<1x32xf32>
    %cst_18 = arith.constant dense<0.000000e+00> : vector<8x32xf32>
    %18 = tpu.matmul %1, %13, %cst_18 {dimension_numbers = #tpu.dot_dimension_numbers<[1], [0], [0], [1], [0, 0, 1, 1], [], []>} : vector<8x32xf32>, vector<32x32xf32>, vector<8x32xf32> -> vector<8x32xf32>
    %cst_19 = arith.constant dense<0.000000e+00> : vector<8x32xf32>
    %19 = tpu.matmul %1, %14, %cst_19 {dimension_numbers = #tpu.dot_dimension_numbers<[1], [0], [0], [1], [0, 0, 1, 1], [], []>} : vector<8x32xf32>, vector<32x32xf32>, vector<8x32xf32> -> vector<8x32xf32>
    %cst_20 = arith.constant dense<0.000000e+00> : vector<8x32xf32>
    %20 = tpu.matmul %1, %15, %cst_20 {dimension_numbers = #tpu.dot_dimension_numbers<[1], [0], [0], [1], [0, 0, 1, 1], [], []>} : vector<8x32xf32>, vector<32x32xf32>, vector<8x32xf32> -> vector<8x32xf32>
    %21 = vector.extract_strided_slice %18 {offsets = [0, 0], sizes = [8, 8], strides = [1, 1]} : vector<8x32xf32> to vector<8x8xf32>
    %22 = vector.extract_strided_slice %19 {offsets = [0, 0], sizes = [8, 8], strides = [1, 1]} : vector<8x32xf32> to vector<8x8xf32>
    %23 = vector.extract_strided_slice %20 {offsets = [0, 0], sizes = [8, 8], strides = [1, 1]} : vector<8x32xf32> to vector<8x8xf32>
    %24 = tpu.transpose %22, [1, 0] : vector<8x8xf32> -> vector<8x8xf32>
    %cst_21 = arith.constant dense<0.000000e+00> : vector<8x8xf32>
    %25 = tpu.matmul %21, %24, %cst_21 {dimension_numbers = #tpu.dot_dimension_numbers<[1], [0], [0], [1], [0, 0, 1, 1], [], []>} : vector<8x8xf32>, vector<8x8xf32>, vector<8x8xf32> -> vector<8x8xf32>
    %cst_22 = arith.constant -1.000000e+20 : f32
    %26 = vector.broadcast %cst_22 : f32 to vector<8x8xf32>
    %27 = arith.select %6, %25, %26 : vector<8x8xi1>, vector<8x8xf32>
    %cst_23 = arith.constant 0.176776692 : f32
    %28 = vector.broadcast %cst_23 : f32 to vector<8x8xf32>
    %29 = arith.mulf %27, %28 : vector<8x8xf32>
    %cst_24 = arith.constant dense<0xFF800000> : vector<8xf32>
    %30 = vector.multi_reduction <maximumf>, %29, %cst_24 [1] : vector<8x8xf32> to vector<8xf32>
    %31 = vector.shape_cast %30 : vector<8xf32> to vector<8x1xf32>
    %32 = vector.broadcast %31 : vector<8x1xf32> to vector<8x8xf32>
    %33 = arith.subf %29, %32 : vector<8x8xf32>
    %34 = math.exp %33 : vector<8x8xf32>
    %cst_25 = arith.constant dense<0.000000e+00> : vector<8xf32>
    %35 = vector.multi_reduction <add>, %34, %cst_25 [1] : vector<8x8xf32> to vector<8xf32>
    %36 = vector.shape_cast %35 : vector<8xf32> to vector<8x1xf32>
    %37 = tpu.reciprocal %36 {approx = true} : vector<8x1xf32> -> vector<8x1xf32>
    %38 = vector.broadcast %37 : vector<8x1xf32> to vector<8x8xf32>
    %39 = arith.mulf %34, %38 : vector<8x8xf32>
    %cst_26 = arith.constant dense<0.000000e+00> : vector<8x8xf32>
    %40 = tpu.matmul %39, %23, %cst_26 {dimension_numbers = #tpu.dot_dimension_numbers<[1], [0], [0], [1], [0, 0, 1, 1], [], []>} : vector<8x8xf32>, vector<8x8xf32>, vector<8x8xf32> -> vector<8x8xf32>
    %41 = vector.extract_strided_slice %18 {offsets = [0, 8], sizes = [8, 8], strides = [1, 1]} : vector<8x32xf32> to vector<8x8xf32>
    %42 = vector.extract_strided_slice %19 {offsets = [0, 8], sizes = [8, 8], strides = [1, 1]} : vector<8x32xf32> to vector<8x8xf32>
    %43 = vector.extract_strided_slice %20 {offsets = [0, 8], sizes = [8, 8], strides = [1, 1]} : vector<8x32xf32> to vector<8x8xf32>
    %44 = tpu.transpose %42, [1, 0] : vector<8x8xf32> -> vector<8x8xf32>
    %cst_27 = arith.constant dense<0.000000e+00> : vector<8x8xf32>
    %45 = tpu.matmul %41, %44, %cst_27 {dimension_numbers = #tpu.dot_dimension_numbers<[1], [0], [0], [1], [0, 0, 1, 1], [], []>} : vector<8x8xf32>, vector<8x8xf32>, vector<8x8xf32> -> vector<8x8xf32>
    %cst_28 = arith.constant -1.000000e+20 : f32
    %46 = vector.broadcast %cst_28 : f32 to vector<8x8xf32>
    %47 = arith.select %6, %45, %46 : vector<8x8xi1>, vector<8x8xf32>
    %cst_29 = arith.constant 0.176776692 : f32
    %48 = vector.broadcast %cst_29 : f32 to vector<8x8xf32>
    %49 = arith.mulf %47, %48 : vector<8x8xf32>
    %cst_30 = arith.constant dense<0xFF800000> : vector<8xf32>
    %50 = vector.multi_reduction <maximumf>, %49, %cst_30 [1] : vector<8x8xf32> to vector<8xf32>
    %51 = vector.shape_cast %50 : vector<8xf32> to vector<8x1xf32>
    %52 = vector.broadcast %51 : vector<8x1xf32> to vector<8x8xf32>
    %53 = arith.subf %49, %52 : vector<8x8xf32>
    %54 = math.exp %53 : vector<8x8xf32>
    %cst_31 = arith.constant dense<0.000000e+00> : vector<8xf32>
    %55 = vector.multi_reduction <add>, %54, %cst_31 [1] : vector<8x8xf32> to vector<8xf32>
    %56 = vector.shape_cast %55 : vector<8xf32> to vector<8x1xf32>
    %57 = tpu.reciprocal %56 {approx = true} : vector<8x1xf32> -> vector<8x1xf32>
    %58 = vector.broadcast %57 : vector<8x1xf32> to vector<8x8xf32>
    %59 = arith.mulf %54, %58 : vector<8x8xf32>
    %cst_32 = arith.constant dense<0.000000e+00> : vector<8x8xf32>
    %60 = tpu.matmul %59, %43, %cst_32 {dimension_numbers = #tpu.dot_dimension_numbers<[1], [0], [0], [1], [0, 0, 1, 1], [], []>} : vector<8x8xf32>, vector<8x8xf32>, vector<8x8xf32> -> vector<8x8xf32>
    %61 = vector.extract_strided_slice %18 {offsets = [0, 16], sizes = [8, 8], strides = [1, 1]} : vector<8x32xf32> to vector<8x8xf32>
    %62 = vector.extract_strided_slice %19 {offsets = [0, 16], sizes = [8, 8], strides = [1, 1]} : vector<8x32xf32> to vector<8x8xf32>
    %63 = vector.extract_strided_slice %20 {offsets = [0, 16], sizes = [8, 8], strides = [1, 1]} : vector<8x32xf32> to vector<8x8xf32>
    %64 = tpu.transpose %62, [1, 0] : vector<8x8xf32> -> vector<8x8xf32>
    %cst_33 = arith.constant dense<0.000000e+00> : vector<8x8xf32>
    %65 = tpu.matmul %61, %64, %cst_33 {dimension_numbers = #tpu.dot_dimension_numbers<[1], [0], [0], [1], [0, 0, 1, 1], [], []>} : vector<8x8xf32>, vector<8x8xf32>, vector<8x8xf32> -> vector<8x8xf32>
    %cst_34 = arith.constant -1.000000e+20 : f32
    %66 = vector.broadcast %cst_34 : f32 to vector<8x8xf32>
    %67 = arith.select %6, %65, %66 : vector<8x8xi1>, vector<8x8xf32>
    %cst_35 = arith.constant 0.176776692 : f32
    %68 = vector.broadcast %cst_35 : f32 to vector<8x8xf32>
    %69 = arith.mulf %67, %68 : vector<8x8xf32>
    %cst_36 = arith.constant dense<0xFF800000> : vector<8xf32>
    %70 = vector.multi_reduction <maximumf>, %69, %cst_36 [1] : vector<8x8xf32> to vector<8xf32>
    %71 = vector.shape_cast %70 : vector<8xf32> to vector<8x1xf32>
    %72 = vector.broadcast %71 : vector<8x1xf32> to vector<8x8xf32>
    %73 = arith.subf %69, %72 : vector<8x8xf32>
    %74 = math.exp %73 : vector<8x8xf32>
    %cst_37 = arith.constant dense<0.000000e+00> : vector<8xf32>
    %75 = vector.multi_reduction <add>, %74, %cst_37 [1] : vector<8x8xf32> to vector<8xf32>
    %76 = vector.shape_cast %75 : vector<8xf32> to vector<8x1xf32>
    %77 = tpu.reciprocal %76 {approx = true} : vector<8x1xf32> -> vector<8x1xf32>
    %78 = vector.broadcast %77 : vector<8x1xf32> to vector<8x8xf32>
    %79 = arith.mulf %74, %78 : vector<8x8xf32>
    %cst_38 = arith.constant dense<0.000000e+00> : vector<8x8xf32>
    %80 = tpu.matmul %79, %63, %cst_38 {dimension_numbers = #tpu.dot_dimension_numbers<[1], [0], [0], [1], [0, 0, 1, 1], [], []>} : vector<8x8xf32>, vector<8x8xf32>, vector<8x8xf32> -> vector<8x8xf32>
    %81 = vector.extract_strided_slice %18 {offsets = [0, 24], sizes = [8, 8], strides = [1, 1]} : vector<8x32xf32> to vector<8x8xf32>
    %82 = vector.extract_strided_slice %19 {offsets = [0, 24], sizes = [8, 8], strides = [1, 1]} : vector<8x32xf32> to vector<8x8xf32>
    %83 = vector.extract_strided_slice %20 {offsets = [0, 24], sizes = [8, 8], strides = [1, 1]} : vector<8x32xf32> to vector<8x8xf32>
    %84 = tpu.transpose %82, [1, 0] : vector<8x8xf32> -> vector<8x8xf32>
    %cst_39 = arith.constant dense<0.000000e+00> : vector<8x8xf32>
    %85 = tpu.matmul %81, %84, %cst_39 {dimension_numbers = #tpu.dot_dimension_numbers<[1], [0], [0], [1], [0, 0, 1, 1], [], []>} : vector<8x8xf32>, vector<8x8xf32>, vector<8x8xf32> -> vector<8x8xf32>
    %cst_40 = arith.constant -1.000000e+20 : f32
    %86 = vector.broadcast %cst_40 : f32 to vector<8x8xf32>
    %87 = arith.select %6, %85, %86 : vector<8x8xi1>, vector<8x8xf32>
    %cst_41 = arith.constant 0.176776692 : f32
    %88 = vector.broadcast %cst_41 : f32 to vector<8x8xf32>
    %89 = arith.mulf %87, %88 : vector<8x8xf32>
    %cst_42 = arith.constant dense<0xFF800000> : vector<8xf32>
    %90 = vector.multi_reduction <maximumf>, %89, %cst_42 [1] : vector<8x8xf32> to vector<8xf32>
    %91 = vector.shape_cast %90 : vector<8xf32> to vector<8x1xf32>
    %92 = vector.broadcast %91 : vector<8x1xf32> to vector<8x8xf32>
    %93 = arith.subf %89, %92 : vector<8x8xf32>
    %94 = math.exp %93 : vector<8x8xf32>
    %cst_43 = arith.constant dense<0.000000e+00> : vector<8xf32>
    %95 = vector.multi_reduction <add>, %94, %cst_43 [1] : vector<8x8xf32> to vector<8xf32>
    %96 = vector.shape_cast %95 : vector<8xf32> to vector<8x1xf32>
    %97 = tpu.reciprocal %96 {approx = true} : vector<8x1xf32> -> vector<8x1xf32>
    %98 = vector.broadcast %97 : vector<8x1xf32> to vector<8x8xf32>
    %99 = arith.mulf %94, %98 : vector<8x8xf32>
    %cst_44 = arith.constant dense<0.000000e+00> : vector<8x8xf32>
    %100 = tpu.matmul %99, %83, %cst_44 {dimension_numbers = #tpu.dot_dimension_numbers<[1], [0], [0], [1], [0, 0, 1, 1], [], []>} : vector<8x8xf32>, vector<8x8xf32>, vector<8x8xf32> -> vector<8x8xf32>
    %101 = tpu.concatenate %40, %60, %80, %100 in 1 : vector<8x8xf32>, vector<8x8xf32>, vector<8x8xf32>, vector<8x8xf32> -> vector<8x32xf32>
    %cst_45 = arith.constant dense<0.000000e+00> : vector<8x32xf32>
    %102 = tpu.matmul %101, %16, %cst_45 {dimension_numbers = #tpu.dot_dimension_numbers<[1], [0], [0], [1], [0, 0, 1, 1], [], []>} : vector<8x32xf32>, vector<32x32xf32>, vector<8x32xf32> -> vector<8x32xf32>
    %103 = vector.broadcast %17 : vector<1x32xf32> to vector<8x32xf32>
    %104 = arith.addf %102, %103 : vector<8x32xf32>
    %105 = arith.addf %104, %1 : vector<8x32xf32>
    %c0_46 = arith.constant 0 : index
    %c0_47 = arith.constant 0 : index
    %106 = vector.load %arg9[%c0_46, %c0_47] : memref<1x32xf32, #tpu.memory_space<vmem>>, vector<1x32xf32>
    %c0_48 = arith.constant 0 : index
    %c0_49 = arith.constant 0 : index
    %107 = vector.load %arg10[%c0_48, %c0_49] : memref<1x32xf32, #tpu.memory_space<vmem>>, vector<1x32xf32>
    %cst_50 = arith.constant dense<0.000000e+00> : vector<8xf32>
    %108 = vector.multi_reduction <add>, %105, %cst_50 [1] : vector<8x32xf32> to vector<8xf32>
    %109 = vector.shape_cast %108 : vector<8xf32> to vector<8x1xf32>
    %cst_51 = arith.constant 3.200000e+01 : f32
    %110 = vector.broadcast %cst_51 : f32 to vector<8x1xf32>
    %111 = arith.divf %109, %110 : vector<8x1xf32>
    %112 = vector.broadcast %111 : vector<8x1xf32> to vector<8x32xf32>
    %113 = arith.subf %105, %112 : vector<8x32xf32>
    %114 = arith.mulf %113, %113 : vector<8x32xf32>
    %cst_52 = arith.constant dense<0.000000e+00> : vector<8xf32>
    %115 = vector.multi_reduction <add>, %114, %cst_52 [1] : vector<8x32xf32> to vector<8xf32>
    %116 = vector.shape_cast %115 : vector<8xf32> to vector<8x1xf32>
    %cst_53 = arith.constant 3.200000e+01 : f32
    %117 = vector.broadcast %cst_53 : f32 to vector<8x1xf32>
    %118 = arith.divf %116, %117 : vector<8x1xf32>
    %119 = vector.broadcast %111 : vector<8x1xf32> to vector<8x32xf32>
    %120 = arith.subf %105, %119 : vector<8x32xf32>
    %cst_54 = arith.constant 9.99999974E-6 : f32
    %121 = vector.broadcast %cst_54 : f32 to vector<8x1xf32>
    %122 = arith.addf %118, %121 : vector<8x1xf32>
    %123 = math.rsqrt %122 : vector<8x1xf32>
    %124 = vector.broadcast %123 : vector<8x1xf32> to vector<8x32xf32>
    %125 = arith.mulf %120, %124 : vector<8x32xf32>
    %126 = vector.broadcast %106 : vector<1x32xf32> to vector<8x32xf32>
    %127 = arith.mulf %125, %126 : vector<8x32xf32>
    %128 = vector.broadcast %107 : vector<1x32xf32> to vector<8x32xf32>
    %129 = arith.addf %127, %128 : vector<8x32xf32>
    %c0_55 = arith.constant 0 : index
    %c0_56 = arith.constant 0 : index
    %130 = vector.load %arg11[%c0_55, %c0_56] : memref<32x32xf32, #tpu.memory_space<vmem>>, vector<32x32xf32>
    %c0_57 = arith.constant 0 : index
    %c0_58 = arith.constant 0 : index
    %131 = vector.load %arg12[%c0_57, %c0_58] : memref<32x32xf32, #tpu.memory_space<vmem>>, vector<32x32xf32>
    %c0_59 = arith.constant 0 : index
    %c0_60 = arith.constant 0 : index
    %132 = vector.load %arg13[%c0_59, %c0_60] : memref<32x32xf32, #tpu.memory_space<vmem>>, vector<32x32xf32>
    %c0_61 = arith.constant 0 : index
    %c0_62 = arith.constant 0 : index
    %133 = vector.load %arg14[%c0_61, %c0_62] : memref<32x32xf32, #tpu.memory_space<vmem>>, vector<32x32xf32>
    %c0_63 = arith.constant 0 : index
    %c0_64 = arith.constant 0 : index
    %134 = vector.load %arg15[%c0_63, %c0_64] : memref<1x32xf32, #tpu.memory_space<vmem>>, vector<1x32xf32>
    %cst_65 = arith.constant dense<0.000000e+00> : vector<8x32xf32>
    %135 = tpu.matmul %129, %130, %cst_65 {dimension_numbers = #tpu.dot_dimension_numbers<[1], [0], [0], [1], [0, 0, 1, 1], [], []>} : vector<8x32xf32>, vector<32x32xf32>, vector<8x32xf32> -> vector<8x32xf32>
    %cst_66 = arith.constant dense<0.000000e+00> : vector<8x32xf32>
    %136 = tpu.matmul %3, %131, %cst_66 {dimension_numbers = #tpu.dot_dimension_numbers<[1], [0], [0], [1], [0, 0, 1, 1], [], []>} : vector<8x32xf32>, vector<32x32xf32>, vector<8x32xf32> -> vector<8x32xf32>
    %cst_67 = arith.constant dense<0.000000e+00> : vector<8x32xf32>
    %137 = tpu.matmul %3, %132, %cst_67 {dimension_numbers = #tpu.dot_dimension_numbers<[1], [0], [0], [1], [0, 0, 1, 1], [], []>} : vector<8x32xf32>, vector<32x32xf32>, vector<8x32xf32> -> vector<8x32xf32>
    %138 = vector.extract_strided_slice %135 {offsets = [0, 0], sizes = [8, 8], strides = [1, 1]} : vector<8x32xf32> to vector<8x8xf32>
    %139 = vector.extract_strided_slice %136 {offsets = [0, 0], sizes = [8, 8], strides = [1, 1]} : vector<8x32xf32> to vector<8x8xf32>
    %140 = vector.extract_strided_slice %137 {offsets = [0, 0], sizes = [8, 8], strides = [1, 1]} : vector<8x32xf32> to vector<8x8xf32>
    %141 = tpu.transpose %139, [1, 0] : vector<8x8xf32> -> vector<8x8xf32>
    %cst_68 = arith.constant dense<0.000000e+00> : vector<8x8xf32>
    %142 = tpu.matmul %138, %141, %cst_68 {dimension_numbers = #tpu.dot_dimension_numbers<[1], [0], [0], [1], [0, 0, 1, 1], [], []>} : vector<8x8xf32>, vector<8x8xf32>, vector<8x8xf32> -> vector<8x8xf32>
    %cst_69 = arith.constant -1.000000e+20 : f32
    %143 = vector.broadcast %cst_69 : f32 to vector<8x8xf32>
    %144 = arith.select %12, %142, %143 : vector<8x8xi1>, vector<8x8xf32>
    %cst_70 = arith.constant 0.176776692 : f32
    %145 = vector.broadcast %cst_70 : f32 to vector<8x8xf32>
    %146 = arith.mulf %144, %145 : vector<8x8xf32>
    %cst_71 = arith.constant dense<0xFF800000> : vector<8xf32>
    %147 = vector.multi_reduction <maximumf>, %146, %cst_71 [1] : vector<8x8xf32> to vector<8xf32>
    %148 = vector.shape_cast %147 : vector<8xf32> to vector<8x1xf32>
    %149 = vector.broadcast %148 : vector<8x1xf32> to vector<8x8xf32>
    %150 = arith.subf %146, %149 : vector<8x8xf32>
    %151 = math.exp %150 : vector<8x8xf32>
    %cst_72 = arith.constant dense<0.000000e+00> : vector<8xf32>
    %152 = vector.multi_reduction <add>, %151, %cst_72 [1] : vector<8x8xf32> to vector<8xf32>
    %153 = vector.shape_cast %152 : vector<8xf32> to vector<8x1xf32>
    %154 = tpu.reciprocal %153 {approx = true} : vector<8x1xf32> -> vector<8x1xf32>
    %155 = vector.broadcast %154 : vector<8x1xf32> to vector<8x8xf32>
    %156 = arith.mulf %151, %155 : vector<8x8xf32>
    %cst_73 = arith.constant dense<0.000000e+00> : vector<8x8xf32>
    %157 = tpu.matmul %156, %140, %cst_73 {dimension_numbers = #tpu.dot_dimension_numbers<[1], [0], [0], [1], [0, 0, 1, 1], [], []>} : vector<8x8xf32>, vector<8x8xf32>, vector<8x8xf32> -> vector<8x8xf32>
    %158 = vector.extract_strided_slice %135 {offsets = [0, 8], sizes = [8, 8], strides = [1, 1]} : vector<8x32xf32> to vector<8x8xf32>
    %159 = vector.extract_strided_slice %136 {offsets = [0, 8], sizes = [8, 8], strides = [1, 1]} : vector<8x32xf32> to vector<8x8xf32>
    %160 = vector.extract_strided_slice %137 {offsets = [0, 8], sizes = [8, 8], strides = [1, 1]} : vector<8x32xf32> to vector<8x8xf32>
    %161 = tpu.transpose %159, [1, 0] : vector<8x8xf32> -> vector<8x8xf32>
    %cst_74 = arith.constant dense<0.000000e+00> : vector<8x8xf32>
    %162 = tpu.matmul %158, %161, %cst_74 {dimension_numbers = #tpu.dot_dimension_numbers<[1], [0], [0], [1], [0, 0, 1, 1], [], []>} : vector<8x8xf32>, vector<8x8xf32>, vector<8x8xf32> -> vector<8x8xf32>
    %cst_75 = arith.constant -1.000000e+20 : f32
    %163 = vector.broadcast %cst_75 : f32 to vector<8x8xf32>
    %164 = arith.select %12, %162, %163 : vector<8x8xi1>, vector<8x8xf32>
    %cst_76 = arith.constant 0.176776692 : f32
    %165 = vector.broadcast %cst_76 : f32 to vector<8x8xf32>
    %166 = arith.mulf %164, %165 : vector<8x8xf32>
    %cst_77 = arith.constant dense<0xFF800000> : vector<8xf32>
    %167 = vector.multi_reduction <maximumf>, %166, %cst_77 [1] : vector<8x8xf32> to vector<8xf32>
    %168 = vector.shape_cast %167 : vector<8xf32> to vector<8x1xf32>
    %169 = vector.broadcast %168 : vector<8x1xf32> to vector<8x8xf32>
    %170 = arith.subf %166, %169 : vector<8x8xf32>
    %171 = math.exp %170 : vector<8x8xf32>
    %cst_78 = arith.constant dense<0.000000e+00> : vector<8xf32>
    %172 = vector.multi_reduction <add>, %171, %cst_78 [1] : vector<8x8xf32> to vector<8xf32>
    %173 = vector.shape_cast %172 : vector<8xf32> to vector<8x1xf32>
    %174 = tpu.reciprocal %173 {approx = true} : vector<8x1xf32> -> vector<8x1xf32>
    %175 = vector.broadcast %174 : vector<8x1xf32> to vector<8x8xf32>
    %176 = arith.mulf %171, %175 : vector<8x8xf32>
    %cst_79 = arith.constant dense<0.000000e+00> : vector<8x8xf32>
    %177 = tpu.matmul %176, %160, %cst_79 {dimension_numbers = #tpu.dot_dimension_numbers<[1], [0], [0], [1], [0, 0, 1, 1], [], []>} : vector<8x8xf32>, vector<8x8xf32>, vector<8x8xf32> -> vector<8x8xf32>
    %178 = vector.extract_strided_slice %135 {offsets = [0, 16], sizes = [8, 8], strides = [1, 1]} : vector<8x32xf32> to vector<8x8xf32>
    %179 = vector.extract_strided_slice %136 {offsets = [0, 16], sizes = [8, 8], strides = [1, 1]} : vector<8x32xf32> to vector<8x8xf32>
    %180 = vector.extract_strided_slice %137 {offsets = [0, 16], sizes = [8, 8], strides = [1, 1]} : vector<8x32xf32> to vector<8x8xf32>
    %181 = tpu.transpose %179, [1, 0] : vector<8x8xf32> -> vector<8x8xf32>
    %cst_80 = arith.constant dense<0.000000e+00> : vector<8x8xf32>
    %182 = tpu.matmul %178, %181, %cst_80 {dimension_numbers = #tpu.dot_dimension_numbers<[1], [0], [0], [1], [0, 0, 1, 1], [], []>} : vector<8x8xf32>, vector<8x8xf32>, vector<8x8xf32> -> vector<8x8xf32>
    %cst_81 = arith.constant -1.000000e+20 : f32
    %183 = vector.broadcast %cst_81 : f32 to vector<8x8xf32>
    %184 = arith.select %12, %182, %183 : vector<8x8xi1>, vector<8x8xf32>
    %cst_82 = arith.constant 0.176776692 : f32
    %185 = vector.broadcast %cst_82 : f32 to vector<8x8xf32>
    %186 = arith.mulf %184, %185 : vector<8x8xf32>
    %cst_83 = arith.constant dense<0xFF800000> : vector<8xf32>
    %187 = vector.multi_reduction <maximumf>, %186, %cst_83 [1] : vector<8x8xf32> to vector<8xf32>
    %188 = vector.shape_cast %187 : vector<8xf32> to vector<8x1xf32>
    %189 = vector.broadcast %188 : vector<8x1xf32> to vector<8x8xf32>
    %190 = arith.subf %186, %189 : vector<8x8xf32>
    %191 = math.exp %190 : vector<8x8xf32>
    %cst_84 = arith.constant dense<0.000000e+00> : vector<8xf32>
    %192 = vector.multi_reduction <add>, %191, %cst_84 [1] : vector<8x8xf32> to vector<8xf32>
    %193 = vector.shape_cast %192 : vector<8xf32> to vector<8x1xf32>
    %194 = tpu.reciprocal %193 {approx = true} : vector<8x1xf32> -> vector<8x1xf32>
    %195 = vector.broadcast %194 : vector<8x1xf32> to vector<8x8xf32>
    %196 = arith.mulf %191, %195 : vector<8x8xf32>
    %cst_85 = arith.constant dense<0.000000e+00> : vector<8x8xf32>
    %197 = tpu.matmul %196, %180, %cst_85 {dimension_numbers = #tpu.dot_dimension_numbers<[1], [0], [0], [1], [0, 0, 1, 1], [], []>} : vector<8x8xf32>, vector<8x8xf32>, vector<8x8xf32> -> vector<8x8xf32>
    %198 = vector.extract_strided_slice %135 {offsets = [0, 24], sizes = [8, 8], strides = [1, 1]} : vector<8x32xf32> to vector<8x8xf32>
    %199 = vector.extract_strided_slice %136 {offsets = [0, 24], sizes = [8, 8], strides = [1, 1]} : vector<8x32xf32> to vector<8x8xf32>
    %200 = vector.extract_strided_slice %137 {offsets = [0, 24], sizes = [8, 8], strides = [1, 1]} : vector<8x32xf32> to vector<8x8xf32>
    %201 = tpu.transpose %199, [1, 0] : vector<8x8xf32> -> vector<8x8xf32>
    %cst_86 = arith.constant dense<0.000000e+00> : vector<8x8xf32>
    %202 = tpu.matmul %198, %201, %cst_86 {dimension_numbers = #tpu.dot_dimension_numbers<[1], [0], [0], [1], [0, 0, 1, 1], [], []>} : vector<8x8xf32>, vector<8x8xf32>, vector<8x8xf32> -> vector<8x8xf32>
    %cst_87 = arith.constant -1.000000e+20 : f32
    %203 = vector.broadcast %cst_87 : f32 to vector<8x8xf32>
    %204 = arith.select %12, %202, %203 : vector<8x8xi1>, vector<8x8xf32>
    %cst_88 = arith.constant 0.176776692 : f32
    %205 = vector.broadcast %cst_88 : f32 to vector<8x8xf32>
    %206 = arith.mulf %204, %205 : vector<8x8xf32>
    %cst_89 = arith.constant dense<0xFF800000> : vector<8xf32>
    %207 = vector.multi_reduction <maximumf>, %206, %cst_89 [1] : vector<8x8xf32> to vector<8xf32>
    %208 = vector.shape_cast %207 : vector<8xf32> to vector<8x1xf32>
    %209 = vector.broadcast %208 : vector<8x1xf32> to vector<8x8xf32>
    %210 = arith.subf %206, %209 : vector<8x8xf32>
    %211 = math.exp %210 : vector<8x8xf32>
    %cst_90 = arith.constant dense<0.000000e+00> : vector<8xf32>
    %212 = vector.multi_reduction <add>, %211, %cst_90 [1] : vector<8x8xf32> to vector<8xf32>
    %213 = vector.shape_cast %212 : vector<8xf32> to vector<8x1xf32>
    %214 = tpu.reciprocal %213 {approx = true} : vector<8x1xf32> -> vector<8x1xf32>
    %215 = vector.broadcast %214 : vector<8x1xf32> to vector<8x8xf32>
    %216 = arith.mulf %211, %215 : vector<8x8xf32>
    %cst_91 = arith.constant dense<0.000000e+00> : vector<8x8xf32>
    %217 = tpu.matmul %216, %200, %cst_91 {dimension_numbers = #tpu.dot_dimension_numbers<[1], [0], [0], [1], [0, 0, 1, 1], [], []>} : vector<8x8xf32>, vector<8x8xf32>, vector<8x8xf32> -> vector<8x8xf32>
    %218 = tpu.concatenate %157, %177, %197, %217 in 1 : vector<8x8xf32>, vector<8x8xf32>, vector<8x8xf32>, vector<8x8xf32> -> vector<8x32xf32>
    %cst_92 = arith.constant dense<0.000000e+00> : vector<8x32xf32>
    %219 = tpu.matmul %218, %133, %cst_92 {dimension_numbers = #tpu.dot_dimension_numbers<[1], [0], [0], [1], [0, 0, 1, 1], [], []>} : vector<8x32xf32>, vector<32x32xf32>, vector<8x32xf32> -> vector<8x32xf32>
    %220 = vector.broadcast %134 : vector<1x32xf32> to vector<8x32xf32>
    %221 = arith.addf %219, %220 : vector<8x32xf32>
    %222 = arith.addf %221, %129 : vector<8x32xf32>
    %c0_93 = arith.constant 0 : index
    %c0_94 = arith.constant 0 : index
    %223 = vector.load %arg16[%c0_93, %c0_94] : memref<1x32xf32, #tpu.memory_space<vmem>>, vector<1x32xf32>
    %c0_95 = arith.constant 0 : index
    %c0_96 = arith.constant 0 : index
    %224 = vector.load %arg17[%c0_95, %c0_96] : memref<1x32xf32, #tpu.memory_space<vmem>>, vector<1x32xf32>
    %cst_97 = arith.constant dense<0.000000e+00> : vector<8xf32>
    %225 = vector.multi_reduction <add>, %222, %cst_97 [1] : vector<8x32xf32> to vector<8xf32>
    %226 = vector.shape_cast %225 : vector<8xf32> to vector<8x1xf32>
    %cst_98 = arith.constant 3.200000e+01 : f32
    %227 = vector.broadcast %cst_98 : f32 to vector<8x1xf32>
    %228 = arith.divf %226, %227 : vector<8x1xf32>
    %229 = vector.broadcast %228 : vector<8x1xf32> to vector<8x32xf32>
    %230 = arith.subf %222, %229 : vector<8x32xf32>
    %231 = arith.mulf %230, %230 : vector<8x32xf32>
    %cst_99 = arith.constant dense<0.000000e+00> : vector<8xf32>
    %232 = vector.multi_reduction <add>, %231, %cst_99 [1] : vector<8x32xf32> to vector<8xf32>
    %233 = vector.shape_cast %232 : vector<8xf32> to vector<8x1xf32>
    %cst_100 = arith.constant 3.200000e+01 : f32
    %234 = vector.broadcast %cst_100 : f32 to vector<8x1xf32>
    %235 = arith.divf %233, %234 : vector<8x1xf32>
    %236 = vector.broadcast %228 : vector<8x1xf32> to vector<8x32xf32>
    %237 = arith.subf %222, %236 : vector<8x32xf32>
    %cst_101 = arith.constant 9.99999974E-6 : f32
    %238 = vector.broadcast %cst_101 : f32 to vector<8x1xf32>
    %239 = arith.addf %235, %238 : vector<8x1xf32>
    %240 = math.rsqrt %239 : vector<8x1xf32>
    %241 = vector.broadcast %240 : vector<8x1xf32> to vector<8x32xf32>
    %242 = arith.mulf %237, %241 : vector<8x32xf32>
    %243 = vector.broadcast %223 : vector<1x32xf32> to vector<8x32xf32>
    %244 = arith.mulf %242, %243 : vector<8x32xf32>
    %245 = vector.broadcast %224 : vector<1x32xf32> to vector<8x32xf32>
    %246 = arith.addf %244, %245 : vector<8x32xf32>
    %c0_102 = arith.constant 0 : index
    %c0_103 = arith.constant 0 : index
    %247 = vector.load %arg18[%c0_102, %c0_103] : memref<32x128xf32, #tpu.memory_space<vmem>>, vector<32x128xf32>
    %cst_104 = arith.constant dense<0.000000e+00> : vector<8x128xf32>
    %248 = tpu.matmul %246, %247, %cst_104 {dimension_numbers = #tpu.dot_dimension_numbers<[1], [0], [0], [1], [0, 0, 1, 1], [], []>} : vector<8x32xf32>, vector<32x128xf32>, vector<8x128xf32> -> vector<8x128xf32>
    %c0_105 = arith.constant 0 : index
    %c0_106 = arith.constant 0 : index
    %249 = vector.load %arg19[%c0_105, %c0_106] : memref<1x128xf32, #tpu.memory_space<vmem>>, vector<1x128xf32>
    %250 = vector.broadcast %249 : vector<1x128xf32> to vector<8x128xf32>
    %251 = arith.addf %248, %250 : vector<8x128xf32>
    %cst_107 = arith.constant 0.000000e+00 : f32
    %252 = vector.broadcast %cst_107 : f32 to vector<8x128xf32>
    %253 = arith.maximumf %251, %252 : vector<8x128xf32>
    %c0_108 = arith.constant 0 : index
    %c0_109 = arith.constant 0 : index
    %254 = vector.load %arg20[%c0_108, %c0_109] : memref<128x32xf32, #tpu.memory_space<vmem>>, vector<128x32xf32>
    %cst_110 = arith.constant dense<0.000000e+00> : vector<8x32xf32>
    %255 = tpu.matmul %253, %254, %cst_110 {dimension_numbers = #tpu.dot_dimension_numbers<[1], [0], [0], [1], [0, 0, 1, 1], [], []>} : vector<8x128xf32>, vector<128x32xf32>, vector<8x32xf32> -> vector<8x32xf32>
    %c0_111 = arith.constant 0 : index
    %c0_112 = arith.constant 0 : index
    %256 = vector.load %arg21[%c0_111, %c0_112] : memref<1x32xf32, #tpu.memory_space<vmem>>, vector<1x32xf32>
    %257 = vector.broadcast %256 : vector<1x32xf32> to vector<8x32xf32>
    %258 = arith.addf %255, %257 : vector<8x32xf32>
    %259 = arith.addf %258, %246 : vector<8x32xf32>
    %c0_113 = arith.constant 0 : index
    %c0_114 = arith.constant 0 : index
    %260 = vector.load %arg22[%c0_113, %c0_114] : memref<1x32xf32, #tpu.memory_space<vmem>>, vector<1x32xf32>
    %c0_115 = arith.constant 0 : index
    %c0_116 = arith.constant 0 : index
    %261 = vector.load %arg23[%c0_115, %c0_116] : memref<1x32xf32, #tpu.memory_space<vmem>>, vector<1x32xf32>
    %cst_117 = arith.constant dense<0.000000e+00> : vector<8xf32>
    %262 = vector.multi_reduction <add>, %259, %cst_117 [1] : vector<8x32xf32> to vector<8xf32>
    %263 = vector.shape_cast %262 : vector<8xf32> to vector<8x1xf32>
    %cst_118 = arith.constant 3.200000e+01 : f32
    %264 = vector.broadcast %cst_118 : f32 to vector<8x1xf32>
    %265 = arith.divf %263, %264 : vector<8x1xf32>
    %266 = vector.broadcast %265 : vector<8x1xf32> to vector<8x32xf32>
    %267 = arith.subf %259, %266 : vector<8x32xf32>
    %268 = arith.mulf %267, %267 : vector<8x32xf32>
    %cst_119 = arith.constant dense<0.000000e+00> : vector<8xf32>
    %269 = vector.multi_reduction <add>, %268, %cst_119 [1] : vector<8x32xf32> to vector<8xf32>
    %270 = vector.shape_cast %269 : vector<8xf32> to vector<8x1xf32>
    %cst_120 = arith.constant 3.200000e+01 : f32
    %271 = vector.broadcast %cst_120 : f32 to vector<8x1xf32>
    %272 = arith.divf %270, %271 : vector<8x1xf32>
    %273 = vector.broadcast %265 : vector<8x1xf32> to vector<8x32xf32>
    %274 = arith.subf %259, %273 : vector<8x32xf32>
    %cst_121 = arith.constant 9.99999974E-6 : f32
    %275 = vector.broadcast %cst_121 : f32 to vector<8x1xf32>
    %276 = arith.addf %272, %275 : vector<8x1xf32>
    %277 = math.rsqrt %276 : vector<8x1xf32>
    %278 = vector.broadcast %277 : vector<8x1xf32> to vector<8x32xf32>
    %279 = arith.mulf %274, %278 : vector<8x32xf32>
    %280 = vector.broadcast %260 : vector<1x32xf32> to vector<8x32xf32>
    %281 = arith.mulf %279, %280 : vector<8x32xf32>
    %282 = vector.broadcast %261 : vector<1x32xf32> to vector<8x32xf32>
    %283 = arith.addf %281, %282 : vector<8x32xf32>
    %c0_122 = arith.constant 0 : index
    %c0_123 = arith.constant 0 : index
    %c0_124 = arith.constant 0 : index
    %284 = vector.load %arg24[%c0_122, %c0_123, %c0_124] : memref<1x8x32xf32, #tpu.memory_space<vmem>>, vector<1x8x32xf32>
    %285 = vector.shape_cast %284 : vector<1x8x32xf32> to vector<8x32xf32>
    %286 = vector.shape_cast %283 : vector<8x32xf32> to vector<1x8x32xf32>
    tpu.vector_store %arg24[%c0_122, %c0_123, %c0_124], %286 {strides = array<i32>} : memref<1x8x32xf32, #tpu.memory_space<vmem>>, vector<1x8x32xf32>,
    return
  }
  func.func @transform_0(%arg0: i32) -> (i32, i32, i32) {
    %c0_i32 = arith.constant 0 : i32
    %c0_i32_0 = arith.constant 0 : i32
    %c0_i32_1 = arith.constant 0 : i32
    return %arg0, %c0_i32, %c0_i32_0 : i32, i32, i32
  }
  func.func @transform_1(%arg0: i32) -> (i32, i32, i32) {
    %c0_i32 = arith.constant 0 : i32
    %c0_i32_0 = arith.constant 0 : i32
    %c0_i32_1 = arith.constant 0 : i32
    return %arg0, %c0_i32, %c0_i32_0 : i32, i32, i32
  }
  func.func @transform_2(%arg0: i32) -> (i32, i32, i32) {
    %c0_i32 = arith.constant 0 : i32
    %c0_i32_0 = arith.constant 0 : i32
    %c0_i32_1 = arith.constant 0 : i32
    return %arg0, %c0_i32, %c0_i32_0 : i32, i32, i32
  }
  func.func @transform_3(%arg0: i32) -> (i32, i32) {
    %c0_i32 = arith.constant 0 : i32
    %c0_i32_0 = arith.constant 0 : i32
    %c0_i32_1 = arith.constant 0 : i32
    return %c0_i32, %c0_i32_0 : i32, i32
  }
  func.func @transform_4(%arg0: i32) -> (i32, i32) {
    %c0_i32 = arith.constant 0 : i32
    %c0_i32_0 = arith.constant 0 : i32
    %c0_i32_1 = arith.constant 0 : i32
    return %c0_i32, %c0_i32_0 : i32, i32
  }
  func.func @transform_5(%arg0: i32) -> (i32, i32) {
    %c0_i32 = arith.constant 0 : i32
    %c0_i32_0 = arith.constant 0 : i32
    %c0_i32_1 = arith.constant 0 : i32
    return %c0_i32, %c0_i32_0 : i32, i32
  }
  func.func @transform_6(%arg0: i32) -> (i32, i32) {
    %c0_i32 = arith.constant 0 : i32
    %c0_i32_0 = arith.constant 0 : i32
    %c0_i32_1 = arith.constant 0 : i32
    return %c0_i32, %c0_i32_0 : i32, i32
  }
  func.func @transform_7(%arg0: i32) -> (i32, i32) {
    %c0_i32 = arith.constant 0 : i32
    %c0_i32_0 = arith.constant 0 : i32
    %c0_i32_1 = arith.constant 0 : i32
    return %c0_i32, %c0_i32_0 : i32, i32
  }
  func.func @transform_8(%arg0: i32) -> (i32, i32) {
    %c0_i32 = arith.constant 0 : i32
    %c0_i32_0 = arith.constant 0 : i32
    %c0_i32_1 = arith.constant 0 : i32
    return %c0_i32, %c0_i32_0 : i32, i32
  }
  func.func @transform_9(%arg0: i32) -> (i32, i32) {
    %c0_i32 = arith.constant 0 : i32
    %c0_i32_0 = arith.constant 0 : i32
    %c0_i32_1 = arith.constant 0 : i32
    return %c0_i32, %c0_i32_0 : i32, i32
  }
  func.func @transform_10(%arg0: i32) -> (i32, i32) {
    %c0_i32 = arith.constant 0 : i32
    %c0_i32_0 = arith.constant 0 : i32
    %c0_i32_1 = arith.constant 0 : i32
    return %c0_i32, %c0_i32_0 : i32, i32
  }
  func.func @transform_11(%arg0: i32) -> (i32, i32) {
    %c0_i32 = arith.constant 0 : i32
    %c0_i32_0 = arith.constant 0 : i32
    %c0_i32_1 = arith.constant 0 : i32
    return %c0_i32, %c0_i32_0 : i32, i32
  }
  func.func @transform_12(%arg0: i32) -> (i32, i32) {
    %c0_i32 = arith.constant 0 : i32
    %c0_i32_0 = arith.constant 0 : i32
    %c0_i32_1 = arith.constant 0 : i32
    return %c0_i32, %c0_i32_0 : i32, i32
  }
  func.func @transform_13(%arg0: i32) -> (i32, i32) {
    %c0_i32 = arith.constant 0 : i32
    %c0_i32_0 = arith.constant 0 : i32
    %c0_i32_1 = arith.constant 0 : i32
    return %c0_i32, %c0_i32_0 : i32, i32
  }
  func.func @transform_14(%arg0: i32) -> (i32, i32) {
    %c0_i32 = arith.constant 0 : i32
    %c0_i32_0 = arith.constant 0 : i32
    %c0_i32_1 = arith.constant 0 : i32
    return %c0_i32, %c0_i32_0 : i32, i32
  }
  func.func @transform_15(%arg0: i32) -> (i32, i32) {
    %c0_i32 = arith.constant 0 : i32
    %c0_i32_0 = arith.constant 0 : i32
    %c0_i32_1 = arith.constant 0 : i32
    return %c0_i32, %c0_i32_0 : i32, i32
  }
  func.func @transform_16(%arg0: i32) -> (i32, i32) {
    %c0_i32 = arith.constant 0 : i32
    %c0_i32_0 = arith.constant 0 : i32
    %c0_i32_1 = arith.constant 0 : i32
    return %c0_i32, %c0_i32_0 : i32, i32
  }
  func.func @transform_17(%arg0: i32) -> (i32, i32) {
    %c0_i32 = arith.constant 0 : i32
    %c0_i32_0 = arith.constant 0 : i32
    %c0_i32_1 = arith.constant 0 : i32
    return %c0_i32, %c0_i32_0 : i32, i32
  }
  func.func @transform_18(%arg0: i32) -> (i32, i32) {
    %c0_i32 = arith.constant 0 : i32
    %c0_i32_0 = arith.constant 0 : i32
    %c0_i32_1 = arith.constant 0 : i32
    return %c0_i32, %c0_i32_0 : i32, i32
  }
  func.func @transform_19(%arg0: i32) -> (i32, i32) {
    %c0_i32 = arith.constant 0 : i32
    %c0_i32_0 = arith.constant 0 : i32
    %c0_i32_1 = arith.constant 0 : i32
    return %c0_i32, %c0_i32_0 : i32, i32
  }
  func.func @transform_20(%arg0: i32) -> (i32, i32) {
    %c0_i32 = arith.constant 0 : i32
    %c0_i32_0 = arith.constant 0 : i32
    %c0_i32_1 = arith.constant 0 : i32
    return %c0_i32, %c0_i32_0 : i32, i32
  }
  func.func @transform_21(%arg0: i32) -> (i32, i32) {
    %c0_i32 = arith.constant 0 : i32
    %c0_i32_0 = arith.constant 0 : i32
    %c0_i32_1 = arith.constant 0 : i32
    return %c0_i32, %c0_i32_0 : i32, i32
  }
  func.func @transform_22(%arg0: i32) -> (i32, i32) {
    %c0_i32 = arith.constant 0 : i32
    %c0_i32_0 = arith.constant 0 : i32
    %c0_i32_1 = arith.constant 0 : i32
    return %c0_i32, %c0_i32_0 : i32, i32
  }
  func.func @transform_23(%arg0: i32) -> (i32, i32, i32) {
    %c0_i32 = arith.constant 0 : i32
    %c0_i32_0 = arith.constant 0 : i32
    %c0_i32_1 = arith.constant 0 : i32
    return %arg0, %c0_i32, %c0_i32_0 : i32, i32, i32
  }
}

module attributes {stable_mosaic.version = 11 : i64} {
  func.func @_linear_kernel(%arg0: memref<16x32xf32, #tpu.memory_space<vmem>>, %arg1: memref<32x128xf32, #tpu.memory_space<vmem>>, %arg2: memref<1x128xf32, #tpu.memory_space<vmem>>, %arg3: memref<16x128xf32, #tpu.memory_space<vmem>>) attributes {dimension_semantics = [], scalar_prefetch = 0 : i64, scratch_operands = 0 : i64, tpu.core_type = #tpu.core_type<tc>} {
    %c0 = arith.constant 0 : index
    %c0_0 = arith.constant 0 : index
    %0 = vector.load %arg0[%c0, %c0_0] : memref<16x32xf32, #tpu.memory_space<vmem>>, vector<16x32xf32>
    %c0_1 = arith.constant 0 : index
    %c0_2 = arith.constant 0 : index
    %1 = vector.load %arg1[%c0_1, %c0_2] : memref<32x128xf32, #tpu.memory_space<vmem>>, vector<32x128xf32>
    %cst = arith.constant dense<0.000000e+00> : vector<16x128xf32>
    %2 = tpu.matmul %0, %1, %cst {dimension_numbers = #tpu.dot_dimension_numbers<[1], [0], [0], [1], [0, 0, 1, 1], [], []>} : vector<16x32xf32>, vector<32x128xf32>, vector<16x128xf32> -> vector<16x128xf32>
    %c0_3 = arith.constant 0 : index
    %c0_4 = arith.constant 0 : index
    %3 = vector.load %arg2[%c0_3, %c0_4] : memref<1x128xf32, #tpu.memory_space<vmem>>, vector<1x128xf32>
    %4 = vector.broadcast %3 : vector<1x128xf32> to vector<16x128xf32>
    %5 = arith.addf %2, %4 : vector<16x128xf32>
    %c0_5 = arith.constant 0 : index
    %c0_6 = arith.constant 0 : index
    %6 = vector.load %arg3[%c0_5, %c0_6] : memref<16x128xf32, #tpu.memory_space<vmem>>, vector<16x128xf32>
    tpu.vector_store %arg3[%c0_5, %c0_6], %5 {strides = array<i32>} : memref<16x128xf32, #tpu.memory_space<vmem>>, vector<16x128xf32>,
    return
  }
}

module attributes {stable_mosaic.version = 11 : i64} {
  func.func @_decoder_layer_kernel(%arg0: i32, %arg1: memref<1x8x32xf32, #tpu.memory_space<vmem>>, %arg2: memref<1x8x32xf32, #tpu.memory_space<vmem>>, %arg3: memref<1x1x8xf32, #tpu.memory_space<vmem>>, %arg4: memref<32x32xf32, #tpu.memory_space<vmem>>, %arg5: memref<32x32xf32, #tpu.memory_space<vmem>>, %arg6: memref<32x32xf32, #tpu.memory_space<vmem>>, %arg7: memref<32x32xf32, #tpu.memory_space<vmem>>, %arg8: memref<1x32xf32, #tpu.memory_space<vmem>>, %arg9: memref<1x32xf32, #tpu.memory_space<vmem>>, %arg10: memref<1x32xf32, #tpu.memory_space<vmem>>, %arg11: memref<32x32xf32, #tpu.memory_space<vmem>>, %arg12: memref<32x32xf32, #tpu.memory_space<vmem>>, %arg13: memref<32x32xf32, #tpu.memory_space<vmem>>, %arg14: memref<32x32xf32, #tpu.memory_space<vmem>>, %arg15: memref<1x32xf32, #tpu.memory_space<vmem>>, %arg16: memref<1x32xf32, #tpu.memory_space<vmem>>, %arg17: memref<1x32xf32, #tpu.memory_space<vmem>>, %arg18: memref<32x128xf32, #tpu.memory_space<vmem>>, %arg19: memref<1x128xf32, #tpu.memory_space<vmem>>, %arg20: memref<128x32xf32, #tpu.memory_space<vmem>>, %arg21: memref<1x32xf32, #tpu.memory_space<vmem>>, %arg22: memref<1x32xf32, #tpu.memory_space<vmem>>, %arg23: memref<1x32xf32, #tpu.memory_space<vmem>>, %arg24: memref<1x8x32xf32, #tpu.memory_space<vmem>>) attributes {dimension_semantics = [#tpu.dimension_semantics<parallel>], iteration_bounds = array<i64: 2>, scalar_prefetch = 0 : i64, scratch_operands = 0 : i64, tpu.core_type = #tpu.core_type<tc>, window_params = [{transform_indices = @transform_0, window_bounds = array<i64: 1, 8, 32>}, {transform_indices = @transform_1, window_bounds = array<i64: 1, 8, 32>}, {transform_indices = @transform_2, window_bounds = array<i64: 1, 1, 8>}, {pipeline_mode = #tpu.pipeline_mode<synchronous>, transform_indices = @transform_3, window_bounds = array<i64: 32, 32>}, {pipeline_mode = #tpu.pipeline_mode<synchronous>, transform_indices = @transform_4, window_bounds = array<i64: 32, 32>}, {pipeline_mode = #tpu.pipeline_mode<synchronous>, transform_indices = @transform_5, window_bounds = array<i64: 32, 32>}, {pipeline_mode = #tpu.pipeline_mode<synchronous>, transform_indices = @transform_6, window_bounds = array<i64: 32, 32>}, {pipeline_mode = #tpu.pipeline_mode<synchronous>, transform_indices = @transform_7, window_bounds = array<i64: 1, 32>}, {pipeline_mode = #tpu.pipeline_mode<synchronous>, transform_indices = @transform_8, window_bounds = array<i64: 1, 32>}, {pipeline_mode = #tpu.pipeline_mode<synchronous>, transform_indices = @transform_9, window_bounds = array<i64: 1, 32>}, {pipeline_mode = #tpu.pipeline_mode<synchronous>, transform_indices = @transform_10, window_bounds = array<i64: 32, 32>}, {pipeline_mode = #tpu.pipeline_mode<synchronous>, transform_indices = @transform_11, window_bounds = array<i64: 32, 32>}, {pipeline_mode = #tpu.pipeline_mode<synchronous>, transform_indices = @transform_12, window_bounds = array<i64: 32, 32>}, {pipeline_mode = #tpu.pipeline_mode<synchronous>, transform_indices = @transform_13, window_bounds = array<i64: 32, 32>}, {pipeline_mode = #tpu.pipeline_mode<synchronous>, transform_indices = @transform_14, window_bounds = array<i64: 1, 32>}, {pipeline_mode = #tpu.pipeline_mode<synchronous>, transform_indices = @transform_15, window_bounds = array<i64: 1, 32>}, {pipeline_mode = #tpu.pipeline_mode<synchronous>, transform_indices = @transform_16, window_bounds = array<i64: 1, 32>}, {pipeline_mode = #tpu.pipeline_mode<synchronous>, transform_indices = @transform_17, window_bounds = array<i64: 32, 128>}, {pipeline_mode = #tpu.pipeline_mode<synchronous>, transform_indices = @transform_18, window_bounds = array<i64: 1, 128>}, {pipeline_mode = #tpu.pipeline_mode<synchronous>, transform_indices = @transform_19, window_bounds = array<i64: 128, 32>}, {pipeline_mode = #tpu.pipeline_mode<synchronous>, transform_indices = @transform_20, window_bounds = array<i64: 1, 32>}, {pipeline_mode = #tpu.pipeline_mode<synchronous>, transform_indices = @transform_21, window_bounds = array<i64: 1, 32>}, {pipeline_mode = #tpu.pipeline_mode<synchronous>, transform_indices = @transform_22, window_bounds = array<i64: 1, 32>}, {transform_indices = @transform_23, window_bounds = array<i64: 1, 8, 32>}]} {
    %c0 = arith.constant 0 : index
    %c0_0 = arith.constant 0 : index
    %c0_1 = arith.constant 0 : index
    %0 = vector.load %arg1[%c0, %c0_0, %c0_1] : memref<1x8x32xf32, #tpu.memory_space<vmem>>, vector<1x8x32xf32>
    %1 = vector.shape_cast %0 : vector<1x8x32xf32> to vector<8x32xf32>
    %c0_2 = arith.constant 0 : index
    %c0_3 = arith.constant 0 : index
    %c0_4 = arith.constant 0 : index
    %2 = vector.load %arg2[%c0_2, %c0_3, %c0_4] : memref<1x8x32xf32, #tpu.memory_space<vmem>>, vector<1x8x32xf32>
    %3 = vector.shape_cast %2 : vector<1x8x32xf32> to vector<8x32xf32>
    %4 = tpu.iota {dimensions = array<i32: 0>} : vector<8x8xi32>
    %5 = tpu.iota {dimensions = array<i32: 1>} : vector<8x8xi32>
    %6 = arith.cmpi sge, %4, %5 : vector<8x8xi32>
    %c0_5 = arith.constant 0 : index
    %c0_6 = arith.constant 0 : index
    %c0_7 = arith.constant 0 : index
    %7 = vector.load %arg3[%c0_5, %c0_6, %c0_7] : memref<1x1x8xf32, #tpu.memory_space<vmem>>, vector<1x1x8xf32>
    %8 = vector.shape_cast %7 : vector<1x1x8xf32> to vector<1x8xf32>
    %cst = arith.constant 0.000000e+00 : f32
    %9 = vector.broadcast %cst : f32 to vector<1x8xf32>
    %10 = arith.cmpf one, %8, %9 : vector<1x8xf32>
    %11 = vector.shape_cast %10 : vector<1x8xi1> to vector<1x8xi1>
    %12 = vector.broadcast %11 : vector<1x8xi1> to vector<8x8xi1>
    %c0_8 = arith.constant 0 : index
    %c0_9 = arith.constant 0 : index
    %13 = vector.load %arg4[%c0_8, %c0_9] : memref<32x32xf32, #tpu.memory_space<vmem>>, vector<32x32xf32>
    %c0_10 = arith.constant 0 : index
    %c0_11 = arith.constant 0 : index
    %14 = vector.load %arg5[%c0_10, %c0_11] : memref<32x32xf32, #tpu.memory_space<vmem>>, vector<32x32xf32>
    %c0_12 = arith.constant 0 : index
    %c0_13 = arith.constant 0 : index
    %15 = vector.load %arg6[%c0_12, %c0_13] : memref<32x32xf32, #tpu.memory_space<vmem>>, vector<32x32xf32>
    %c0_14 = arith.constant 0 : index
    %c0_15 = arith.constant 0 : index
    %16 = vector.load %arg7[%c0_14, %c0_15] : memref<32x32xf32, #tpu.memory_space<vmem>>, vector<32x32xf32>
    %c0_16 = arith.constant 0 : index
    %c0_17 = arith.constant 0 : index
    %17 = vector.load %arg8[%c0_16, %c0_17] : memref<1x32xf32, #tpu.memory_space<vmem>>, vector<1x32xf32>
    %cst_18 = arith.constant dense<0.000000e+00> : vector<8x32xf32>
    %18 = tpu.matmul %1, %13, %cst_18 {dimension_numbers = #tpu.dot_dimension_numbers<[1], [0], [0], [1], [0, 0, 1, 1], [], []>} : vector<8x32xf32>, vector<32x32xf32>, vector<8x32xf32> -> vector<8x32xf32>
    %cst_19 = arith.constant dense<0.000000e+00> : vector<8x32xf32>
    %19 = tpu.matmul %1, %14, %cst_19 {dimension_numbers = #tpu.dot_dimension_numbers<[1], [0], [0], [1], [0, 0, 1, 1], [], []>} : vector<8x32xf32>, vector<32x32xf32>, vector<8x32xf32> -> vector<8x32xf32>
    %cst_20 = arith.constant dense<0.000000e+00> : vector<8x32xf32>
    %20 = tpu.matmul %1, %15, %cst_20 {dimension_numbers = #tpu.dot_dimension_numbers<[1], [0], [0], [1], [0, 0, 1, 1], [], []>} : vector<8x32xf32>, vector<32x32xf32>, vector<8x32xf32> -> vector<8x32xf32>
    %21 = vector.extract_strided_slice %18 {offsets = [0, 0], sizes = [8, 8], strides = [1, 1]} : vector<8x32xf32> to vector<8x8xf32>
    %22 = vector.extract_strided_slice %19 {offsets = [0, 0], sizes = [8, 8], strides = [1, 1]} : vector<8x32xf32> to vector<8x8xf32>
    %23 = vector.extract_strided_slice %20 {offsets = [0, 0], sizes = [8, 8], strides = [1, 1]} : vector<8x32xf32> to vector<8x8xf32>
    %24 = tpu.transpose %22, [1, 0] : vector<8x8xf32> -> vector<8x8xf32>
    %cst_21 = arith.constant dense<0.000000e+00> : vector<8x8xf32>
    %25 = tpu.matmul %21, %24, %cst_21 {dimension_numbers = #tpu.dot_dimension_numbers<[1], [0], [0], [1], [0, 0, 1, 1], [], []>} : vector<8x8xf32>, vector<8x8xf32>, vector<8x8xf32> -> vector<8x8xf32>
    %cst_22 = arith.constant -1.000000e+20 : f32
    %26 = vector.broadcast %cst_22 : f32 to vector<8x8xf32>
    %27 = arith.select %6, %25, %26 : vector<8x8xi1>, vector<8x8xf32>
    %cst_23 = arith.constant 0.176776692 : f32
    %28 = vector.broadcast %cst_23 : f32 to vector<8x8xf32>
    %29 = arith.mulf %27, %28 : vector<8x8xf32>
    %cst_24 = arith.constant dense<0xFF800000> : vector<8xf32>
    %30 = vector.multi_reduction <maximumf>, %29, %cst_24 [1] : vector<8x8xf32> to vector<8xf32>
    %31 = vector.shape_cast %30 : vector<8xf32> to vector<8x1xf32>
    %32 = vector.broadcast %31 : vector<8x1xf32> to vector<8x8xf32>
    %33 = arith.subf %29, %32 : vector<8x8xf32>
    %34 = math.exp %33 : vector<8x8xf32>
    %cst_25 = arith.constant dense<0.000000e+00> : vector<8xf32>
    %35 = vector.multi_reduction <add>, %34, %cst_25 [1] : vector<8x8xf32> to vector<8xf32>
    %36 = vector.shape_cast %35 : vector<8xf32> to vector<8x1xf32>
    %37 = tpu.reciprocal %36 {approx = true} : vector<8x1xf32> -> vector<8x1xf32>
    %38 = vector.broadcast %37 : vector<8x1xf32> to vector<8x8xf32>
    %39 = arith.mulf %34, %38 : vector<8x8xf32>
    %cst_26 = arith.constant dense<0.000000e+00> : vector<8x8xf32>
    %40 = tpu.matmul %39, %23, %cst_26 {dimension_numbers = #tpu.dot_dimension_numbers<[1], [0], [0], [1], [0, 0, 1, 1], [], []>} : vector<8x8xf32>, vector<8x8xf32>, vector<8x8xf32> -> vector<8x8xf32>
    %41 = vector.extract_strided_slice %18 {offsets = [0, 8], sizes = [8, 8], strides = [1, 1]} : vector<8x32xf32> to vector<8x8xf32>
    %42 = vector.extract_strided_slice %19 {offsets = [0, 8], sizes = [8, 8], strides = [1, 1]} : vector<8x32xf32> to vector<8x8xf32>
    %43 = vector.extract_strided_slice %20 {offsets = [0, 8], sizes = [8, 8], strides = [1, 1]} : vector<8x32xf32> to vector<8x8xf32>
    %44 = tpu.transpose %42, [1, 0] : vector<8x8xf32> -> vector<8x8xf32>
    %cst_27 = arith.constant dense<0.000000e+00> : vector<8x8xf32>
    %45 = tpu.matmul %41, %44, %cst_27 {dimension_numbers = #tpu.dot_dimension_numbers<[1], [0], [0], [1], [0, 0, 1, 1], [], []>} : vector<8x8xf32>, vector<8x8xf32>, vector<8x8xf32> -> vector<8x8xf32>
    %cst_28 = arith.constant -1.000000e+20 : f32
    %46 = vector.broadcast %cst_28 : f32 to vector<8x8xf32>
    %47 = arith.select %6, %45, %46 : vector<8x8xi1>, vector<8x8xf32>
    %cst_29 = arith.constant 0.176776692 : f32
    %48 = vector.broadcast %cst_29 : f32 to vector<8x8xf32>
    %49 = arith.mulf %47, %48 : vector<8x8xf32>
    %cst_30 = arith.constant dense<0xFF800000> : vector<8xf32>
    %50 = vector.multi_reduction <maximumf>, %49, %cst_30 [1] : vector<8x8xf32> to vector<8xf32>
    %51 = vector.shape_cast %50 : vector<8xf32> to vector<8x1xf32>
    %52 = vector.broadcast %51 : vector<8x1xf32> to vector<8x8xf32>
    %53 = arith.subf %49, %52 : vector<8x8xf32>
    %54 = math.exp %53 : vector<8x8xf32>
    %cst_31 = arith.constant dense<0.000000e+00> : vector<8xf32>
    %55 = vector.multi_reduction <add>, %54, %cst_31 [1] : vector<8x8xf32> to vector<8xf32>
    %56 = vector.shape_cast %55 : vector<8xf32> to vector<8x1xf32>
    %57 = tpu.reciprocal %56 {approx = true} : vector<8x1xf32> -> vector<8x1xf32>
    %58 = vector.broadcast %57 : vector<8x1xf32> to vector<8x8xf32>
    %59 = arith.mulf %54, %58 : vector<8x8xf32>
    %cst_32 = arith.constant dense<0.000000e+00> : vector<8x8xf32>
    %60 = tpu.matmul %59, %43, %cst_32 {dimension_numbers = #tpu.dot_dimension_numbers<[1], [0], [0], [1], [0, 0, 1, 1], [], []>} : vector<8x8xf32>, vector<8x8xf32>, vector<8x8xf32> -> vector<8x8xf32>
    %61 = vector.extract_strided_slice %18 {offsets = [0, 16], sizes = [8, 8], strides = [1, 1]} : vector<8x32xf32> to vector<8x8xf32>
    %62 = vector.extract_strided_slice %19 {offsets = [0, 16], sizes = [8, 8], strides = [1, 1]} : vector<8x32xf32> to vector<8x8xf32>
    %63 = vector.extract_strided_slice %20 {offsets = [0, 16], sizes = [8, 8], strides = [1, 1]} : vector<8x32xf32> to vector<8x8xf32>
    %64 = tpu.transpose %62, [1, 0] : vector<8x8xf32> -> vector<8x8xf32>
    %cst_33 = arith.constant dense<0.000000e+00> : vector<8x8xf32>
    %65 = tpu.matmul %61, %64, %cst_33 {dimension_numbers = #tpu.dot_dimension_numbers<[1], [0], [0], [1], [0, 0, 1, 1], [], []>} : vector<8x8xf32>, vector<8x8xf32>, vector<8x8xf32> -> vector<8x8xf32>
    %cst_34 = arith.constant -1.000000e+20 : f32
    %66 = vector.broadcast %cst_34 : f32 to vector<8x8xf32>
    %67 = arith.select %6, %65, %66 : vector<8x8xi1>, vector<8x8xf32>
    %cst_35 = arith.constant 0.176776692 : f32
    %68 = vector.broadcast %cst_35 : f32 to vector<8x8xf32>
    %69 = arith.mulf %67, %68 : vector<8x8xf32>
    %cst_36 = arith.constant dense<0xFF800000> : vector<8xf32>
    %70 = vector.multi_reduction <maximumf>, %69, %cst_36 [1] : vector<8x8xf32> to vector<8xf32>
    %71 = vector.shape_cast %70 : vector<8xf32> to vector<8x1xf32>
    %72 = vector.broadcast %71 : vector<8x1xf32> to vector<8x8xf32>
    %73 = arith.subf %69, %72 : vector<8x8xf32>
    %74 = math.exp %73 : vector<8x8xf32>
    %cst_37 = arith.constant dense<0.000000e+00> : vector<8xf32>
    %75 = vector.multi_reduction <add>, %74, %cst_37 [1] : vector<8x8xf32> to vector<8xf32>
    %76 = vector.shape_cast %75 : vector<8xf32> to vector<8x1xf32>
    %77 = tpu.reciprocal %76 {approx = true} : vector<8x1xf32> -> vector<8x1xf32>
    %78 = vector.broadcast %77 : vector<8x1xf32> to vector<8x8xf32>
    %79 = arith.mulf %74, %78 : vector<8x8xf32>
    %cst_38 = arith.constant dense<0.000000e+00> : vector<8x8xf32>
    %80 = tpu.matmul %79, %63, %cst_38 {dimension_numbers = #tpu.dot_dimension_numbers<[1], [0], [0], [1], [0, 0, 1, 1], [], []>} : vector<8x8xf32>, vector<8x8xf32>, vector<8x8xf32> -> vector<8x8xf32>
    %81 = vector.extract_strided_slice %18 {offsets = [0, 24], sizes = [8, 8], strides = [1, 1]} : vector<8x32xf32> to vector<8x8xf32>
    %82 = vector.extract_strided_slice %19 {offsets = [0, 24], sizes = [8, 8], strides = [1, 1]} : vector<8x32xf32> to vector<8x8xf32>
    %83 = vector.extract_strided_slice %20 {offsets = [0, 24], sizes = [8, 8], strides = [1, 1]} : vector<8x32xf32> to vector<8x8xf32>
    %84 = tpu.transpose %82, [1, 0] : vector<8x8xf32> -> vector<8x8xf32>
    %cst_39 = arith.constant dense<0.000000e+00> : vector<8x8xf32>
    %85 = tpu.matmul %81, %84, %cst_39 {dimension_numbers = #tpu.dot_dimension_numbers<[1], [0], [0], [1], [0, 0, 1, 1], [], []>} : vector<8x8xf32>, vector<8x8xf32>, vector<8x8xf32> -> vector<8x8xf32>
    %cst_40 = arith.constant -1.000000e+20 : f32
    %86 = vector.broadcast %cst_40 : f32 to vector<8x8xf32>
    %87 = arith.select %6, %85, %86 : vector<8x8xi1>, vector<8x8xf32>
    %cst_41 = arith.constant 0.176776692 : f32
    %88 = vector.broadcast %cst_41 : f32 to vector<8x8xf32>
    %89 = arith.mulf %87, %88 : vector<8x8xf32>
    %cst_42 = arith.constant dense<0xFF800000> : vector<8xf32>
    %90 = vector.multi_reduction <maximumf>, %89, %cst_42 [1] : vector<8x8xf32> to vector<8xf32>
    %91 = vector.shape_cast %90 : vector<8xf32> to vector<8x1xf32>
    %92 = vector.broadcast %91 : vector<8x1xf32> to vector<8x8xf32>
    %93 = arith.subf %89, %92 : vector<8x8xf32>
    %94 = math.exp %93 : vector<8x8xf32>
    %cst_43 = arith.constant dense<0.000000e+00> : vector<8xf32>
    %95 = vector.multi_reduction <add>, %94, %cst_43 [1] : vector<8x8xf32> to vector<8xf32>
    %96 = vector.shape_cast %95 : vector<8xf32> to vector<8x1xf32>
    %97 = tpu.reciprocal %96 {approx = true} : vector<8x1xf32> -> vector<8x1xf32>
    %98 = vector.broadcast %97 : vector<8x1xf32> to vector<8x8xf32>
    %99 = arith.mulf %94, %98 : vector<8x8xf32>
    %cst_44 = arith.constant dense<0.000000e+00> : vector<8x8xf32>
    %100 = tpu.matmul %99, %83, %cst_44 {dimension_numbers = #tpu.dot_dimension_numbers<[1], [0], [0], [1], [0, 0, 1, 1], [], []>} : vector<8x8xf32>, vector<8x8xf32>, vector<8x8xf32> -> vector<8x8xf32>
    %101 = tpu.concatenate %40, %60, %80, %100 in 1 : vector<8x8xf32>, vector<8x8xf32>, vector<8x8xf32>, vector<8x8xf32> -> vector<8x32xf32>
    %cst_45 = arith.constant dense<0.000000e+00> : vector<8x32xf32>
    %102 = tpu.matmul %101, %16, %cst_45 {dimension_numbers = #tpu.dot_dimension_numbers<[1], [0], [0], [1], [0, 0, 1, 1], [], []>} : vector<8x32xf32>, vector<32x32xf32>, vector<8x32xf32> -> vector<8x32xf32>
    %103 = vector.broadcast %17 : vector<1x32xf32> to vector<8x32xf32>
    %104 = arith.addf %102, %103 : vector<8x32xf32>
    %105 = arith.addf %104, %1 : vector<8x32xf32>
    %c0_46 = arith.constant 0 : index
    %c0_47 = arith.constant 0 : index
    %106 = vector.load %arg9[%c0_46, %c0_47] : memref<1x32xf32, #tpu.memory_space<vmem>>, vector<1x32xf32>
    %c0_48 = arith.constant 0 : index
    %c0_49 = arith.constant 0 : index
    %107 = vector.load %arg10[%c0_48, %c0_49] : memref<1x32xf32, #tpu.memory_space<vmem>>, vector<1x32xf32>
    %cst_50 = arith.constant dense<0.000000e+00> : vector<8xf32>
    %108 = vector.multi_reduction <add>, %105, %cst_50 [1] : vector<8x32xf32> to vector<8xf32>
    %109 = vector.shape_cast %108 : vector<8xf32> to vector<8x1xf32>
    %cst_51 = arith.constant 3.200000e+01 : f32
    %110 = vector.broadcast %cst_51 : f32 to vector<8x1xf32>
    %111 = arith.divf %109, %110 : vector<8x1xf32>
    %112 = vector.broadcast %111 : vector<8x1xf32> to vector<8x32xf32>
    %113 = arith.subf %105, %112 : vector<8x32xf32>
    %114 = arith.mulf %113, %113 : vector<8x32xf32>
    %cst_52 = arith.constant dense<0.000000e+00> : vector<8xf32>
    %115 = vector.multi_reduction <add>, %114, %cst_52 [1] : vector<8x32xf32> to vector<8xf32>
    %116 = vector.shape_cast %115 : vector<8xf32> to vector<8x1xf32>
    %cst_53 = arith.constant 3.200000e+01 : f32
    %117 = vector.broadcast %cst_53 : f32 to vector<8x1xf32>
    %118 = arith.divf %116, %117 : vector<8x1xf32>
    %119 = vector.broadcast %111 : vector<8x1xf32> to vector<8x32xf32>
    %120 = arith.subf %105, %119 : vector<8x32xf32>
    %cst_54 = arith.constant 9.99999974E-6 : f32
    %121 = vector.broadcast %cst_54 : f32 to vector<8x1xf32>
    %122 = arith.addf %118, %121 : vector<8x1xf32>
    %123 = math.rsqrt %122 : vector<8x1xf32>
    %124 = vector.broadcast %123 : vector<8x1xf32> to vector<8x32xf32>
    %125 = arith.mulf %120, %124 : vector<8x32xf32>
    %126 = vector.broadcast %106 : vector<1x32xf32> to vector<8x32xf32>
    %127 = arith.mulf %125, %126 : vector<8x32xf32>
    %128 = vector.broadcast %107 : vector<1x32xf32> to vector<8x32xf32>
    %129 = arith.addf %127, %128 : vector<8x32xf32>
    %c0_55 = arith.constant 0 : index
    %c0_56 = arith.constant 0 : index
    %130 = vector.load %arg11[%c0_55, %c0_56] : memref<32x32xf32, #tpu.memory_space<vmem>>, vector<32x32xf32>
    %c0_57 = arith.constant 0 : index
    %c0_58 = arith.constant 0 : index
    %131 = vector.load %arg12[%c0_57, %c0_58] : memref<32x32xf32, #tpu.memory_space<vmem>>, vector<32x32xf32>
    %c0_59 = arith.constant 0 : index
    %c0_60 = arith.constant 0 : index
    %132 = vector.load %arg13[%c0_59, %c0_60] : memref<32x32xf32, #tpu.memory_space<vmem>>, vector<32x32xf32>
    %c0_61 = arith.constant 0 : index
    %c0_62 = arith.constant 0 : index
    %133 = vector.load %arg14[%c0_61, %c0_62] : memref<32x32xf32, #tpu.memory_space<vmem>>, vector<32x32xf32>
    %c0_63 = arith.constant 0 : index
    %c0_64 = arith.constant 0 : index
    %134 = vector.load %arg15[%c0_63, %c0_64] : memref<1x32xf32, #tpu.memory_space<vmem>>, vector<1x32xf32>
    %cst_65 = arith.constant dense<0.000000e+00> : vector<8x32xf32>
    %135 = tpu.matmul %129, %130, %cst_65 {dimension_numbers = #tpu.dot_dimension_numbers<[1], [0], [0], [1], [0, 0, 1, 1], [], []>} : vector<8x32xf32>, vector<32x32xf32>, vector<8x32xf32> -> vector<8x32xf32>
    %cst_66 = arith.constant dense<0.000000e+00> : vector<8x32xf32>
    %136 = tpu.matmul %3, %131, %cst_66 {dimension_numbers = #tpu.dot_dimension_numbers<[1], [0], [0], [1], [0, 0, 1, 1], [], []>} : vector<8x32xf32>, vector<32x32xf32>, vector<8x32xf32> -> vector<8x32xf32>
    %cst_67 = arith.constant dense<0.000000e+00> : vector<8x32xf32>
    %137 = tpu.matmul %3, %132, %cst_67 {dimension_numbers = #tpu.dot_dimension_numbers<[1], [0], [0], [1], [0, 0, 1, 1], [], []>} : vector<8x32xf32>, vector<32x32xf32>, vector<8x32xf32> -> vector<8x32xf32>
    %138 = vector.extract_strided_slice %135 {offsets = [0, 0], sizes = [8, 8], strides = [1, 1]} : vector<8x32xf32> to vector<8x8xf32>
    %139 = vector.extract_strided_slice %136 {offsets = [0, 0], sizes = [8, 8], strides = [1, 1]} : vector<8x32xf32> to vector<8x8xf32>
    %140 = vector.extract_strided_slice %137 {offsets = [0, 0], sizes = [8, 8], strides = [1, 1]} : vector<8x32xf32> to vector<8x8xf32>
    %141 = tpu.transpose %139, [1, 0] : vector<8x8xf32> -> vector<8x8xf32>
    %cst_68 = arith.constant dense<0.000000e+00> : vector<8x8xf32>
    %142 = tpu.matmul %138, %141, %cst_68 {dimension_numbers = #tpu.dot_dimension_numbers<[1], [0], [0], [1], [0, 0, 1, 1], [], []>} : vector<8x8xf32>, vector<8x8xf32>, vector<8x8xf32> -> vector<8x8xf32>
    %cst_69 = arith.constant -1.000000e+20 : f32
    %143 = vector.broadcast %cst_69 : f32 to vector<8x8xf32>
    %144 = arith.select %12, %142, %143 : vector<8x8xi1>, vector<8x8xf32>
    %cst_70 = arith.constant 0.176776692 : f32
    %145 = vector.broadcast %cst_70 : f32 to vector<8x8xf32>
    %146 = arith.mulf %144, %145 : vector<8x8xf32>
    %cst_71 = arith.constant dense<0xFF800000> : vector<8xf32>
    %147 = vector.multi_reduction <maximumf>, %146, %cst_71 [1] : vector<8x8xf32> to vector<8xf32>
    %148 = vector.shape_cast %147 : vector<8xf32> to vector<8x1xf32>
    %149 = vector.broadcast %148 : vector<8x1xf32> to vector<8x8xf32>
    %150 = arith.subf %146, %149 : vector<8x8xf32>
    %151 = math.exp %150 : vector<8x8xf32>
    %cst_72 = arith.constant dense<0.000000e+00> : vector<8xf32>
    %152 = vector.multi_reduction <add>, %151, %cst_72 [1] : vector<8x8xf32> to vector<8xf32>
    %153 = vector.shape_cast %152 : vector<8xf32> to vector<8x1xf32>
    %154 = tpu.reciprocal %153 {approx = true} : vector<8x1xf32> -> vector<8x1xf32>
    %155 = vector.broadcast %154 : vector<8x1xf32> to vector<8x8xf32>
    %156 = arith.mulf %151, %155 : vector<8x8xf32>
    %cst_73 = arith.constant dense<0.000000e+00> : vector<8x8xf32>
    %157 = tpu.matmul %156, %140, %cst_73 {dimension_numbers = #tpu.dot_dimension_numbers<[1], [0], [0], [1], [0, 0, 1, 1], [], []>} : vector<8x8xf32>, vector<8x8xf32>, vector<8x8xf32> -> vector<8x8xf32>
    %158 = vector.extract_strided_slice %135 {offsets = [0, 8], sizes = [8, 8], strides = [1, 1]} : vector<8x32xf32> to vector<8x8xf32>
    %159 = vector.extract_strided_slice %136 {offsets = [0, 8], sizes = [8, 8], strides = [1, 1]} : vector<8x32xf32> to vector<8x8xf32>
    %160 = vector.extract_strided_slice %137 {offsets = [0, 8], sizes = [8, 8], strides = [1, 1]} : vector<8x32xf32> to vector<8x8xf32>
    %161 = tpu.transpose %159, [1, 0] : vector<8x8xf32> -> vector<8x8xf32>
    %cst_74 = arith.constant dense<0.000000e+00> : vector<8x8xf32>
    %162 = tpu.matmul %158, %161, %cst_74 {dimension_numbers = #tpu.dot_dimension_numbers<[1], [0], [0], [1], [0, 0, 1, 1], [], []>} : vector<8x8xf32>, vector<8x8xf32>, vector<8x8xf32> -> vector<8x8xf32>
    %cst_75 = arith.constant -1.000000e+20 : f32
    %163 = vector.broadcast %cst_75 : f32 to vector<8x8xf32>
    %164 = arith.select %12, %162, %163 : vector<8x8xi1>, vector<8x8xf32>
    %cst_76 = arith.constant 0.176776692 : f32
    %165 = vector.broadcast %cst_76 : f32 to vector<8x8xf32>
    %166 = arith.mulf %164, %165 : vector<8x8xf32>
    %cst_77 = arith.constant dense<0xFF800000> : vector<8xf32>
    %167 = vector.multi_reduction <maximumf>, %166, %cst_77 [1] : vector<8x8xf32> to vector<8xf32>
    %168 = vector.shape_cast %167 : vector<8xf32> to vector<8x1xf32>
    %169 = vector.broadcast %168 : vector<8x1xf32> to vector<8x8xf32>
    %170 = arith.subf %166, %169 : vector<8x8xf32>
    %171 = math.exp %170 : vector<8x8xf32>
    %cst_78 = arith.constant dense<0.000000e+00> : vector<8xf32>
    %172 = vector.multi_reduction <add>, %171, %cst_78 [1] : vector<8x8xf32> to vector<8xf32>
    %173 = vector.shape_cast %172 : vector<8xf32> to vector<8x1xf32>
    %174 = tpu.reciprocal %173 {approx = true} : vector<8x1xf32> -> vector<8x1xf32>
    %175 = vector.broadcast %174 : vector<8x1xf32> to vector<8x8xf32>
    %176 = arith.mulf %171, %175 : vector<8x8xf32>
    %cst_79 = arith.constant dense<0.000000e+00> : vector<8x8xf32>
    %177 = tpu.matmul %176, %160, %cst_79 {dimension_numbers = #tpu.dot_dimension_numbers<[1], [0], [0], [1], [0, 0, 1, 1], [], []>} : vector<8x8xf32>, vector<8x8xf32>, vector<8x8xf32> -> vector<8x8xf32>
    %178 = vector.extract_strided_slice %135 {offsets = [0, 16], sizes = [8, 8], strides = [1, 1]} : vector<8x32xf32> to vector<8x8xf32>
    %179 = vector.extract_strided_slice %136 {offsets = [0, 16], sizes = [8, 8], strides = [1, 1]} : vector<8x32xf32> to vector<8x8xf32>
    %180 = vector.extract_strided_slice %137 {offsets = [0, 16], sizes = [8, 8], strides = [1, 1]} : vector<8x32xf32> to vector<8x8xf32>
    %181 = tpu.transpose %179, [1, 0] : vector<8x8xf32> -> vector<8x8xf32>
    %cst_80 = arith.constant dense<0.000000e+00> : vector<8x8xf32>
    %182 = tpu.matmul %178, %181, %cst_80 {dimension_numbers = #tpu.dot_dimension_numbers<[1], [0], [0], [1], [0, 0, 1, 1], [], []>} : vector<8x8xf32>, vector<8x8xf32>, vector<8x8xf32> -> vector<8x8xf32>
    %cst_81 = arith.constant -1.000000e+20 : f32
    %183 = vector.broadcast %cst_81 : f32 to vector<8x8xf32>
    %184 = arith.select %12, %182, %183 : vector<8x8xi1>, vector<8x8xf32>
    %cst_82 = arith.constant 0.176776692 : f32
    %185 = vector.broadcast %cst_82 : f32 to vector<8x8xf32>
    %186 = arith.mulf %184, %185 : vector<8x8xf32>
    %cst_83 = arith.constant dense<0xFF800000> : vector<8xf32>
    %187 = vector.multi_reduction <maximumf>, %186, %cst_83 [1] : vector<8x8xf32> to vector<8xf32>
    %188 = vector.shape_cast %187 : vector<8xf32> to vector<8x1xf32>
    %189 = vector.broadcast %188 : vector<8x1xf32> to vector<8x8xf32>
    %190 = arith.subf %186, %189 : vector<8x8xf32>
    %191 = math.exp %190 : vector<8x8xf32>
    %cst_84 = arith.constant dense<0.000000e+00> : vector<8xf32>
    %192 = vector.multi_reduction <add>, %191, %cst_84 [1] : vector<8x8xf32> to vector<8xf32>
    %193 = vector.shape_cast %192 : vector<8xf32> to vector<8x1xf32>
    %194 = tpu.reciprocal %193 {approx = true} : vector<8x1xf32> -> vector<8x1xf32>
    %195 = vector.broadcast %194 : vector<8x1xf32> to vector<8x8xf32>
    %196 = arith.mulf %191, %195 : vector<8x8xf32>
    %cst_85 = arith.constant dense<0.000000e+00> : vector<8x8xf32>
    %197 = tpu.matmul %196, %180, %cst_85 {dimension_numbers = #tpu.dot_dimension_numbers<[1], [0], [0], [1], [0, 0, 1, 1], [], []>} : vector<8x8xf32>, vector<8x8xf32>, vector<8x8xf32> -> vector<8x8xf32>
    %198 = vector.extract_strided_slice %135 {offsets = [0, 24], sizes = [8, 8], strides = [1, 1]} : vector<8x32xf32> to vector<8x8xf32>
    %199 = vector.extract_strided_slice %136 {offsets = [0, 24], sizes = [8, 8], strides = [1, 1]} : vector<8x32xf32> to vector<8x8xf32>
    %200 = vector.extract_strided_slice %137 {offsets = [0, 24], sizes = [8, 8], strides = [1, 1]} : vector<8x32xf32> to vector<8x8xf32>
    %201 = tpu.transpose %199, [1, 0] : vector<8x8xf32> -> vector<8x8xf32>
    %cst_86 = arith.constant dense<0.000000e+00> : vector<8x8xf32>
    %202 = tpu.matmul %198, %201, %cst_86 {dimension_numbers = #tpu.dot_dimension_numbers<[1], [0], [0], [1], [0, 0, 1, 1], [], []>} : vector<8x8xf32>, vector<8x8xf32>, vector<8x8xf32> -> vector<8x8xf32>
    %cst_87 = arith.constant -1.000000e+20 : f32
    %203 = vector.broadcast %cst_87 : f32 to vector<8x8xf32>
    %204 = arith.select %12, %202, %203 : vector<8x8xi1>, vector<8x8xf32>
    %cst_88 = arith.constant 0.176776692 : f32
    %205 = vector.broadcast %cst_88 : f32 to vector<8x8xf32>
    %206 = arith.mulf %204, %205 : vector<8x8xf32>
    %cst_89 = arith.constant dense<0xFF800000> : vector<8xf32>
    %207 = vector.multi_reduction <maximumf>, %206, %cst_89 [1] : vector<8x8xf32> to vector<8xf32>
    %208 = vector.shape_cast %207 : vector<8xf32> to vector<8x1xf32>
    %209 = vector.broadcast %208 : vector<8x1xf32> to vector<8x8xf32>
    %210 = arith.subf %206, %209 : vector<8x8xf32>
    %211 = math.exp %210 : vector<8x8xf32>
    %cst_90 = arith.constant dense<0.000000e+00> : vector<8xf32>
    %212 = vector.multi_reduction <add>, %211, %cst_90 [1] : vector<8x8xf32> to vector<8xf32>
    %213 = vector.shape_cast %212 : vector<8xf32> to vector<8x1xf32>
    %214 = tpu.reciprocal %213 {approx = true} : vector<8x1xf32> -> vector<8x1xf32>
    %215 = vector.broadcast %214 : vector<8x1xf32> to vector<8x8xf32>
    %216 = arith.mulf %211, %215 : vector<8x8xf32>
    %cst_91 = arith.constant dense<0.000000e+00> : vector<8x8xf32>
    %217 = tpu.matmul %216, %200, %cst_91 {dimension_numbers = #tpu.dot_dimension_numbers<[1], [0], [0], [1], [0, 0, 1, 1], [], []>} : vector<8x8xf32>, vector<8x8xf32>, vector<8x8xf32> -> vector<8x8xf32>
    %218 = tpu.concatenate %157, %177, %197, %217 in 1 : vector<8x8xf32>, vector<8x8xf32>, vector<8x8xf32>, vector<8x8xf32> -> vector<8x32xf32>
    %cst_92 = arith.constant dense<0.000000e+00> : vector<8x32xf32>
    %219 = tpu.matmul %218, %133, %cst_92 {dimension_numbers = #tpu.dot_dimension_numbers<[1], [0], [0], [1], [0, 0, 1, 1], [], []>} : vector<8x32xf32>, vector<32x32xf32>, vector<8x32xf32> -> vector<8x32xf32>
    %220 = vector.broadcast %134 : vector<1x32xf32> to vector<8x32xf32>
    %221 = arith.addf %219, %220 : vector<8x32xf32>
    %222 = arith.addf %221, %129 : vector<8x32xf32>
    %c0_93 = arith.constant 0 : index
    %c0_94 = arith.constant 0 : index
    %223 = vector.load %arg16[%c0_93, %c0_94] : memref<1x32xf32, #tpu.memory_space<vmem>>, vector<1x32xf32>
    %c0_95 = arith.constant 0 : index
    %c0_96 = arith.constant 0 : index
    %224 = vector.load %arg17[%c0_95, %c0_96] : memref<1x32xf32, #tpu.memory_space<vmem>>, vector<1x32xf32>
    %cst_97 = arith.constant dense<0.000000e+00> : vector<8xf32>
    %225 = vector.multi_reduction <add>, %222, %cst_97 [1] : vector<8x32xf32> to vector<8xf32>
    %226 = vector.shape_cast %225 : vector<8xf32> to vector<8x1xf32>
    %cst_98 = arith.constant 3.200000e+01 : f32
    %227 = vector.broadcast %cst_98 : f32 to vector<8x1xf32>
    %228 = arith.divf %226, %227 : vector<8x1xf32>
    %229 = vector.broadcast %228 : vector<8x1xf32> to vector<8x32xf32>
    %230 = arith.subf %222, %229 : vector<8x32xf32>
    %231 = arith.mulf %230, %230 : vector<8x32xf32>
    %cst_99 = arith.constant dense<0.000000e+00> : vector<8xf32>
    %232 = vector.multi_reduction <add>, %231, %cst_99 [1] : vector<8x32xf32> to vector<8xf32>
    %233 = vector.shape_cast %232 : vector<8xf32> to vector<8x1xf32>
    %cst_100 = arith.constant 3.200000e+01 : f32
    %234 = vector.broadcast %cst_100 : f32 to vector<8x1xf32>
    %235 = arith.divf %233, %234 : vector<8x1xf32>
    %236 = vector.broadcast %228 : vector<8x1xf32> to vector<8x32xf32>
    %237 = arith.subf %222, %236 : vector<8x32xf32>
    %cst_101 = arith.constant 9.99999974E-6 : f32
    %238 = vector.broadcast %cst_101 : f32 to vector<8x1xf32>
    %239 = arith.addf %235, %238 : vector<8x1xf32>
    %240 = math.rsqrt %239 : vector<8x1xf32>
    %241 = vector.broadcast %240 : vector<8x1xf32> to vector<8x32xf32>
    %242 = arith.mulf %237, %241 : vector<8x32xf32>
    %243 = vector.broadcast %223 : vector<1x32xf32> to vector<8x32xf32>
    %244 = arith.mulf %242, %243 : vector<8x32xf32>
    %245 = vector.broadcast %224 : vector<1x32xf32> to vector<8x32xf32>
    %246 = arith.addf %244, %245 : vector<8x32xf32>
    %c0_102 = arith.constant 0 : index
    %c0_103 = arith.constant 0 : index
    %247 = vector.load %arg18[%c0_102, %c0_103] : memref<32x128xf32, #tpu.memory_space<vmem>>, vector<32x128xf32>
    %cst_104 = arith.constant dense<0.000000e+00> : vector<8x128xf32>
    %248 = tpu.matmul %246, %247, %cst_104 {dimension_numbers = #tpu.dot_dimension_numbers<[1], [0], [0], [1], [0, 0, 1, 1], [], []>} : vector<8x32xf32>, vector<32x128xf32>, vector<8x128xf32> -> vector<8x128xf32>
    %c0_105 = arith.constant 0 : index
    %c0_106 = arith.constant 0 : index
    %249 = vector.load %arg19[%c0_105, %c0_106] : memref<1x128xf32, #tpu.memory_space<vmem>>, vector<1x128xf32>
    %250 = vector.broadcast %249 : vector<1x128xf32> to vector<8x128xf32>
    %251 = arith.addf %248, %250 : vector<8x128xf32>
    %cst_107 = arith.constant 0.000000e+00 : f32
    %252 = vector.broadcast %cst_107 : f32 to vector<8x128xf32>
    %253 = arith.maximumf %251, %252 : vector<8x128xf32>
    %c0_108 = arith.constant 0 : index
    %c0_109 = arith.constant 0 : index
    %254 = vector.load %arg20[%c0_108, %c0_109] : memref<128x32xf32, #tpu.memory_space<vmem>>, vector<128x32xf32>
    %cst_110 = arith.constant dense<0.000000e+00> : vector<8x32xf32>
    %255 = tpu.matmul %253, %254, %cst_110 {dimension_numbers = #tpu.dot_dimension_numbers<[1], [0], [0], [1], [0, 0, 1, 1], [], []>} : vector<8x128xf32>, vector<128x32xf32>, vector<8x32xf32> -> vector<8x32xf32>
    %c0_111 = arith.constant 0 : index
    %c0_112 = arith.constant 0 : index
    %256 = vector.load %arg21[%c0_111, %c0_112] : memref<1x32xf32, #tpu.memory_space<vmem>>, vector<1x32xf32>
    %257 = vector.broadcast %256 : vector<1x32xf32> to vector<8x32xf32>
    %258 = arith.addf %255, %257 : vector<8x32xf32>
    %259 = arith.addf %258, %246 : vector<8x32xf32>
    %c0_113 = arith.constant 0 : index
    %c0_114 = arith.constant 0 : index
    %260 = vector.load %arg22[%c0_113, %c0_114] : memref<1x32xf32, #tpu.memory_space<vmem>>, vector<1x32xf32>
    %c0_115 = arith.constant 0 : index
    %c0_116 = arith.constant 0 : index
    %261 = vector.load %arg23[%c0_115, %c0_116] : memref<1x32xf32, #tpu.memory_space<vmem>>, vector<1x32xf32>
    %cst_117 = arith.constant dense<0.000000e+00> : vector<8xf32>
    %262 = vector.multi_reduction <add>, %259, %cst_117 [1] : vector<8x32xf32> to vector<8xf32>
    %263 = vector.shape_cast %262 : vector<8xf32> to vector<8x1xf32>
    %cst_118 = arith.constant 3.200000e+01 : f32
    %264 = vector.broadcast %cst_118 : f32 to vector<8x1xf32>
    %265 = arith.divf %263, %264 : vector<8x1xf32>
    %266 = vector.broadcast %265 : vector<8x1xf32> to vector<8x32xf32>
    %267 = arith.subf %259, %266 : vector<8x32xf32>
    %268 = arith.mulf %267, %267 : vector<8x32xf32>
    %cst_119 = arith.constant dense<0.000000e+00> : vector<8xf32>
    %269 = vector.multi_reduction <add>, %268, %cst_119 [1] : vector<8x32xf32> to vector<8xf32>
    %270 = vector.shape_cast %269 : vector<8xf32> to vector<8x1xf32>
    %cst_120 = arith.constant 3.200000e+01 : f32
    %271 = vector.broadcast %cst_120 : f32 to vector<8x1xf32>
    %272 = arith.divf %270, %271 : vector<8x1xf32>
    %273 = vector.broadcast %265 : vector<8x1xf32> to vector<8x32xf32>
    %274 = arith.subf %259, %273 : vector<8x32xf32>
    %cst_121 = arith.constant 9.99999974E-6 : f32
    %275 = vector.broadcast %cst_121 : f32 to vector<8x1xf32>
    %276 = arith.addf %272, %275 : vector<8x1xf32>
    %277 = math.rsqrt %276 : vector<8x1xf32>
    %278 = vector.broadcast %277 : vector<8x1xf32> to vector<8x32xf32>
    %279 = arith.mulf %274, %278 : vector<8x32xf32>
    %280 = vector.broadcast %260 : vector<1x32xf32> to vector<8x32xf32>
    %281 = arith.mulf %279, %280 : vector<8x32xf32>
    %282 = vector.broadcast %261 : vector<1x32xf32> to vector<8x32xf32>
    %283 = arith.addf %281, %282 : vector<8x32xf32>
    %c0_122 = arith.constant 0 : index
    %c0_123 = arith.constant 0 : index
    %c0_124 = arith.constant 0 : index
    %284 = vector.load %arg24[%c0_122, %c0_123, %c0_124] : memref<1x8x32xf32, #tpu.memory_space<vmem>>, vector<1x8x32xf32>
    %285 = vector.shape_cast %284 : vector<1x8x32xf32> to vector<8x32xf32>
    %286 = vector.shape_cast %283 : vector<8x32xf32> to vector<1x8x32xf32>
    tpu.vector_store %arg24[%c0_122, %c0_123, %c0_124], %286 {strides = array<i32>} : memref<1x8x32xf32, #tpu.memory_space<vmem>>, vector<1x8x32xf32>,
    return
  }
  func.func @transform_0(%arg0: i32) -> (i32, i32, i32) {
    %c0_i32 = arith.constant 0 : i32
    %c0_i32_0 = arith.constant 0 : i32
    %c0_i32_1 = arith.constant 0 : i32
    return %arg0, %c0_i32, %c0_i32_0 : i32, i32, i32
  }
  func.func @transform_1(%arg0: i32) -> (i32, i32, i32) {
    %c0_i32 = arith.constant 0 : i32
    %c0_i32_0 = arith.constant 0 : i32
    %c0_i32_1 = arith.constant 0 : i32
    return %arg0, %c0_i32, %c0_i32_0 : i32, i32, i32
  }
  func.func @transform_2(%arg0: i32) -> (i32, i32, i32) {
    %c0_i32 = arith.constant 0 : i32
    %c0_i32_0 = arith.constant 0 : i32
    %c0_i32_1 = arith.constant 0 : i32
    return %arg0, %c0_i32, %c0_i32_0 : i32, i32, i32
  }
  func.func @transform_3(%arg0: i32) -> (i32, i32) {
    %c0_i32 = arith.constant 0 : i32
    %c0_i32_0 = arith.constant 0 : i32
    %c0_i32_1 = arith.constant 0 : i32
    return %c0_i32, %c0_i32_0 : i32, i32
  }
  func.func @transform_4(%arg0: i32) -> (i32, i32) {
    %c0_i32 = arith.constant 0 : i32
    %c0_i32_0 = arith.constant 0 : i32
    %c0_i32_1 = arith.constant 0 : i32
    return %c0_i32, %c0_i32_0 : i32, i32
  }
  func.func @transform_5(%arg0: i32) -> (i32, i32) {
    %c0_i32 = arith.constant 0 : i32
    %c0_i32_0 = arith.constant 0 : i32
    %c0_i32_1 = arith.constant 0 : i32
    return %c0_i32, %c0_i32_0 : i32, i32
  }
  func.func @transform_6(%arg0: i32) -> (i32, i32) {
    %c0_i32 = arith.constant 0 : i32
    %c0_i32_0 = arith.constant 0 : i32
    %c0_i32_1 = arith.constant 0 : i32
    return %c0_i32, %c0_i32_0 : i32, i32
  }
  func.func @transform_7(%arg0: i32) -> (i32, i32) {
    %c0_i32 = arith.constant 0 : i32
    %c0_i32_0 = arith.constant 0 : i32
    %c0_i32_1 = arith.constant 0 : i32
    return %c0_i32, %c0_i32_0 : i32, i32
  }
  func.func @transform_8(%arg0: i32) -> (i32, i32) {
    %c0_i32 = arith.constant 0 : i32
    %c0_i32_0 = arith.constant 0 : i32
    %c0_i32_1 = arith.constant 0 : i32
    return %c0_i32, %c0_i32_0 : i32, i32
  }
  func.func @transform_9(%arg0: i32) -> (i32, i32) {
    %c0_i32 = arith.constant 0 : i32
    %c0_i32_0 = arith.constant 0 : i32
    %c0_i32_1 = arith.constant 0 : i32
    return %c0_i32, %c0_i32_0 : i32, i32
  }
  func.func @transform_10(%arg0: i32) -> (i32, i32) {
    %c0_i32 = arith.constant 0 : i32
    %c0_i32_0 = arith.constant 0 : i32
    %c0_i32_1 = arith.constant 0 : i32
    return %c0_i32, %c0_i32_0 : i32, i32
  }
  func.func @transform_11(%arg0: i32) -> (i32, i32) {
    %c0_i32 = arith.constant 0 : i32
    %c0_i32_0 = arith.constant 0 : i32
    %c0_i32_1 = arith.constant 0 : i32
    return %c0_i32, %c0_i32_0 : i32, i32
  }
  func.func @transform_12(%arg0: i32) -> (i32, i32) {
    %c0_i32 = arith.constant 0 : i32
    %c0_i32_0 = arith.constant 0 : i32
    %c0_i32_1 = arith.constant 0 : i32
    return %c0_i32, %c0_i32_0 : i32, i32
  }
  func.func @transform_13(%arg0: i32) -> (i32, i32) {
    %c0_i32 = arith.constant 0 : i32
    %c0_i32_0 = arith.constant 0 : i32
    %c0_i32_1 = arith.constant 0 : i32
    return %c0_i32, %c0_i32_0 : i32, i32
  }
  func.func @transform_14(%arg0: i32) -> (i32, i32) {
    %c0_i32 = arith.constant 0 : i32
    %c0_i32_0 = arith.constant 0 : i32
    %c0_i32_1 = arith.constant 0 : i32
    return %c0_i32, %c0_i32_0 : i32, i32
  }
  func.func @transform_15(%arg0: i32) -> (i32, i32) {
    %c0_i32 = arith.constant 0 : i32
    %c0_i32_0 = arith.constant 0 : i32
    %c0_i32_1 = arith.constant 0 : i32
    return %c0_i32, %c0_i32_0 : i32, i32
  }
  func.func @transform_16(%arg0: i32) -> (i32, i32) {
    %c0_i32 = arith.constant 0 : i32
    %c0_i32_0 = arith.constant 0 : i32
    %c0_i32_1 = arith.constant 0 : i32
    return %c0_i32, %c0_i32_0 : i32, i32
  }
  func.func @transform_17(%arg0: i32) -> (i32, i32) {
    %c0_i32 = arith.constant 0 : i32
    %c0_i32_0 = arith.constant 0 : i32
    %c0_i32_1 = arith.constant 0 : i32
    return %c0_i32, %c0_i32_0 : i32, i32
  }
  func.func @transform_18(%arg0: i32) -> (i32, i32) {
    %c0_i32 = arith.constant 0 : i32
    %c0_i32_0 = arith.constant 0 : i32
    %c0_i32_1 = arith.constant 0 : i32
    return %c0_i32, %c0_i32_0 : i32, i32
  }
  func.func @transform_19(%arg0: i32) -> (i32, i32) {
    %c0_i32 = arith.constant 0 : i32
    %c0_i32_0 = arith.constant 0 : i32
    %c0_i32_1 = arith.constant 0 : i32
    return %c0_i32, %c0_i32_0 : i32, i32
  }
  func.func @transform_20(%arg0: i32) -> (i32, i32) {
    %c0_i32 = arith.constant 0 : i32
    %c0_i32_0 = arith.constant 0 : i32
    %c0_i32_1 = arith.constant 0 : i32
    return %c0_i32, %c0_i32_0 : i32, i32
  }
  func.func @transform_21(%arg0: i32) -> (i32, i32) {
    %c0_i32 = arith.constant 0 : i32
    %c0_i32_0 = arith.constant 0 : i32
    %c0_i32_1 = arith.constant 0 : i32
    return %c0_i32, %c0_i32_0 : i32, i32
  }
  func.func @transform_22(%arg0: i32) -> (i32, i32) {
    %c0_i32 = arith.constant 0 : i32
    %c0_i32_0 = arith.constant 0 : i32
    %c0_i32_1 = arith.constant 0 : i32
    return %c0_i32, %c0_i32_0 : i32, i32
  }
  func.func @transform_23(%arg0: i32) -> (i32, i32, i32) {
    %c0_i32 = arith.constant 0 : i32
    %c0_i32_0 = arith.constant 0 : i32
    %c0_i32_1 = arith.constant 0 : i32
    return %arg0, %c0_i32, %c0_i32_0 : i32, i32, i32
  }
}

</mosaic_0001>

<bundles_post_ra>
// kernel: decoder_forward.5
= control target key start
LH: loop header
LB: loop body
LE: loop exit
PB: predicated region body
PF: predicated region fallthrough
CT: control target
= control target key end

     0   :  { %8 = vsyncpa [#allocation3], 0  ;;  %s113_s15 = smov [#allocation2]   ;;  %s114_s17 = smov 128   ;;  %s154_s0 = inlined_call_operand.vmem [shape: f32[16,32], index: 0, kind: input, shape index: {}]   ;;  %s155_s1 = inlined_call_operand.hbm [shape: f32[32,128], index: 1, kind: input, shape index: {}]   ;;  %s156_s2 = inlined_call_operand.vmem [shape: f32[1,128], index: 2, kind: input, shape index: {}]   ;;  %s157_s3 = inlined_call_operand.vmem [shape: f32[16,128], index: 3, kind: output, shape index: {}]  }
   0x1   :  { %s15_s14 = sshll.u32 %s155_s1, 4  ;;  %s17_s16 = sshll.u32 %s113_s15, 4  ;;  %s16_s14 = int_to_ptr.hbm [resolvable:$true] %s15_s14  ;;  %s18_s16 = int_to_ptr.vmem [resolvable:$true] %s17_s16 }
   0x2   :  { %s115_s18 = smov 8  }
   0x3   :  { %23 = dma.hbm_to_vmem [thread:$0]  %s16_s14, 512, %s18_s16, [#allocation3], %s114_s17, %s114_s17, %s115_s18  }
   0x4   :  { %111 = dma.done.wait [#allocation3], 512  }
   0x5   :  { %112 = vsyncadd [#allocation3], 4294966784  ;;  %v35_v0 = vld [vmem:[#allocation2 + $0x18] sm:$0xff]  ;;  %v34_v1 = vld [vmem:[#allocation2 + $0x10] sm:$0xff]  ;;  %vm40_vm0 = vcmask 261120  }
   0x6   :  { %59 = vmatpush.msra.mxu0 %v35_v0  ;;  %79 = vmatpush.msra.mxu1 %v35_v0  ;;  %v33_v2 = vld [vmem:[#allocation2 + $0x8] sm:$0xff]  ;;  %v32_v3 = vld [vmem:[#allocation2] sm:$0xff] }
   0x7   :  { %v30_v4 = vld [vmem:[%s154_s0] sm:$0xff]  ;;  %v31_v5 = vld [vmem:[%s154_s0 + $0x8] sm:$0xff] }
   0x8   :  { %60 = vmatpush.msra.mxu0 %v34_v1  ;;  %80 = vmatpush.msra.mxu1 %v34_v1  ;;  %v86_v6 = vld [vmem:[%s156_s2] ss:$0 sm:$0xff] }
   0xa   :  { %61 = vmatpush.msra.mxu0 %v33_v2  ;;  %81 = vmatpush.msra.mxu1 %v33_v2 }
   0xc   :  { %62 = vmatpush.msra.mxu0 %v32_v3  ;;  %82 = vmatpush.msra.mxu1 %v32_v3 }
   0xd   :  { %77 = vmatmul.msk.f32.vlgmr.msra.gmra.mxu0 %vm40_vm0, %v30_v4  ;;  %78 = vmatmul.msk.f32.vlgmr.msra.gmra.mxu1 %vm40_vm0, %v31_v5 }
  0x8a   :  { %v64_v7 = vpop.f32.mrf.mxu0  ;;  %v67_v8 = vpop.f32.mrf.mxu1 }
  0x8b   :  { %v65_v9 = vadd.f32 %v86_v6, %v64_v7  ;;  %v68_v10 = vadd.f32 %v86_v6, %v67_v8 }
  0x8d   :  { %70 = vst [vmem:[%s157_s3] sm:$0xff] %v65_v9 }
  0x8e   :  { %71 = vst [vmem:[%s157_s3 + $0x8] sm:$0xff] %v68_v10 }
  0x8f   :  { %76 = vsyncpa [#allocation3], 1 }

// kernel: decoder_forward.4
= control target key start
LH: loop header
LB: loop body
LE: loop exit
PB: predicated region body
PF: predicated region fallthrough
CT: control target
= control target key end

     0   :  { %s2516_s0 = inlined_call_operand.vmem [shape: f32[2,8,32], index: 0, kind: input, shape index: {}]   ;;  %s2517_s1 = inlined_call_operand.vmem [shape: f32[2,8,32], index: 1, kind: input, shape index: {}]   ;;  %s2518_s2 = inlined_call_operand.vmem [shape: f32[2,1,8], index: 2, kind: input, shape index: {}]   ;;  %s2519_s3 = inlined_call_operand.vmem [shape: f32[32,32], index: 3, kind: input, shape index: {}]   ;;  %s2520_s4 = inlined_call_operand.vmem [shape: f32[32,32], index: 4, kind: input, shape index: {}]   ;;  %s2521_s5 = inlined_call_operand.vmem [shape: f32[32,32], index: 5, kind: input, shape index: {}]   ;;  %s2522_s6 = inlined_call_operand.vmem [shape: f32[32,32], index: 6, kind: input, shape index: {}]   ;;  %s2523_s7 = inlined_call_operand.vmem [shape: f32[1,32], index: 7, kind: input, shape index: {}]   ;;  %s2524_s8 = inlined_call_operand.vmem [shape: f32[1,32], index: 8, kind: input, shape index: {}]   ;;  %s2525_s9 = inlined_call_operand.vmem [shape: f32[1,32], index: 9, kind: input, shape index: {}]   ;;  %s2526_s10 = inlined_call_operand.vmem [shape: f32[32,32], index: 10, kind: input, shape index: {}]   ;;  %s2527_s11 = inlined_call_operand.vmem [shape: f32[32,32], index: 11, kind: input, shape index: {}]   ;;  %s2528_s12 = inlined_call_operand.vmem [shape: f32[32,32], index: 12, kind: input, shape index: {}]   ;;  %s2529_s13 = inlined_call_operand.hbm [shape: f32[32,32], index: 13, kind: input, shape index: {}]   ;;  %s2530_s14 = inlined_call_operand.vmem [shape: f32[1,32], index: 14, kind: input, shape index: {}]   ;;  %s2531_s15 = inlined_call_operand.vmem [shape: f32[1,32], index: 15, kind: input, shape index: {}]   ;;  %s2532_s16 = inlined_call_operand.vmem [shape: f32[1,32], index: 16, kind: input, shape index: {}]   ;;  %s2533_s17 = inlined_call_operand.hbm [shape: f32[32,128], index: 17, kind: input, shape index: {}]   ;;  %s2534_s18 = inlined_call_operand.vmem [shape: f32[1,128], index: 18, kind: input, shape index: {}]   ;;  %s2535_s19 = inlined_call_operand.vmem [shape: f32[128,32], index: 19, kind: input, shape index: {}]   ;;  %s2536_s20 = inlined_call_operand.vmem [shape: f32[1,32], index: 20, kind: input, shape index: {}]   ;;  %s2537_s21 = inlined_call_operand.vmem [shape: f32[1,32], index: 21, kind: input, shape index: {}]   ;;  %s2538_s22 = inlined_call_operand.vmem [shape: f32[1,32], index: 22, kind: input, shape index: {}]   ;;  %s2539_s23 = inlined_call_operand.vmem [shape: f32[2,8,32], index: 23, kind: output, shape index: {}]  }
   0x1   :  { %2556 = sst [smem:[#allocation8_spill]] %s2516_s0 }
   0x2   :  { %2557 = sst [smem:[#allocation9_spill]] %s2517_s1 }
   0x3   :  { %2558 = sst [smem:[#allocation10_spill]] %s2518_s2 }
   0x4   :  { %2559 = sst [smem:[#allocation11_spill]] %s2519_s3 }
   0x5   :  { %2560 = sst [smem:[#allocation12_spill]] %s2520_s4 }
   0x6   :  { %2561 = sst [smem:[#allocation13_spill]] %s2521_s5 }
   0x7   :  { %2562 = sst [smem:[#allocation14_spill]] %s2522_s6 }
   0x8   :  { %2563 = sst [smem:[#allocation15_spill]] %s2523_s7 }
   0x9   :  { %2564 = sst [smem:[#allocation16_spill]] %s2529_s13 }
   0xa   :  { %2565 = sst [smem:[#allocation17_spill]] %s2533_s17 }
   0xb   :  { %28 = vsyncpa [#allocation3], 0 }
   0xc   :  { %29 = vsyncpa [#allocation5], 0  ;;  %s2179_s4 = smov 0  }
   0xd LB: > { %s2566_s13 = sld [smem:[#allocation16_spill]]  ;;  %s1835_s5 = sadd.s32 4294967295, %s2045_s4   ;;  %s2045_s4 = sphi %s2179_s4, %s35_s4  }
   0xe   : > { %p1837_p0 = scmp.ge.s32.totalorder %s2045_s4, 1  ;;  %p564_p1 = scmp.lt.s32.totalorder %s2045_s4, 3 }
   0xf   : > { %p1897_p2 = scmp.eq.s32.totalorder %s1835_s5, 0  ;;  %s2047_s26 = smov [#allocation2]  }
  0x10   : > { %p2190_p3 = pnand %p1837_p0, %p564_p1  ;;  %s607_s2 = sshll.u32 %s2047_s26, 4  ;;  %s608_s2 = int_to_ptr.vmem [resolvable:$true] %s607_s2 }
  0x11   : > { %s2568_s17 = sld [smem:[#allocation17_spill]]  ;;  %s2048_s28 = smov [#allocation4]  }
  0x12   : > { %p1890_p4 = pneg %p2190_p3  ;;  %s630_s29 = sshll.u32 %s2048_s28, 4  ;;  %s631_s29 = int_to_ptr.vmem [resolvable:$true] %s630_s29 }
  0x13   : > { %s605_s25 = sshll.u32 %s2566_s13, 4  ;;  %s2049_s3 = smov 128   ;;  %s606_s25 = int_to_ptr.hbm [resolvable:$true] %s605_s25 }
  0x14   : > { %p1891_p5 = pnand %p1897_p2, %p1890_p4  ;;  %s2050_s0 = smov 8  }
  0x15   : > { %681 = sbr.rel (%p2190_p3) target bundleno = 3183 (0xc6f), region = 112 }
  0x16   : > { %1893 = dma.hbm_to_vmem [thread:$0]  (!%p1891_p5), %s606_s25, 512, %s608_s2, [#allocation3], %s2049_s3, %s2049_s3, %s2050_s0  }
  0x17   : > { %s628_s7 = sshll.u32 %s2568_s17, 4  ;;  %s629_s7 = int_to_ptr.hbm [resolvable:$true] %s628_s7 }
  0x18   : > { %1896 = dma.hbm_to_vmem [thread:$0]  (!%p1891_p5), %s629_s7, 512, %s631_s29, [#allocation5], %s2049_s3, %s2049_s3, %s2050_s0  }
  0x1a   : > { %2036 = dma.done.wait (%p1897_p2), [#allocation3], 512  }
  0x1b   : > { %2038 = vsyncadd (%p1897_p2), [#allocation3], 4294966784 }
  0x1c   : > { %2040 = dma.done.wait (%p1897_p2), [#allocation5], 512  }
  0x1d   : > { %2042 = vsyncadd (%p1897_p2), [#allocation5], 4294966784  ;;  %p756_p6 = scmp.lt.s32.totalorder %s1835_s5, 1  ;;  %s2569_s26 = sld [smem:[#allocation11_spill]]  ;;  %vm800_vm0 = vcmask 261120   ;;  %vm864_vm1 = vcmask 64512   ;;  %v773_v20 = vlaneseq }
  0x1e   : > { %s2570_s7 = sld [smem:[#allocation8_spill]]  ;;  %s2544_s29 = smov 104   ;;  %vm1142_vm3 = vcmask 130048   ;;  %vm1144_vm4 = vcmask 195584  }
  0x1f   : > { %s2586_s5 = smov (!%p756_p6, %s1835_s5), 1  ;;  %s2571_s1 = sld [smem:[#allocation12_spill]]  ;;  %v774_v21 = vshrl.u32 %v773_v20, 7  ;;  %v776_v22 = vand.u32 127, %v773_v20 }
  0x20   : > { %s2209_s30 = sshll.u32 %s2586_s5, 3  ;;  %s2548_s3 = smov 112  }
  0x21   : > { %s2546_s0 = smov 120   ;;  %s2572_s2 = sld [smem:[#allocation13_spill]]  ;;  %vm777_vm2 = vcmp.ge.s32.totalorder %v774_v21, %v776_v22 }
  0x22   : > { %s2550_s24 = smov 16   ;;  %s2551_s25 = smov 8  }
  0x23   : > { %v786_v0 = vld [vmem:[%s2569_s26 + $0x18] sm:$0xff]  ;;  %v785_v1 = vld [vmem:[%s2569_s26 + $0x10] sm:$0xff]  ;;  %v784_v2 = vld [vmem:[%s2569_s26 + $0x8] sm:$0xff]  ;;  %s2553_s6 = smov 24  }
  0x24   : > { %s759_s28 = scalar_lea.vmem %s2570_s7, %s2209_s30  ;;  %816 = vmatpush.msra.mxu1 %v786_v0  ;;  %v783_v3 = vld [vmem:[%s2569_s26] sm:$0xff]  ;;  %s2574_s7 = sld [smem:[#allocation14_spill]] }
  0x25   : > { %v2227_v4 = vld [vmem:[%s759_s28] sm:$0xff]  ;;  %v790_v5 = vld [vmem:[%s2571_s1 + $0x18] sm:$0xff]  ;;  %v789_v6 = vld [vmem:[%s2571_s1 + $0x10] sm:$0xff] }
  0x26   : > { %817 = vmatpush.msra.mxu1 %v785_v1  ;;  %v788_v7 = vld [vmem:[%s2571_s1 + $0x8] sm:$0xff]  ;;  %v787_v8 = vld [vmem:[%s2571_s1] sm:$0xff]  ;;  %s2577_s1 = smov 112  }
  0x27   : > { %v794_v11 = vld [vmem:[%s2572_s2 + $0x18] sm:$0xff]  ;;  %v793_v12 = vld [vmem:[%s2572_s2 + $0x10] sm:$0xff]  ;;  %v792_v13 = vld [vmem:[%s2572_s2 + $0x8] sm:$0xff] }
  0x28   : > { %818 = vmatpush.msra.mxu1 %v784_v2  ;;  %856 = vmatpush.msra.mxu2 %v794_v11  ;;  %v791_v14 = vld [vmem:[%s2572_s2] sm:$0xff] }
  0x2a   : > { %819 = vmatpush.msra.mxu1 %v783_v3  ;;  %857 = vmatpush.msra.mxu2 %v793_v12  ;;  %v795_v20 = vld [vmem:[%s2574_s7] sm:$0xff] }
  0x2b   : > { %1847 = vmatmul.msk.f32.vlgmr.msra.gmra.mxu1 %vm800_vm0, %v2227_v4 }
  0x2c   : > { %836 = vmatpush.msrb.mxu1 %v790_v5  ;;  %858 = vmatpush.msra.mxu2 %v792_v13 }
  0x2e   : > { %837 = vmatpush.msrb.mxu1 %v789_v6  ;;  %859 = vmatpush.msra.mxu2 %v791_v14 }
  0x2f   : > { %1849 = vmatmul.msk.f32.vlgmr.msra.gmra.mxu2 %vm800_vm0, %v2227_v4 }
  0x30   : > { %838 = vmatpush.msrb.mxu1 %v788_v7 }
  0x32   : > { %839 = vmatpush.msrb.mxu1 %v787_v8 }
  0x33   : > { %1848 = vmatmul.msk.f32.vlgmr.msrb.gmra.mxu1 %vm800_vm0, %v2227_v4 }
  0xa8   : > { %v821_v9 = vpop.f32.mrf.mxu1 }
  0xb0   : > { %v841_v10 = vpop.f32.mrf.mxu1 }
  0xb1   : > { %1064 = vrot.lane.b32.xlu2 %v841_v10, %s2544_s29  ;;  %997 = vrot.lane.b32.xlu1 %v841_v10, %s2548_s3 }
  0xb2   : > { %929 = vrot.lane.b32.xlu0 %v841_v10, %s2546_s0  ;;  %1850 = vmatpush.xpose.msk.msra.mxu3 %vm864_vm1, %v841_v10  ;;  %v861_v28 = vpop.f32.mrf.mxu2 }
  0xb5   : > { %1851 = vmatmul.msk.f32.vlgmr.msra.gmra.mxu3 %vm864_vm1, %v821_v9 }
  0xb6   : > { %922 = vmatpush.msrb.mxu3 %v861_v28 }
  0xb9   : > { %1062 = vrot.lane.b32.xlu2 %v821_v9, %s2544_s29  ;;  %995 = vrot.lane.b32.xlu1 %v821_v9, %s2548_s3  ;;  %s2573_s29 = smov 104  }
  0xba   : > { %927 = vrot.lane.b32.xlu0 %v821_v9, %s2546_s0 }
 0x10b   : > { %v1065_v15 = vpop.permute.xlu2 %1064 }
 0x10c   : > { %1859 = vmatpush.xpose.msk.msra.mxu0 %vm864_vm1, %v1065_v15 }
 0x113   : > { %v1063_v16 = vpop.permute.xlu2 %1062 }
 0x114   : > { %1860 = vmatmul.msk.f32.vlgmr.msra.gmra.mxu0 %vm864_vm1, %v1063_v16 }
 0x123   : > { %v998_v17 = vpop.permute.xlu1 %997 }
 0x124   : > { %v930_v18 = vpop.permute.xlu0 %929 }
 0x125   : > { %1853 = vmatpush.xpose.msk.msrb.mxu2 %vm864_vm1, %v930_v18  ;;  %v797_v18 = vld [vmem:[%s2574_s7 + $0x10] sm:$0xff] }
 0x129   : > { %1856 = vmatpush.xpose.msk.msra.mxu2 %vm864_vm1, %v998_v17  ;;  %v798_v17 = vld [vmem:[%s2574_s7 + $0x18] sm:$0xff] }
 0x12b   : > { %v996_v23 = vpop.permute.xlu1 %995 }
 0x12c   : > { %v928_v19 = vpop.permute.xlu0 %927 }
 0x12d   : > { %1854 = vmatmul.msk.f32.vlgmr.msrb.gmra.mxu2 %vm864_vm1, %v928_v19  ;;  %v796_v19 = vld [vmem:[%s2574_s7 + $0x8] sm:$0xff]  ;;  %s770_s7 = scalar_lea.vmem %s2539_s23, %s2209_s30 }
 0x12e   : > { %1164 = vmatpush.msrb.mxu2 %v798_v17 }
 0x130   : > { %1165 = vmatpush.msrb.mxu2 %v797_v18 }
 0x132   : > { %1166 = vmatpush.msrb.mxu2 %v796_v19 }
 0x134   : > { %1167 = vmatpush.msrb.mxu2 %v795_v20 }
 0x135   : > { %1857 = vmatmul.msk.f32.vlgmr.msra.gmra.mxu2 %vm864_vm1, %v996_v23 }
 0x138   : > { %v888_v24 = vpop.f32.mrf.mxu3 }
 0x139   : > { %v891_v25 = vsel %vm777_vm2, %v888_v24, -1e+20 }
 0x13a   : > { %v892_v26 = vmul.f32 0.17677669, %v891_v25 }
 0x13c   : > { %v893_v27 = vsel %vm864_vm1, %v892_v26, -inf }
 0x13d   : > { %894 = vmax.xlane.f32.xlu0 %v893_v27 }
 0x191   : > { %v1087_v38 = vpop.f32.mrf.mxu0 }
 0x192   : > { %v1090_v43 = vsel %vm777_vm2, %v1087_v38, -1e+20 }
 0x193   : > { %v1091_v44 = vmul.f32 0.17677669, %v1090_v43  ;;  %v1219_v43 = vld [vmem:[%s2527_s11 + $0x18] sm:$0xff] }
 0x194   : > { %1267 = vmatpush.msrb.mxu0 %v1219_v43 }
 0x195   : > { %v1092_v45 = vsel %vm864_vm1, %v1091_v44, -inf }
 0x1b0   : > { %v952_v29 = vpop.f32.mrf.mxu2  ;;  %v895_v30 = vpop.xlane.xlu0 %894 }
 0x1b1   : > { %v955_v31 = vsel %vm777_vm2, %v952_v29, -1e+20  ;;  %v896_v32 = vsub.f32 %v892_v26, %v895_v30 }
 0x1b2   : > { %v956_v33 = vmul.f32 0.17677669, %v955_v31 }
 0x1b3   : > { %v897_v34 = vmul.f32 1.442695, %v896_v32  ;;  %v2057_v32 = vmov 32.0  }
 0x1b4   : > { %v957_v35 = vsel %vm864_vm1, %v956_v33, -inf }
 0x1b5   : > { %1931 = vpow2.f32 %v897_v34  ;;  %958 = vmax.xlane.f32.xlu1 %v957_v35 }
 0x1b8   : > { %v1020_v36 = vpop.f32.mrf.mxu2 }
 0x1b9   : > { %v1023_v37 = vsel %vm777_vm2, %v1020_v36, -1e+20 }
 0x1ba   : > { %v1024_v39 = vmul.f32 0.17677669, %v1023_v37 }
 0x1bb   : > { %v1932_v40 = vpop.eup %1931 }
 0x1bc   : > { %v1025_v41 = vsel %vm864_vm1, %v1024_v39, -inf  ;;  %v899_v42 = vsel %vm864_vm1, %v1932_v40, 0.0 }
 0x1bd   : > { %1026 = vmax.xlane.f32.xlu2 %v1025_v41  ;;  %900 = vadd.xlane.f32.xlu0 %v899_v42 }
 0x1c5   : > { %1093 = vmax.xlane.f32.xlu2 %v1092_v45  ;;  %v1217_v45 = vld [vmem:[%s2527_s11 + $0x8] sm:$0xff] }
 0x228   : > { %v959_v46 = vpop.xlane.xlu1 %958 }
 0x229   : > { %v960_v47 = vsub.f32 %v956_v33, %v959_v46  ;;  %v1216_v46 = vld [vmem:[%s2527_s11] sm:$0xff] }
 0x22b   : > { %v961_v48 = vmul.f32 1.442695, %v960_v47 }
 0x22d   : > { %1933 = vpow2.f32 %v961_v48  ;;  %v1215_v48 = vld [vmem:[%s2526_s10 + $0x18] sm:$0xff] }
 0x230   : > { %v1027_v49 = vpop.xlane.xlu2 %1026  ;;  %v901_v50 = vpop.xlane.xlu0 %900 }
 0x231   : > { %v1028_v51 = vsub.f32 %v1024_v39, %v1027_v49  ;;  %1935 = vrcp.f32 %v901_v50  ;;  %v1214_v49 = vld [vmem:[%s2526_s10 + $0x10] sm:$0xff]  ;;  %v1213_v50 = vld [vmem:[%s2526_s10 + $0x8] sm:$0xff] }
 0x233   : > { %v1934_v52 = vpop.eup %1933  ;;  %v1029_v53 = vmul.f32 1.442695, %v1028_v51  ;;  %v1212_v51 = vld [vmem:[%s2526_s10] sm:$0xff] }
 0x234   : > { %v963_v54 = vsel %vm864_vm1, %v1934_v52, 0.0 }
 0x235   : > { %1937 = vpow2.f32 %v1029_v53  ;;  %964 = vadd.xlane.f32.xlu1 %v963_v54 }
 0x237   : > { %v1936_v55 = vpop.eup %1935 }
 0x238   : > { %v1094_v56 = vpop.xlane.xlu2 %1093  ;;  %v903_v57 = vmul.f32 %v1936_v55, %v1932_v40 }
 0x239   : > { %v1095_v58 = vsub.f32 %v1091_v44, %v1094_v56  ;;  %v1218_v44 = vld [vmem:[%s2527_s11 + $0x10] sm:$0xff] }
 0x23a   : > { %1852 = vmatmul.msk.f32.vlgmr.msrb.gmra.mxu3 %vm864_vm1, %v903_v57  ;;  %1268 = vmatpush.msrb.mxu0 %v1218_v44 }
 0x23b   : > { %v1938_v59 = vpop.eup %1937  ;;  %v1096_v60 = vmul.f32 1.442695, %v1095_v58 }
 0x23c   : > { %v1031_v61 = vsel %vm864_vm1, %v1938_v59, 0.0  ;;  %1269 = vmatpush.msrb.mxu0 %v1217_v45 }
 0x23d   : > { %1939 = vpow2.f32 %v1096_v60  ;;  %1032 = vadd.xlane.f32.xlu2 %v1031_v61  ;;  %v1922_v61 = vld [vmem:[%s2524_s8] ss:$0 sm:$0xff] }
 0x23e   : > { %1270 = vmatpush.msrb.mxu0 %v1216_v46 }
 0x243   : > { %v1940_v62 = vpop.eup %1939 }
 0x244   : > { %v1098_v63 = vsel %vm864_vm1, %v1940_v62, 0.0 }
 0x245   : > { %1099 = vadd.xlane.f32.xlu0 %v1098_v63 }
 0x24e   : > { %969 = vrot.lane.b32.xlu1 %v861_v28, %s2546_s0 }
 0x255   : > { %1036 = vrot.lane.b32.xlu2 %v861_v28, %s2548_s3 }
 0x259   : > { %1103 = vrot.lane.b32.xlu0 %v861_v28, %s2573_s29 }
 0x2a8   : > { %v965_v1 = vpop.xlane.xlu1 %964 }
 0x2b0   : > { %v1033_v0 = vpop.xlane.xlu2 %1032 }
 0x2b1   : > { %1941 = vrcp.f32 %v1033_v0  ;;  %v1923_v0 = vld [vmem:[%s2525_s9] ss:$0 sm:$0xff] }
 0x2b2   : > { %1943 = vrcp.f32 %v965_v1 }
 0x2b7   : > { %v1942_v2 = vpop.eup %1941 }
 0x2b8   : > { %v1035_v3 = vmul.f32 %v1942_v2, %v1938_v59  ;;  %v1037_v5 = vpop.permute.xlu2 %1036  ;;  %v1944_v6 = vpop.eup %1943 }
 0x2b9   : > { %1057 = vmatpush.msra.mxu3 %v1037_v5  ;;  %v1100_v7 = vpop.xlane.xlu0 %1099  ;;  %v967_v8 = vmul.f32 %v1944_v6, %v1934_v52 }
 0x2ba   : > { %1858 = vmatmul.msk.f32.vlgmr.msra.gmra.mxu3 %vm864_vm1, %v1035_v3  ;;  %1945 = vrcp.f32 %v1100_v7 }
 0x2bb   : > { %1947 = vrcp.f32 %v2057_v32  ;;  %1244 = vmatpush.msrb.mxu3 %v1215_v48 }
 0x2bd   : > { %v924_v13 = vpop.f32.mrf.mxu3  ;;  %1245 = vmatpush.msrb.mxu3 %v1214_v49 }
 0x2bf   : > { %1246 = vmatpush.msrb.mxu3 %v1213_v50 }
 0x2c0   : > { %v970_v9 = vpop.permute.xlu1 %969  ;;  %v1946_v10 = vpop.eup %1945 }
 0x2c1   : > { %990 = vmatpush.msra.mxu1 %v970_v9  ;;  %v1102_v11 = vmul.f32 %v1946_v10, %v1940_v62  ;;  %v1948_v33 = vpop.eup %1947  ;;  %1247 = vmatpush.msrb.mxu3 %v1212_v51 }
 0x2c2   : > { %1855 = vmatmul.msk.f32.vlgmr.msra.gmra.mxu1 %vm864_vm1, %v967_v8  ;;  %v1179_v34 = vmul.f32 32.0, %v1948_v33  ;;  %vm1183_vm5 = vweird.f32 %v1948_v33 }
 0x2c4   : > { %v1180_v35 = vsub.f32 1.0, %v1179_v34 }
 0x2c6   : > { %v1181_v36 = vmul.f32 %v1948_v33, %v1180_v35 }
 0x2c8   : > { %v1182_v37 = vadd.f32 %v1948_v33, %v1181_v36 }
 0x2ca   : > { %v2316_v38 = vsel %vm1183_vm5, %v1948_v33, %v1182_v37 }
 0x2cb   : > { %v1104_v12 = vpop.permute.xlu0 %1103 }
 0x2cc   : > { %1124 = vmatpush.msrb.mxu1 %v1104_v12 }
 0x2cd   : > { %1861 = vmatmul.msk.f32.vlgmr.msrb.gmra.mxu1 %vm864_vm1, %v1102_v11 }
 0x33d   : > { %v1059_v14 = vpop.f32.mrf.mxu3 }
 0x33e   : > { %1134 = vrot.lane.b32.xlu0 %v1059_v14, %s2550_s24  ;;  %s2575_s24 = sld [smem:[#allocation15_spill]] }
 0x33f   : > { %v992_v15 = vpop.f32.mrf.mxu1 }
 0x340   : > { %1130 = vrot.lane.b32.xlu1 %v992_v15, %s2551_s25  ;;  %s2578_s25 = smov 120  }
 0x344   : > { %v1921_v27 = vld [vmem:[%s2575_s24] ss:$0 sm:$0xff] }
 0x34a   : > { %v1126_v16 = vpop.f32.mrf.mxu1 }
 0x34b   : > { %1138 = vrot.lane.b32.xlu2 %v1126_v16, %s2553_s6  ;;  %s2576_s6 = sld [smem:[#allocation9_spill]]  ;;  %v1226_v16 = vld [vmem:[#allocation2 + $0x10] sm:$0xff] }
 0x351   : > { %s763_s2 = scalar_lea.vmem %s2576_s6, %s2209_s30  ;;  %s2579_s6 = sld [smem:[#allocation10_spill]] }
 0x352   : > { %v2336_v47 = vld [vmem:[%s763_s2] sm:$0xff] }
 0x353   : > { %1864 = vmatmul.msk.f32.vlgmr.msrb.gmra.mxu0 %vm800_vm0, %v2336_v47 }
 0x357   : > { %s766_s28 = scalar_lea.vmem %s2579_s6, %s2586_s5 }
 0x358   : > { %v778_v12 = vld [vmem:[%s766_s28] sm:$0x1] }
 0x359   : > { %vm779_vm9 = vcmp.ne.f32.partialorder %v778_v12, 0.0 }
 0x3a5   : > { %v1139_v24 = vpop.permute.xlu2 %1138 }
 0x3b0   : > { %v1135_v22 = vpop.permute.xlu0 %1134 }
 0x3b2   : > { %v1131_v21 = vpop.permute.xlu1 %1130 }
 0x3b3   : > { %v1141_v23 = vsel %vm864_vm1, %v924_v13, %v1131_v21  ;;  %v2058_v13 = vmov 0   ;;  %v1223_v21 = vld [vmem:[%s2528_s12 + $0x18] sm:$0xff] }
 0x3b4   : > { %v1143_v25 = vsel %vm1142_vm3, %v1141_v23, %v1135_v22  ;;  %v780_v14 = vsel %vm779_vm9, 1, %v2058_v13  ;;  %v1222_v22 = vld [vmem:[%s2528_s12 + $0x10] sm:$0xff]  ;;  %1287 = vmatpush.msra.mxu1 %v1223_v21  ;;  %v1221_v23 = vld [vmem:[%s2528_s12 + $0x8] sm:$0xff] }
 0x3b5   : > { %v1145_v26 = vsel %vm1144_vm4, %v1143_v25, %v1139_v24  ;;  %v781_v15 = vperm.slane %v780_v14, 0 }
 0x3b6   : > { %1862 = vmatmul.msk.f32.vlgmr.msrb.gmra.mxu2 %vm800_vm0, %v1145_v26  ;;  %1288 = vmatpush.msra.mxu1 %v1222_v22  ;;  %v1220_v26 = vld [vmem:[%s2528_s12] sm:$0xff] }
 0x3b7   : > { %vm2381_vm10 = vcmp.eq.s32.totalorder %v781_v15, 1  ;;  %v1227_v15 = vld [vmem:[#allocation2 + $0x18] sm:$0xff] }
 0x3b8   : > { %1289 = vmatpush.msra.mxu1 %v1221_v23 }
 0x3ba   : > { %1290 = vmatpush.msra.mxu1 %v1220_v26 }
 0x3bb   : > { %1865 = vmatmul.msk.f32.vlgmr.msra.gmra.mxu1 %vm800_vm0, %v2336_v47 }
 0x3d0   : > { %v1272_v3 = vpop.f32.mrf.mxu0 }
 0x3d1   : > { %1427 = vrot.lane.b32.xlu2 %v1272_v3, %s2577_s1  ;;  %1866 = vmatpush.xpose.msk.msra.mxu2 %vm864_vm1, %v1272_v3 }
 0x3d9   : > { %1359 = vrot.lane.b32.xlu2 %v1272_v3, %s2578_s25 }
 0x42b   : > { %v1428_v6 = vpop.permute.xlu2 %1427 }
 0x42c   : > { %1872 = vmatpush.xpose.msk.msrb.mxu2 %vm864_vm1, %v1428_v6 }
 0x433   : > { %v1360_v7 = vpop.permute.xlu2 %1359 }
 0x434   : > { %1869 = vmatpush.xpose.msk.msra.mxu0 %vm864_vm1, %v1360_v7 }
 0x438   : > { %v1292_v47 = vpop.f32.mrf.mxu1 }
 0x439   : > { %v1169_v28 = vpop.f32.mrf.mxu2  ;;  %1352 = vmatpush.msra.mxu3 %v1292_v47 }
 0x43a   : > { %v1170_v29 = vadd.f32 %v1921_v27, %v1169_v28 }
 0x43c   : > { %v1172_v30 = vadd.f32 %v1170_v29, %v2227_v4 }
 0x43e   : > { %v1175_v31 = vsel %vm800_vm0, %v1172_v30, 0.0 }
 0x43f   : > { %1176 = vadd.xlane.f32.xlu1 %v1175_v31 }
 0x4b2   : > { %v1177_v39 = vpop.xlane.xlu1 %1176 }
 0x4b3   : > { %v1185_v40 = vmul.f32 %v2316_v38, %v1177_v39 }
 0x4b5   : > { %v1186_v41 = vsub.f32 %v1172_v30, %v1185_v40 }
 0x4b7   : > { %v1187_v42 = vmul.f32 %v1186_v41, %v1186_v41 }
 0x4b9   : > { %v1188_v4 = vsel %vm800_vm0, %v1187_v42, 0.0 }
 0x4ba   : > { %1189 = vadd.xlane.f32.xlu0 %v1188_v4 }
 0x52d   : > { %v1190_v52 = vpop.xlane.xlu0 %1189 }
 0x52e   : > { %v1191_v53 = vmul.f32 %v1190_v52, %v2316_v38 }
 0x530   : > { %v1192_v54 = vadd.f32 1e-05, %v1191_v53 }
 0x532   : > { %1949 = vrsqrt.f32 %v1192_v54  ;;  %vm1199_vm7 = vweird.f32 %v1192_v54 }
 0x538   : > { %v1950_v55 = vpop.eup %1949 }
 0x539   : > { %v1194_v56 = vmul.f32 %v1950_v55, %v1192_v54  ;;  %vm1200_vm6 = vweird.f32 %v1950_v55 }
 0x53a   : > { %vm1201_vm8 = vmor %vm1199_vm7, %vm1200_vm6 }
 0x53b   : > { %v1195_v57 = vmul.f32 %v1950_v55, %v1194_v56 }
 0x53d   : > { %v1196_v58 = vmul.f32 0.5, %v1195_v57 }
 0x53f   : > { %v1197_v59 = vsub.f32 1.5, %v1196_v58 }
 0x541   : > { %v1198_v60 = vmul.f32 %v1950_v55, %v1197_v59 }
 0x543   : > { %v1202_v62 = vsel %vm1201_vm8, %v1950_v55, %v1198_v60 }
 0x544   : > { %v1203_v63 = vmul.f32 %v1202_v62, %v1186_v41 }
 0x546   : > { %v1207_v1 = vmul.f32 %v1922_v61, %v1203_v63 }
 0x548   : > { %v2359_v2 = vadd.f32 %v1923_v0, %v1207_v1 }
 0x54a   : > { %1863 = vmatmul.msk.f32.vlgmr.msrb.gmra.mxu3 %vm800_vm0, %v2359_v2 }
 0x5cd   : > { %v1249_v5 = vpop.f32.mrf.mxu3 }
 0x5ce   : > { %1492 = vrot.lane.b32.xlu1 %v1249_v5, %s2573_s29  ;;  %1425 = vrot.lane.b32.xlu2 %v1249_v5, %s2577_s1 }
 0x5cf   : > { %1867 = vmatmul.msk.f32.vlgmr.msra.gmra.mxu2 %vm864_vm1, %v1249_v5 }
 0x5d0   : > { %1592 = vmatpush.msra.mxu2 %v1227_v15 }
 0x5d2   : > { %1593 = vmatpush.msra.mxu2 %v1226_v16 }
 0x5d6   : > { %1357 = vrot.lane.b32.xlu2 %v1249_v5, %s2578_s25 }
 0x5de   : > { %1494 = vrot.lane.b32.xlu2 %v1272_v3, %s2573_s29 }
 0x628   : > { %v1426_v8 = vpop.permute.xlu2 %1425 }
 0x629   : > { %1873 = vmatmul.msk.f32.vlgmr.msrb.gmra.mxu2 %vm864_vm1, %v1426_v8 }
 0x630   : > { %v1358_v9 = vpop.permute.xlu2 %1357 }
 0x631   : > { %1870 = vmatmul.msk.f32.vlgmr.msra.gmra.mxu0 %vm864_vm1, %v1358_v9 }
 0x638   : > { %v1495_v10 = vpop.permute.xlu2 %1494 }
 0x639   : > { %1875 = vmatpush.xpose.msk.msrb.mxu0 %vm864_vm1, %v1495_v10 }
 0x640   : > { %v1493_v11 = vpop.permute.xlu1 %1492 }
 0x641   : > { %1876 = vmatmul.msk.f32.vlgmr.msrb.gmra.mxu0 %vm864_vm1, %v1493_v11 }
 0x652   : > { %v1318_v17 = vpop.f32.mrf.mxu2 }
 0x653   : > { %v1321_v18 = vsel %vm2381_vm10, %v1318_v17, -1e+20  ;;  %v1225_v17 = vld [vmem:[#allocation2 + $0x8] sm:$0xff] }
 0x654   : > { %v1322_v19 = vmul.f32 0.17677669, %v1321_v18  ;;  %1594 = vmatpush.msra.mxu2 %v1225_v17  ;;  %v1224_v18 = vld [vmem:[#allocation2] sm:$0xff] }
 0x656   : > { %v1323_v20 = vsel %vm864_vm1, %v1322_v19, -inf  ;;  %1595 = vmatpush.msra.mxu2 %v1224_v18 }
 0x657   : > { %1324 = vmax.xlane.f32.xlu0 %v1323_v20 }
 0x6ac   : > { %v1450_v24 = vpop.f32.mrf.mxu2 }
 0x6ad   : > { %v1453_v25 = vsel %vm2381_vm10, %v1450_v24, -1e+20 }
 0x6ae   : > { %v1454_v27 = vmul.f32 0.17677669, %v1453_v25  ;;  %v1382_v28 = vpop.f32.mrf.mxu0  ;;  %v1924_v25 = vld [vmem:[%s2530_s14] ss:$0 sm:$0xff] }
 0x6af   : > { %v1385_v29 = vsel %vm2381_vm10, %v1382_v28, -1e+20 }
 0x6b0   : > { %v1386_v30 = vmul.f32 0.17677669, %v1385_v29  ;;  %v1455_v31 = vsel %vm864_vm1, %v1454_v27, -inf }
 0x6b1   : > { %1456 = vmax.xlane.f32.xlu0 %v1455_v31 }
 0x6b2   : > { %v1387_v32 = vsel %vm864_vm1, %v1386_v30, -inf }
 0x6b3   : > { %1388 = vmax.xlane.f32.xlu2 %v1387_v32 }
 0x6be   : > { %v1517_v33 = vpop.f32.mrf.mxu0 }
 0x6bf   : > { %v1520_v34 = vsel %vm2381_vm10, %v1517_v33, -1e+20 }
 0x6c0   : > { %v1521_v35 = vmul.f32 0.17677669, %v1520_v34 }
 0x6c2   : > { %v1522_v36 = vsel %vm864_vm1, %v1521_v35, -inf }
 0x6c3   : > { %1523 = vmax.xlane.f32.xlu0 %v1522_v36  ;;  %v1635_v36 = vld [vmem:[#allocation4 + $0x10] sm:$0xff] }
 0x6ca   : > { %v1325_v37 = vpop.xlane.xlu0 %1324 }
 0x6cb   : > { %v1326_v39 = vsub.f32 %v1322_v19, %v1325_v37  ;;  %1399 = vrot.lane.b32.xlu2 %v1292_v47, %s2578_s25  ;;  %s2584_s25 = smov 16   ;;  %v1634_v37 = vld [vmem:[#allocation4 + $0x8] sm:$0xff] }
 0x6cd   : > { %v1327_v40 = vmul.f32 1.442695, %v1326_v39  ;;  %v1633_v39 = vld [vmem:[#allocation4] sm:$0xff] }
 0x6cf   : > { %1951 = vpow2.f32 %v1327_v40  ;;  %v1679_v40 = vld [vmem:[%s2535_s19 + $0x70] sm:$0xff] }
 0x6d5   : > { %v1952_v41 = vpop.eup %1951 }
 0x6d6   : > { %v1329_v42 = vsel %vm864_vm1, %v1952_v41, 0.0 }
 0x6d7   : > { %1330 = vadd.xlane.f32.xlu1 %v1329_v42 }
 0x6f0   : > { %1533 = vrot.lane.b32.xlu1 %v1292_v47, %s2573_s29  ;;  %s2582_s29 = smov 8  }
 0x724   : > { %v1457_v4 = vpop.xlane.xlu0 %1456 }
 0x725   : > { %v1458_v45 = vsub.f32 %v1454_v27, %v1457_v4 }
 0x726   : > { %v1389_v43 = vpop.xlane.xlu2 %1388 }
 0x727   : > { %v1390_v44 = vsub.f32 %v1386_v30, %v1389_v43  ;;  %v1459_v48 = vmul.f32 1.442695, %v1458_v45  ;;  %v1677_v43 = vld [vmem:[%s2535_s19 + $0x60] sm:$0xff]  ;;  %v1676_v45 = vld [vmem:[%s2535_s19 + $0x58] sm:$0xff] }
 0x729   : > { %v1391_v46 = vmul.f32 1.442695, %v1390_v44 }
 0x72b   : > { %1953 = vpow2.f32 %v1391_v46  ;;  %v1675_v46 = vld [vmem:[%s2535_s19 + $0x50] sm:$0xff] }
 0x72c   : > { %1955 = vpow2.f32 %v1459_v48  ;;  %v1673_v48 = vld [vmem:[%s2535_s19 + $0x40] sm:$0xff] }
 0x72e   : > { %v1400_v61 = vpop.permute.xlu2 %1399 }
 0x72f   : > { %1420 = vmatpush.msrb.mxu1 %v1400_v61 }
 0x731   : > { %v1954_v49 = vpop.eup %1953 }
 0x732   : > { %v1393_v50 = vsel %vm864_vm1, %v1954_v49, 0.0  ;;  %v1956_v52 = vpop.eup %1955 }
 0x733   : > { %1394 = vadd.xlane.f32.xlu0 %v1393_v50  ;;  %v1461_v55 = vsel %vm864_vm1, %v1956_v52, 0.0  ;;  %v1672_v50 = vld [vmem:[%s2535_s19 + $0x38] sm:$0xff] }
 0x736   : > { %v1524_v51 = vpop.xlane.xlu0 %1523 }
 0x737   : > { %v1525_v53 = vsub.f32 %v1521_v35, %v1524_v51  ;;  %v1636_v35 = vld [vmem:[#allocation4 + $0x18] sm:$0xff] }
 0x739   : > { %v1526_v54 = vmul.f32 1.442695, %v1525_v53 }
 0x73b   : > { %1957 = vpow2.f32 %v1526_v54  ;;  %1462 = vadd.xlane.f32.xlu0 %v1461_v55  ;;  %v1670_v54 = vld [vmem:[%s2535_s19 + $0x28] sm:$0xff] }
 0x741   : > { %v1958_v56 = vpop.eup %1957 }
 0x742   : > { %v1528_v57 = vsel %vm864_vm1, %v1958_v56, 0.0 }
 0x743   : > { %1529 = vadd.xlane.f32.xlu0 %v1528_v57 }
 0x74a   : > { %v1331_v58 = vpop.xlane.xlu1 %1330 }
 0x74b   : > { %1959 = vrcp.f32 %v1331_v58  ;;  %v1668_v58 = vld [vmem:[%s2535_s19 + $0x18] sm:$0xff] }
 0x751   : > { %v1960_v59 = vpop.eup %1959 }
 0x752   : > { %v1333_v60 = vmul.f32 %v1960_v59, %v1952_v41  ;;  %v1678_v41 = vld [vmem:[%s2535_s19 + $0x68] sm:$0xff] }
 0x754   : > { %1868 = vmatmul.msk.f32.vlgmr.msra.gmra.mxu3 %vm864_vm1, %v1333_v60  ;;  %v1925_v60 = vld [vmem:[%s2531_s15] ss:$0 sm:$0xff] }
 0x757   : > { %1466 = vrot.lane.b32.xlu0 %v1292_v47, %s2577_s1  ;;  %s2583_s1 = smov 24   ;;  %v1674_v47 = vld [vmem:[%s2535_s19 + $0x48] sm:$0xff] }
 0x762   : > { %v1534_v62 = vpop.permute.xlu1 %1533 }
 0x763   : > { %1554 = vmatpush.msra.mxu1 %v1534_v62 }
 0x7a6   : > { %v1395_v63 = vpop.xlane.xlu0 %1394 }
 0x7a7   : > { %1961 = vrcp.f32 %v1395_v63  ;;  %v1926_v63 = vld [vmem:[%s2532_s16] ss:$0 sm:$0xff] }
 0x7ad   : > { %v1962_v0 = vpop.eup %1961 }
 0x7ae   : > { %v1397_v1 = vmul.f32 %v1962_v0, %v1954_v49  ;;  %v1463_v3 = vpop.xlane.xlu0 %1462 }
 0x7b0   : > { %1871 = vmatmul.msk.f32.vlgmr.msrb.gmra.mxu1 %vm864_vm1, %v1397_v1 }
 0x7b6   : > { %v1530_v5 = vpop.xlane.xlu0 %1529 }
 0x7b7   : > { %1963 = vrcp.f32 %v1530_v5  ;;  %v1666_v5 = vld [vmem:[%s2535_s19 + $0x8] sm:$0xff] }
 0x7b8   : > { %1965 = vrcp.f32 %v1463_v3  ;;  %v1667_v3 = vld [vmem:[%s2535_s19 + $0x10] sm:$0xff] }
 0x7bd   : > { %v1964_v6 = vpop.eup %1963 }
 0x7be   : > { %v1532_v7 = vmul.f32 %v1964_v6, %v1958_v56  ;;  %v1966_v8 = vpop.eup %1965  ;;  %v1669_v56 = vld [vmem:[%s2535_s19 + $0x20] sm:$0xff] }
 0x7bf   : > { %v1465_v9 = vmul.f32 %v1966_v8, %v1956_v52  ;;  %v1671_v52 = vld [vmem:[%s2535_s19 + $0x30] sm:$0xff]  ;;  %v1665_v6 = vld [vmem:[%s2535_s19] sm:$0xff] }
 0x7c0   : > { %1877 = vmatmul.msk.f32.vlgmr.msra.gmra.mxu1 %vm864_vm1, %v1532_v7  ;;  %v1927_v7 = vld [vmem:[%s2534_s18] ss:$0 sm:$0xff] }
 0x7c9   : > { %v1467_v10 = vpop.permute.xlu0 %1466 }
 0x7ca   : > { %1487 = vmatpush.msrb.mxu3 %v1467_v10 }
 0x7cb   : > { %1874 = vmatmul.msk.f32.vlgmr.msrb.gmra.mxu3 %vm864_vm1, %v1465_v9 }
 0x7cc   : > { %1656 = vmatpush.msra.mxu3 %v1636_v35 }
 0x7ce   : > { %1657 = vmatpush.msra.mxu3 %v1635_v36 }
 0x7d0   : > { %1658 = vmatpush.msra.mxu3 %v1634_v37 }
 0x7d2   : > { %1659 = vmatpush.msra.mxu3 %v1633_v39 }
 0x7d7   : > { %v1354_v13 = vpop.f32.mrf.mxu3 }
 0x82d   : > { %v1422_v11 = vpop.f32.mrf.mxu1 }
 0x82e   : > { %1560 = vrot.lane.b32.xlu2 %v1422_v11, %s2582_s29  ;;  %v1928_v11 = vld [vmem:[%s2536_s20] ss:$0 sm:$0xff] }
 0x83d   : > { %v1556_v12 = vpop.f32.mrf.mxu1 }
 0x83e   : > { %1568 = vrot.lane.b32.xlu2 %v1556_v12, %s2583_s1 }
 0x84e   : > { %v1489_v14 = vpop.f32.mrf.mxu3 }
 0x84f   : > { %1564 = vrot.lane.b32.xlu0 %v1489_v14, %s2584_s25 }
 0x888   : > { %v1561_v19 = vpop.permute.xlu2 %1560 }
 0x889   : > { %v1571_v20 = vsel %vm864_vm1, %v1354_v13, %v1561_v19 }
 0x898   : > { %v1569_v22 = vpop.permute.xlu2 %1568 }
 0x8c1   : > { %v1565_v21 = vpop.permute.xlu0 %1564 }
 0x8c2   : > { %v1572_v23 = vsel %vm1142_vm3, %v1571_v20, %v1565_v21 }
 0x8c3   : > { %v1573_v24 = vsel %vm1144_vm4, %v1572_v23, %v1569_v22 }
 0x8c4   : > { %1878 = vmatmul.msk.f32.vlgmr.msra.gmra.mxu2 %vm800_vm0, %v1573_v24 }
 0x947   : > { %v1597_v26 = vpop.f32.mrf.mxu2 }
 0x948   : > { %v1598_v27 = vadd.f32 %v1924_v25, %v1597_v26 }
 0x94a   : > { %v1600_v28 = vadd.f32 %v1598_v27, %v2359_v2  ;;  %v1680_v2 = vld [vmem:[%s2535_s19 + $0x78] sm:$0xff] }
 0x94b   : > { %1685 = vmatpush.msra.mxu0 %v1680_v2 }
 0x94c   : > { %v1603_v29 = vsel %vm800_vm0, %v1600_v28, 0.0 }
 0x94d   : > { %1604 = vadd.xlane.f32.xlu0 %v1603_v29  ;;  %1686 = vmatpush.msra.mxu0 %v1679_v40 }
 0x94f   : > { %1687 = vmatpush.msra.mxu0 %v1678_v41 }
 0x951   : > { %1688 = vmatpush.msra.mxu0 %v1677_v43 }
 0x953   : > { %1689 = vmatpush.msra.mxu0 %v1676_v45 }
 0x955   : > { %1690 = vmatpush.msra.mxu0 %v1675_v46 }
 0x957   : > { %1691 = vmatpush.msra.mxu0 %v1674_v47 }
 0x959   : > { %1692 = vmatpush.msra.mxu0 %v1673_v48 }
 0x95b   : > { %1693 = vmatpush.msra.mxu0 %v1672_v50 }
 0x95d   : > { %1694 = vmatpush.msra.mxu0 %v1671_v52 }
 0x95f   : > { %1695 = vmatpush.msra.mxu0 %v1670_v54 }
 0x961   : > { %1696 = vmatpush.msra.mxu0 %v1669_v56 }
 0x963   : > { %1697 = vmatpush.msra.mxu0 %v1668_v58 }
 0x965   : > { %1698 = vmatpush.msra.mxu0 %v1667_v3 }
 0x967   : > { %1699 = vmatpush.msra.mxu0 %v1666_v5 }
 0x969   : > { %1700 = vmatpush.msra.mxu0 %v1665_v6 }
 0x9c0   : > { %v1605_v30 = vpop.xlane.xlu0 %1604 }
 0x9c1   : > { %v1606_v31 = vmul.f32 %v1605_v30, %v2316_v38  ;;  %v1929_v30 = vld [vmem:[%s2537_s21] ss:$0 sm:$0xff] }
 0x9c3   : > { %v1607_v32 = vsub.f32 %v1600_v28, %v1606_v31 }
 0x9c5   : > { %v1608_v33 = vmul.f32 %v1607_v32, %v1607_v32 }
 0x9c7   : > { %v1609_v34 = vsel %vm800_vm0, %v1608_v33, 0.0 }
 0x9c8   : > { %1610 = vadd.xlane.f32.xlu2 %v1609_v34 }
 0xa3b   : > { %v1611_v42 = vpop.xlane.xlu2 %1610 }
 0xa3c   : > { %v1612_v4 = vmul.f32 %v1611_v42, %v2316_v38 }
 0xa3e   : > { %v1613_v44 = vadd.f32 1e-05, %v1612_v4 }
 0xa40   : > { %1967 = vrsqrt.f32 %v1613_v44  ;;  %vm1620_vm12 = vweird.f32 %v1613_v44 }
 0xa46   : > { %v1968_v49 = vpop.eup %1967 }
 0xa47   : > { %v1615_v51 = vmul.f32 %v1968_v49, %v1613_v44  ;;  %vm1621_vm11 = vweird.f32 %v1968_v49 }
 0xa48   : > { %vm1622_vm13 = vmor %vm1620_vm12, %vm1621_vm11 }
 0xa49   : > { %v1616_v53 = vmul.f32 %v1968_v49, %v1615_v51 }
 0xa4b   : > { %v1617_v55 = vmul.f32 0.5, %v1616_v53 }
 0xa4d   : > { %v1618_v57 = vsub.f32 1.5, %v1617_v55 }
 0xa4f   : > { %v1619_v59 = vmul.f32 %v1968_v49, %v1618_v57 }
 0xa51   : > { %v1623_v61 = vsel %vm1622_vm13, %v1968_v49, %v1619_v59 }
 0xa52   : > { %v1624_v62 = vmul.f32 %v1623_v61, %v1607_v32 }
 0xa54   : > { %v1628_v0 = vmul.f32 %v1925_v60, %v1624_v62 }
 0xa56   : > { %v1632_v1 = vadd.f32 %v1926_v63, %v1628_v0 }
 0xa58   : > { %1879 = vmatmul.msk.f32.vlgmr.msra.gmra.mxu3 %vm800_vm0, %v1632_v1 }
 0xadb   : > { %v1661_v8 = vpop.f32.mrf.mxu3 }
 0xadc   : > { %v1662_v9 = vadd.f32 %v1927_v7, %v1661_v8 }
 0xade   : > { %v1664_v10 = vmax.f32 %v1662_v9, 0.0 }
 0xae0   : > { %1701 = vmatmul.f32.vlgmr.msra.gmra.mxu0 %v1664_v10 }
 0xb5d   : > { %v1702_v12 = vpop.f32.mrf.mxu0 }
 0xb5e   : > { %v1703_v13 = vadd.f32 %v1928_v11, %v1702_v12 }
 0xb60   : > { %v1705_v14 = vadd.f32 %v1703_v13, %v1632_v1 }
 0xb62   : > { %v1708_v15 = vsel %vm800_vm0, %v1705_v14, 0.0 }
 0xb63   : > { %1709 = vadd.xlane.f32.xlu1 %v1708_v15 }
 0xbd6   : > { %v1710_v16 = vpop.xlane.xlu1 %1709 }
 0xbd7   : > { %v1711_v17 = vmul.f32 %v1710_v16, %v2316_v38 }
 0xbd9   : > { %v1712_v18 = vsub.f32 %v1705_v14, %v1711_v17 }
 0xbdb   : > { %v1713_v19 = vmul.f32 %v1712_v18, %v1712_v18 }
 0xbdd   : > { %v1714_v20 = vsel %vm800_vm0, %v1713_v19, 0.0 }
 0xbde   : > { %1715 = vadd.xlane.f32.xlu0 %v1714_v20 }
 0xc51   : > { %v1716_v21 = vpop.xlane.xlu0 %1715 }
 0xc52   : > { %v1717_v22 = vmul.f32 %v1716_v21, %v2316_v38  ;;  %v1930_v38 = vld [vmem:[%s2538_s22] ss:$0 sm:$0xff] }
 0xc54   : > { %v1718_v23 = vadd.f32 1e-05, %v1717_v22 }
 0xc56   : > { %1969 = vrsqrt.f32 %v1718_v23  ;;  %vm1725_vm15 = vweird.f32 %v1718_v23 }
 0xc5c   : > { %v1970_v24 = vpop.eup %1969 }
 0xc5d   : > { %v1720_v25 = vmul.f32 %v1970_v24, %v1718_v23  ;;  %vm1726_vm14 = vweird.f32 %v1970_v24 }
 0xc5e   : > { %vm1727_vm1 = vmor %vm1725_vm15, %vm1726_vm14 }
 0xc5f   : > { %v1721_v26 = vmul.f32 %v1970_v24, %v1720_v25 }
 0xc61   : > { %v1722_v27 = vmul.f32 0.5, %v1721_v26 }
 0xc63   : > { %v1723_v28 = vsub.f32 1.5, %v1722_v27 }
 0xc65   : > { %v1724_v29 = vmul.f32 %v1970_v24, %v1723_v28 }
 0xc67   : > { %v1728_v31 = vsel %vm1727_vm1, %v1970_v24, %v1724_v29 }
 0xc68   : > { %v1729_v32 = vmul.f32 %v1728_v31, %v1712_v18 }
 0xc6a   : > { %v1733_v33 = vmul.f32 %v1929_v30, %v1729_v32 }
 0xc6c   : > { %v1737_v34 = vadd.f32 %v1930_v38, %v1733_v33 }
 0xc6e   : > { %1738 = vst.msk [vmem:[%s770_s7] sm:$0xff] %vm800_vm0, %v1737_v34 }
 0xc6f PF: > { %s35_s4 = sadd.s32 1, %s2045_s4  }
 0xc70   : > { %p32_p7 = scmp.ge.s32.totalorder %s35_s4, 4  }
 0xc72   :  { %34 = sbr.rel (!%p32_p7) target bundleno = 13 (0xd), region = 157 }
 0xc77   :  { %1758 = vsyncpa [#allocation3], 1 }
 0xc78   :  { %1760 = vsyncpa [#allocation3 + $0x1], 1 }
 0xc79   :  { %1761 = vsyncpa [#allocation5], 1 }

// kernel: decoder_forward.3
= control target key start
LH: loop header
LB: loop body
LE: loop exit
PB: predicated region body
PF: predicated region fallthrough
CT: control target
= control target key end

     0   :  { %s2690_s0 = inlined_call_operand.vmem [shape: f32[2,8,32], index: 0, kind: input, shape index: {}]   ;;  %s2691_s1 = inlined_call_operand.vmem [shape: f32[2,8,32], index: 1, kind: input, shape index: {}]   ;;  %s2692_s2 = inlined_call_operand.vmem [shape: f32[2,1,8], index: 2, kind: input, shape index: {}]   ;;  %s2693_s3 = inlined_call_operand.vmem [shape: f32[32,32], index: 3, kind: input, shape index: {}]   ;;  %s2694_s4 = inlined_call_operand.vmem [shape: f32[32,32], index: 4, kind: input, shape index: {}]   ;;  %s2695_s5 = inlined_call_operand.vmem [shape: f32[32,32], index: 5, kind: input, shape index: {}]   ;;  %s2696_s6 = inlined_call_operand.vmem [shape: f32[32,32], index: 6, kind: input, shape index: {}]   ;;  %s2697_s7 = inlined_call_operand.vmem [shape: f32[1,32], index: 7, kind: input, shape index: {}]   ;;  %s2698_s8 = inlined_call_operand.vmem [shape: f32[1,32], index: 8, kind: input, shape index: {}]   ;;  %s2699_s9 = inlined_call_operand.vmem [shape: f32[1,32], index: 9, kind: input, shape index: {}]   ;;  %s2700_s10 = inlined_call_operand.vmem [shape: f32[32,32], index: 10, kind: input, shape index: {}]   ;;  %s2701_s11 = inlined_call_operand.vmem [shape: f32[32,32], index: 11, kind: input, shape index: {}]   ;;  %s2702_s12 = inlined_call_operand.vmem [shape: f32[32,32], index: 12, kind: input, shape index: {}]   ;;  %s2703_s13 = inlined_call_operand.vmem [shape: f32[32,32], index: 13, kind: input, shape index: {}]   ;;  %s2704_s14 = inlined_call_operand.hbm [shape: f32[1,32], index: 14, kind: input, shape index: {}]   ;;  %s2705_s15 = inlined_call_operand.vmem [shape: f32[1,32], index: 15, kind: input, shape index: {}]   ;;  %s2706_s16 = inlined_call_operand.vmem [shape: f32[1,32], index: 16, kind: input, shape index: {}]   ;;  %s2707_s17 = inlined_call_operand.vmem [shape: f32[32,128], index: 17, kind: input, shape index: {}]   ;;  %s2708_s18 = inlined_call_operand.hbm [shape: f32[1,128], index: 18, kind: input, shape index: {}]   ;;  %s2709_s19 = inlined_call_operand.vmem [shape: f32[128,32], index: 19, kind: input, shape index: {}]   ;;  %s2710_s20 = inlined_call_operand.hbm [shape: f32[1,32], index: 20, kind: input, shape index: {}]   ;;  %s2711_s21 = inlined_call_operand.vmem [shape: f32[1,32], index: 21, kind: input, shape index: {}]   ;;  %s2712_s22 = inlined_call_operand.hbm [shape: f32[1,32], index: 22, kind: input, shape index: {}]   ;;  %s2713_s23 = inlined_call_operand.vmem [shape: f32[2,8,32], index: 23, kind: output, shape index: {}]  }
   0x1   :  { %2729 = sst [smem:[#allocation12_spill]] %s2690_s0 }
   0x2   :  { %2730 = sst [smem:[#allocation13_spill]] %s2691_s1 }
   0x3   :  { %2731 = sst [smem:[#allocation14_spill]] %s2692_s2 }
   0x4   :  { %2732 = sst [smem:[#allocation15_spill]] %s2693_s3 }
   0x5   :  { %2733 = sst [smem:[#allocation16_spill]] %s2694_s4 }
   0x6   :  { %2734 = sst [smem:[#allocation17_spill]] %s2695_s5 }
   0x7   :  { %2735 = sst [smem:[#allocation18_spill]] %s2696_s6 }
   0x8   :  { %2736 = sst [smem:[#allocation19_spill]] %s2697_s7 }
   0x9   :  { %2737 = sst [smem:[#allocation20_spill]] %s2704_s14 }
   0xa   :  { %2738 = sst [smem:[#allocation21_spill]] %s2708_s18 }
   0xb   :  { %28 = vsyncpa [#allocation3], 0 }
   0xc   :  { %29 = vsyncpa [#allocation5], 0 }
   0xd   :  { %30 = vsyncpa [#allocation8], 0  ;;  %s2309_s4 = smov 0  }
   0xe LB: > { %s2739_s18 = sld [smem:[#allocation21_spill]]  ;;  %s2318_s5 = sadd.s32 4294967295, %s2175_s4   ;;  %s2175_s4 = sphi %s2309_s4, %s36_s4  }
   0xf   : > { %p1881_p0 = scmp.ge.s32.totalorder %s2175_s4, 1  ;;  %p565_p1 = scmp.lt.s32.totalorder %s2175_s4, 3 }
  0x10   : > { %p1959_p2 = scmp.eq.s32.totalorder %s2318_s5, 0  ;;  %s2177_s26 = smov [#allocation4]  }
  0x11   : > { %p2323_p3 = pnand %p1881_p0, %p565_p1  ;;  %s633_s2 = sshll.u32 %s2177_s26, 4  ;;  %s634_s2 = int_to_ptr.vmem [resolvable:$true] %s633_s2 }
  0x12   : > { %s2741_s14 = sld [smem:[#allocation20_spill]]  ;;  %s646_s3 = sshll.u32 %s2710_s20, 4  ;;  %s647_s3 = int_to_ptr.hbm [resolvable:$true] %s646_s3 }
  0x13   : > { %p1946_p4 = pneg %p2323_p3  ;;  %s2178_s30 = smov [#allocation2]  }
  0x14   : > { %s631_s25 = sshll.u32 %s2739_s18, 4  ;;  %s612_s24 = sshll.u32 %s2178_s30, 4  ;;  %s632_s25 = int_to_ptr.hbm [resolvable:$true] %s631_s25  ;;  %s613_s24 = int_to_ptr.vmem [resolvable:$true] %s612_s24 }
  0x15   : > { %p2337_p5 = pnand %p1959_p2, %p1946_p4  ;;  %s2179_s26 = smov [#allocation6]  }
  0x16   : > { %s648_s6 = sshll.u32 %s2179_s26, 4  ;;  %s661_s29 = sshll.u32 %s2712_s22, 4  ;;  %s649_s6 = int_to_ptr.vmem [resolvable:$true] %s648_s6  ;;  %s662_s29 = int_to_ptr.hbm [resolvable:$true] %s661_s29 }
  0x17   : > { %1952 = dma.hbm_to_vmem [thread:$0]  (!%p2337_p5), %s632_s25, 16, %s634_s2, [#allocation5]  }
  0x18   : > { %s610_s7 = sshll.u32 %s2741_s14, 4  ;;  %s2180_s14 = smov [#allocation7]   ;;  %s611_s7 = int_to_ptr.hbm [resolvable:$true] %s610_s7 }
  0x19   : > { %1949 = dma.hbm_to_vmem [thread:$0]  (!%p2337_p5), %s611_s7, 16, %s613_s24, [#allocation3]  }
  0x1a   : > { %1955 = dma.hbm_to_vmem [thread:$0]  (!%p2337_p5), %s647_s3, 16, %s649_s6, [#allocation5]  }
  0x1b   : > { %s663_s18 = sshll.u32 %s2180_s14, 4  ;;  %696 = sbr.rel (%p2323_p3) target bundleno = 3191 (0xc77), region = 112  ;;  %s664_s18 = int_to_ptr.vmem [resolvable:$true] %s663_s18 }
  0x1c   : > { %1958 = dma.hbm_to_vmem [thread:$0]  (!%p2337_p5), %s662_s29, 16, %s664_s18, [#allocation8]  }
  0x20   : > { %2162 = dma.done.wait (%p1959_p2), [#allocation3], 16  }
  0x21   : > { %2164 = vsyncadd (%p1959_p2), [#allocation3], 4294967280 }
  0x22   : > { %2166 = dma.done.wait (%p1959_p2), [#allocation5], 32  }
  0x23   : > { %2168 = vsyncadd (%p1959_p2), [#allocation5], 4294967264 }
  0x24   : > { %2170 = dma.done.wait (%p1959_p2), [#allocation8], 16  }
  0x25   : > { %2172 = vsyncadd (%p1959_p2), [#allocation8], 4294967280  ;;  %p781_p6 = scmp.lt.s32.totalorder %s2318_s5, 1  ;;  %s2743_s1 = sld [smem:[#allocation15_spill]]  ;;  %vm825_vm0 = vcmask 261120   ;;  %vm889_vm1 = vcmask 64512   ;;  %v798_v20 = vlaneseq }
  0x26   : > { %s2744_s30 = sld [smem:[#allocation12_spill]]  ;;  %s2718_s26 = smov 104   ;;  %vm1167_vm3 = vcmask 130048   ;;  %vm1169_vm4 = vcmask 195584  }
  0x27   : > { %s2760_s5 = smov (!%p781_p6, %s2318_s5), 1  ;;  %s2745_s25 = sld [smem:[#allocation16_spill]]  ;;  %v799_v21 = vshrl.u32 %v798_v20, 7  ;;  %v801_v22 = vand.u32 127, %v798_v20 }
  0x28   : > { %s2371_s14 = sshll.u32 %s2760_s5, 3  ;;  %s2725_s6 = smov 112  }
  0x29   : > { %s2722_s27 = smov 120   ;;  %s2746_s18 = sld [smem:[#allocation17_spill]]  ;;  %vm802_vm2 = vcmp.ge.s32.totalorder %v799_v21, %v801_v22 }
  0x2a   : > { %s2720_s28 = smov 16   ;;  %s2721_s29 = smov 8  }
  0x2b   : > { %v811_v0 = vld [vmem:[%s2743_s1 + $0x18] sm:$0xff]  ;;  %v810_v1 = vld [vmem:[%s2743_s1 + $0x10] sm:$0xff]  ;;  %v809_v2 = vld [vmem:[%s2743_s1 + $0x8] sm:$0xff]  ;;  %s2724_s2 = smov 24   ;;  %s2747_s0 = sld [smem:[#allocation18_spill]] }
  0x2c   : > { %s784_s24 = scalar_lea.vmem %s2744_s30, %s2371_s14  ;;  %841 = vmatpush.msra.mxu1 %v811_v0  ;;  %v808_v3 = vld [vmem:[%s2743_s1] sm:$0xff]  ;;  %s2748_s7 = sld [smem:[#allocation19_spill]] }
  0x2d   : > { %v2389_v4 = vld [vmem:[%s784_s24] sm:$0xff]  ;;  %v815_v5 = vld [vmem:[%s2745_s25 + $0x18] sm:$0xff]  ;;  %v814_v6 = vld [vmem:[%s2745_s25 + $0x10] sm:$0xff]  ;;  %s2752_s3 = smov 104   ;;  %s2753_s24 = sld [smem:[#allocation14_spill]] }
  0x2e   : > { %842 = vmatpush.msra.mxu1 %v810_v1  ;;  %v813_v7 = vld [vmem:[%s2745_s25 + $0x8] sm:$0xff]  ;;  %v812_v8 = vld [vmem:[%s2745_s25] sm:$0xff] }
  0x2f   : > { %v819_v11 = vld [vmem:[%s2746_s18 + $0x18] sm:$0xff]  ;;  %v818_v12 = vld [vmem:[%s2746_s18 + $0x10] sm:$0xff]  ;;  %v817_v13 = vld [vmem:[%s2746_s18 + $0x8] sm:$0xff] }
  0x30   : > { %843 = vmatpush.msra.mxu1 %v809_v2  ;;  %881 = vmatpush.msra.mxu2 %v819_v11  ;;  %v816_v14 = vld [vmem:[%s2746_s18] sm:$0xff] }
  0x31   : > { %v820_v20 = vld [vmem:[%s2747_s0] sm:$0xff] }
  0x32   : > { %844 = vmatpush.msra.mxu1 %v808_v3  ;;  %882 = vmatpush.msra.mxu2 %v818_v12 }
  0x33   : > { %1895 = vmatmul.msk.f32.vlgmr.msra.gmra.mxu1 %vm825_vm0, %v2389_v4  ;;  %s791_s1 = scalar_lea.vmem %s2753_s24, %s2760_s5 }
  0x34   : > { %861 = vmatpush.msrb.mxu1 %v815_v5  ;;  %883 = vmatpush.msra.mxu2 %v817_v13 }
  0x36   : > { %862 = vmatpush.msrb.mxu1 %v814_v6  ;;  %884 = vmatpush.msra.mxu2 %v816_v14 }
  0x37   : > { %1897 = vmatmul.msk.f32.vlgmr.msra.gmra.mxu2 %vm825_vm0, %v2389_v4 }
  0x38   : > { %863 = vmatpush.msrb.mxu1 %v813_v7 }
  0x3a   : > { %864 = vmatpush.msrb.mxu1 %v812_v8 }
  0x3b   : > { %1896 = vmatmul.msk.f32.vlgmr.msrb.gmra.mxu1 %vm825_vm0, %v2389_v4 }
  0xb0   : > { %v846_v9 = vpop.f32.mrf.mxu1 }
  0xb8   : > { %v866_v10 = vpop.f32.mrf.mxu1 }
  0xb9   : > { %1089 = vrot.lane.b32.xlu2 %v866_v10, %s2718_s26  ;;  %1022 = vrot.lane.b32.xlu1 %v866_v10, %s2725_s6 }
  0xba   : > { %954 = vrot.lane.b32.xlu0 %v866_v10, %s2722_s27  ;;  %1898 = vmatpush.xpose.msk.msra.mxu3 %vm889_vm1, %v866_v10  ;;  %v886_v28 = vpop.f32.mrf.mxu2 }
  0xbd   : > { %1899 = vmatmul.msk.f32.vlgmr.msra.gmra.mxu3 %vm889_vm1, %v846_v9 }
  0xbe   : > { %947 = vmatpush.msrb.mxu3 %v886_v28 }
  0xc1   : > { %1087 = vrot.lane.b32.xlu2 %v846_v9, %s2718_s26  ;;  %1020 = vrot.lane.b32.xlu1 %v846_v9, %s2725_s6 }
  0xc2   : > { %952 = vrot.lane.b32.xlu0 %v846_v9, %s2722_s27 }
 0x113   : > { %v1090_v15 = vpop.permute.xlu2 %1089 }
 0x114   : > { %1907 = vmatpush.xpose.msk.msra.mxu0 %vm889_vm1, %v1090_v15 }
 0x11b   : > { %v1088_v16 = vpop.permute.xlu2 %1087 }
 0x11c   : > { %1908 = vmatmul.msk.f32.vlgmr.msra.gmra.mxu0 %vm889_vm1, %v1088_v16 }
 0x12b   : > { %v1023_v17 = vpop.permute.xlu1 %1022 }
 0x12c   : > { %v955_v18 = vpop.permute.xlu0 %954 }
 0x12d   : > { %1901 = vmatpush.xpose.msk.msrb.mxu2 %vm889_vm1, %v955_v18  ;;  %v822_v18 = vld [vmem:[%s2747_s0 + $0x10] sm:$0xff] }
 0x131   : > { %1904 = vmatpush.xpose.msk.msra.mxu2 %vm889_vm1, %v1023_v17  ;;  %v823_v17 = vld [vmem:[%s2747_s0 + $0x18] sm:$0xff] }
 0x133   : > { %v1021_v23 = vpop.permute.xlu1 %1020 }
 0x134   : > { %v953_v19 = vpop.permute.xlu0 %952 }
 0x135   : > { %1902 = vmatmul.msk.f32.vlgmr.msrb.gmra.mxu2 %vm889_vm1, %v953_v19  ;;  %v821_v19 = vld [vmem:[%s2747_s0 + $0x8] sm:$0xff]  ;;  %s795_s0 = scalar_lea.vmem %s2713_s23, %s2371_s14 }
 0x136   : > { %1189 = vmatpush.msrb.mxu2 %v823_v17 }
 0x138   : > { %1190 = vmatpush.msrb.mxu2 %v822_v18 }
 0x13a   : > { %1191 = vmatpush.msrb.mxu2 %v821_v19 }
 0x13c   : > { %1192 = vmatpush.msrb.mxu2 %v820_v20 }
 0x13d   : > { %1905 = vmatmul.msk.f32.vlgmr.msra.gmra.mxu2 %vm889_vm1, %v1021_v23 }
 0x140   : > { %v913_v24 = vpop.f32.mrf.mxu3 }
 0x141   : > { %v916_v25 = vsel %vm802_vm2, %v913_v24, -1e+20 }
 0x142   : > { %v917_v26 = vmul.f32 0.17677669, %v916_v25 }
 0x144   : > { %v918_v27 = vsel %vm889_vm1, %v917_v26, -inf }
 0x145   : > { %919 = vmax.xlane.f32.xlu0 %v918_v27  ;;  %v1987_v27 = vld [vmem:[%s2748_s7] ss:$0 sm:$0xff] }
 0x199   : > { %v1112_v38 = vpop.f32.mrf.mxu0 }
 0x19a   : > { %v1115_v43 = vsel %vm802_vm2, %v1112_v38, -1e+20 }
 0x19b   : > { %v1116_v44 = vmul.f32 0.17677669, %v1115_v43  ;;  %v1244_v43 = vld [vmem:[%s2701_s11 + $0x18] sm:$0xff] }
 0x19c   : > { %1292 = vmatpush.msrb.mxu0 %v1244_v43 }
 0x19d   : > { %v1117_v45 = vsel %vm889_vm1, %v1116_v44, -inf }
 0x1b8   : > { %v977_v29 = vpop.f32.mrf.mxu2  ;;  %v920_v30 = vpop.xlane.xlu0 %919 }
 0x1b9   : > { %v980_v31 = vsel %vm802_vm2, %v977_v29, -1e+20  ;;  %v921_v32 = vsub.f32 %v917_v26, %v920_v30 }
 0x1ba   : > { %v981_v33 = vmul.f32 0.17677669, %v980_v31 }
 0x1bb   : > { %v922_v34 = vmul.f32 1.442695, %v921_v32  ;;  %v2187_v32 = vmov 32.0  }
 0x1bc   : > { %v982_v35 = vsel %vm889_vm1, %v981_v33, -inf }
 0x1bd   : > { %1997 = vpow2.f32 %v922_v34  ;;  %983 = vmax.xlane.f32.xlu1 %v982_v35 }
 0x1c0   : > { %v1045_v36 = vpop.f32.mrf.mxu2 }
 0x1c1   : > { %v1048_v37 = vsel %vm802_vm2, %v1045_v36, -1e+20 }
 0x1c2   : > { %v1049_v39 = vmul.f32 0.17677669, %v1048_v37 }
 0x1c3   : > { %v1998_v40 = vpop.eup %1997 }
 0x1c4   : > { %v1050_v41 = vsel %vm889_vm1, %v1049_v39, -inf  ;;  %v924_v42 = vsel %vm889_vm1, %v1998_v40, 0.0 }
 0x1c5   : > { %1051 = vmax.xlane.f32.xlu2 %v1050_v41  ;;  %925 = vadd.xlane.f32.xlu0 %v924_v42 }
 0x1cd   : > { %1118 = vmax.xlane.f32.xlu2 %v1117_v45  ;;  %v1242_v45 = vld [vmem:[%s2701_s11 + $0x8] sm:$0xff] }
 0x230   : > { %v984_v46 = vpop.xlane.xlu1 %983 }
 0x231   : > { %v985_v47 = vsub.f32 %v981_v33, %v984_v46  ;;  %v1241_v46 = vld [vmem:[%s2701_s11] sm:$0xff] }
 0x233   : > { %v986_v48 = vmul.f32 1.442695, %v985_v47 }
 0x235   : > { %1999 = vpow2.f32 %v986_v48  ;;  %v1240_v48 = vld [vmem:[%s2700_s10 + $0x18] sm:$0xff] }
 0x238   : > { %v1052_v49 = vpop.xlane.xlu2 %1051  ;;  %v926_v50 = vpop.xlane.xlu0 %925 }
 0x239   : > { %v1053_v51 = vsub.f32 %v1049_v39, %v1052_v49  ;;  %2001 = vrcp.f32 %v926_v50  ;;  %v1239_v49 = vld [vmem:[%s2700_s10 + $0x10] sm:$0xff]  ;;  %v1238_v50 = vld [vmem:[%s2700_s10 + $0x8] sm:$0xff] }
 0x23b   : > { %v2000_v52 = vpop.eup %1999  ;;  %v1054_v53 = vmul.f32 1.442695, %v1053_v51  ;;  %v1237_v51 = vld [vmem:[%s2700_s10] sm:$0xff] }
 0x23c   : > { %v988_v54 = vsel %vm889_vm1, %v2000_v52, 0.0 }
 0x23d   : > { %2003 = vpow2.f32 %v1054_v53  ;;  %989 = vadd.xlane.f32.xlu1 %v988_v54 }
 0x23f   : > { %v2002_v55 = vpop.eup %2001 }
 0x240   : > { %v1119_v56 = vpop.xlane.xlu2 %1118  ;;  %v928_v57 = vmul.f32 %v2002_v55, %v1998_v40 }
 0x241   : > { %v1120_v58 = vsub.f32 %v1116_v44, %v1119_v56  ;;  %v1243_v44 = vld [vmem:[%s2701_s11 + $0x10] sm:$0xff] }
 0x242   : > { %1900 = vmatmul.msk.f32.vlgmr.msrb.gmra.mxu3 %vm889_vm1, %v928_v57  ;;  %1293 = vmatpush.msrb.mxu0 %v1243_v44 }
 0x243   : > { %v2004_v59 = vpop.eup %2003  ;;  %v1121_v60 = vmul.f32 1.442695, %v1120_v58 }
 0x244   : > { %v1056_v61 = vsel %vm889_vm1, %v2004_v59, 0.0  ;;  %1294 = vmatpush.msrb.mxu0 %v1242_v45 }
 0x245   : > { %2005 = vpow2.f32 %v1121_v60  ;;  %1057 = vadd.xlane.f32.xlu2 %v1056_v61  ;;  %v1988_v61 = vld [vmem:[%s2698_s8] ss:$0 sm:$0xff] }
 0x246   : > { %1295 = vmatpush.msrb.mxu0 %v1241_v46 }
 0x24b   : > { %v2006_v62 = vpop.eup %2005 }
 0x24c   : > { %v1123_v63 = vsel %vm889_vm1, %v2006_v62, 0.0 }
 0x24d   : > { %1124 = vadd.xlane.f32.xlu0 %v1123_v63 }
 0x256   : > { %994 = vrot.lane.b32.xlu1 %v886_v28, %s2722_s27  ;;  %s2750_s27 = smov 112  }
 0x25d   : > { %1061 = vrot.lane.b32.xlu2 %v886_v28, %s2725_s6 }
 0x261   : > { %1128 = vrot.lane.b32.xlu0 %v886_v28, %s2718_s26 }
 0x2b0   : > { %v990_v1 = vpop.xlane.xlu1 %989 }
 0x2b8   : > { %v1058_v0 = vpop.xlane.xlu2 %1057 }
 0x2b9   : > { %2007 = vrcp.f32 %v1058_v0  ;;  %v1989_v0 = vld [vmem:[%s2699_s9] ss:$0 sm:$0xff] }
 0x2ba   : > { %2009 = vrcp.f32 %v990_v1 }
 0x2bf   : > { %v2008_v2 = vpop.eup %2007 }
 0x2c0   : > { %v1060_v3 = vmul.f32 %v2008_v2, %v2004_v59  ;;  %v1062_v5 = vpop.permute.xlu2 %1061  ;;  %v2010_v6 = vpop.eup %2009 }
 0x2c1   : > { %1082 = vmatpush.msra.mxu3 %v1062_v5  ;;  %v1125_v7 = vpop.xlane.xlu0 %1124  ;;  %v992_v8 = vmul.f32 %v2010_v6, %v2000_v52 }
 0x2c2   : > { %1906 = vmatmul.msk.f32.vlgmr.msra.gmra.mxu3 %vm889_vm1, %v1060_v3  ;;  %2011 = vrcp.f32 %v1125_v7 }
 0x2c3   : > { %2013 = vrcp.f32 %v2187_v32  ;;  %1269 = vmatpush.msrb.mxu3 %v1240_v48 }
 0x2c5   : > { %v949_v13 = vpop.f32.mrf.mxu3  ;;  %1270 = vmatpush.msrb.mxu3 %v1239_v49 }
 0x2c7   : > { %1271 = vmatpush.msrb.mxu3 %v1238_v50 }
 0x2c8   : > { %v995_v9 = vpop.permute.xlu1 %994  ;;  %v2012_v10 = vpop.eup %2011 }
 0x2c9   : > { %1015 = vmatpush.msra.mxu1 %v995_v9  ;;  %v1127_v11 = vmul.f32 %v2012_v10, %v2006_v62  ;;  %v2014_v33 = vpop.eup %2013  ;;  %1272 = vmatpush.msrb.mxu3 %v1237_v51 }
 0x2ca   : > { %1903 = vmatmul.msk.f32.vlgmr.msra.gmra.mxu1 %vm889_vm1, %v992_v8  ;;  %v1204_v34 = vmul.f32 32.0, %v2014_v33  ;;  %vm1208_vm5 = vweird.f32 %v2014_v33 }
 0x2cc   : > { %v1205_v35 = vsub.f32 1.0, %v1204_v34 }
 0x2ce   : > { %v1206_v36 = vmul.f32 %v2014_v33, %v1205_v35 }
 0x2d0   : > { %v1207_v37 = vadd.f32 %v2014_v33, %v1206_v36 }
 0x2d2   : > { %v2478_v38 = vsel %vm1208_vm5, %v2014_v33, %v1207_v37 }
 0x2d3   : > { %v1129_v12 = vpop.permute.xlu0 %1128 }
 0x2d4   : > { %1149 = vmatpush.msrb.mxu1 %v1129_v12  ;;  %v803_v12 = vld [vmem:[%s791_s1] sm:$0x1] }
 0x2d5   : > { %1909 = vmatmul.msk.f32.vlgmr.msrb.gmra.mxu1 %vm889_vm1, %v1127_v11  ;;  %vm804_vm9 = vcmp.ne.f32.partialorder %v803_v12, 0.0 }
 0x345   : > { %v1084_v14 = vpop.f32.mrf.mxu3 }
 0x346   : > { %1159 = vrot.lane.b32.xlu0 %v1084_v14, %s2720_s28 }
 0x347   : > { %v1017_v15 = vpop.f32.mrf.mxu1 }
 0x348   : > { %1155 = vrot.lane.b32.xlu1 %v1017_v15, %s2721_s29  ;;  %s2751_s29 = smov 120  }
 0x352   : > { %v1151_v16 = vpop.f32.mrf.mxu1 }
 0x353   : > { %1163 = vrot.lane.b32.xlu2 %v1151_v16, %s2724_s2  ;;  %s2749_s2 = sld [smem:[#allocation13_spill]]  ;;  %v1251_v16 = vld [vmem:[%s2703_s13 + $0x10] sm:$0xff] }
 0x359   : > { %s788_s6 = scalar_lea.vmem %s2749_s2, %s2371_s14 }
 0x35a   : > { %v2498_v47 = vld [vmem:[%s788_s6] sm:$0xff] }
 0x35b   : > { %1912 = vmatmul.msk.f32.vlgmr.msrb.gmra.mxu0 %vm825_vm0, %v2498_v47 }
 0x3ad   : > { %v1164_v24 = vpop.permute.xlu2 %1163 }
 0x3b8   : > { %v1160_v22 = vpop.permute.xlu0 %1159 }
 0x3ba   : > { %v1156_v21 = vpop.permute.xlu1 %1155 }
 0x3bb   : > { %v1166_v23 = vsel %vm889_vm1, %v949_v13, %v1156_v21  ;;  %v2188_v13 = vmov 0   ;;  %v1248_v21 = vld [vmem:[%s2702_s12 + $0x18] sm:$0xff] }
 0x3bc   : > { %v1168_v25 = vsel %vm1167_vm3, %v1166_v23, %v1160_v22  ;;  %v805_v14 = vsel %vm804_vm9, 1, %v2188_v13  ;;  %v1247_v22 = vld [vmem:[%s2702_s12 + $0x10] sm:$0xff]  ;;  %1312 = vmatpush.msra.mxu1 %v1248_v21  ;;  %v1246_v23 = vld [vmem:[%s2702_s12 + $0x8] sm:$0xff] }
 0x3bd   : > { %v1170_v26 = vsel %vm1169_vm4, %v1168_v25, %v1164_v24  ;;  %v806_v15 = vperm.slane %v805_v14, 0 }
 0x3be   : > { %1910 = vmatmul.msk.f32.vlgmr.msrb.gmra.mxu2 %vm825_vm0, %v1170_v26  ;;  %1313 = vmatpush.msra.mxu1 %v1247_v22  ;;  %v1245_v26 = vld [vmem:[%s2702_s12] sm:$0xff] }
 0x3bf   : > { %vm2543_vm10 = vcmp.eq.s32.totalorder %v806_v15, 1  ;;  %v1252_v15 = vld [vmem:[%s2703_s13 + $0x18] sm:$0xff] }
 0x3c0   : > { %1314 = vmatpush.msra.mxu1 %v1246_v23 }
 0x3c2   : > { %1315 = vmatpush.msra.mxu1 %v1245_v26 }
 0x3c3   : > { %1913 = vmatmul.msk.f32.vlgmr.msra.gmra.mxu1 %vm825_vm0, %v2498_v47 }
 0x3d8   : > { %v1297_v3 = vpop.f32.mrf.mxu0 }
 0x3d9   : > { %1452 = vrot.lane.b32.xlu2 %v1297_v3, %s2750_s27  ;;  %1914 = vmatpush.xpose.msk.msra.mxu2 %vm889_vm1, %v1297_v3 }
 0x3e1   : > { %1384 = vrot.lane.b32.xlu2 %v1297_v3, %s2751_s29 }
 0x433   : > { %v1453_v6 = vpop.permute.xlu2 %1452 }
 0x434   : > { %1920 = vmatpush.xpose.msk.msrb.mxu2 %vm889_vm1, %v1453_v6 }
 0x43b   : > { %v1385_v7 = vpop.permute.xlu2 %1384 }
 0x43c   : > { %1917 = vmatpush.xpose.msk.msra.mxu0 %vm889_vm1, %v1385_v7 }
 0x440   : > { %v1317_v47 = vpop.f32.mrf.mxu1 }
 0x441   : > { %v1194_v28 = vpop.f32.mrf.mxu2  ;;  %1377 = vmatpush.msra.mxu3 %v1317_v47 }
 0x442   : > { %v1195_v29 = vadd.f32 %v1987_v27, %v1194_v28 }
 0x444   : > { %v1197_v30 = vadd.f32 %v1195_v29, %v2389_v4 }
 0x446   : > { %v1200_v31 = vsel %vm825_vm0, %v1197_v30, 0.0 }
 0x447   : > { %1201 = vadd.xlane.f32.xlu1 %v1200_v31 }
 0x4ba   : > { %v1202_v39 = vpop.xlane.xlu1 %1201 }
 0x4bb   : > { %v1210_v40 = vmul.f32 %v2478_v38, %v1202_v39 }
 0x4bd   : > { %v1211_v41 = vsub.f32 %v1197_v30, %v1210_v40 }
 0x4bf   : > { %v1212_v42 = vmul.f32 %v1211_v41, %v1211_v41 }
 0x4c1   : > { %v1213_v4 = vsel %vm825_vm0, %v1212_v42, 0.0 }
 0x4c2   : > { %1214 = vadd.xlane.f32.xlu0 %v1213_v4 }
 0x535   : > { %v1215_v52 = vpop.xlane.xlu0 %1214 }
 0x536   : > { %v1216_v53 = vmul.f32 %v1215_v52, %v2478_v38 }
 0x538   : > { %v1217_v54 = vadd.f32 1e-05, %v1216_v53 }
 0x53a   : > { %2015 = vrsqrt.f32 %v1217_v54  ;;  %vm1224_vm7 = vweird.f32 %v1217_v54 }
 0x540   : > { %v2016_v55 = vpop.eup %2015 }
 0x541   : > { %v1219_v56 = vmul.f32 %v2016_v55, %v1217_v54  ;;  %vm1225_vm6 = vweird.f32 %v2016_v55 }
 0x542   : > { %vm1226_vm8 = vmor %vm1224_vm7, %vm1225_vm6 }
 0x543   : > { %v1220_v57 = vmul.f32 %v2016_v55, %v1219_v56 }
 0x545   : > { %v1221_v58 = vmul.f32 0.5, %v1220_v57 }
 0x547   : > { %v1222_v59 = vsub.f32 1.5, %v1221_v58 }
 0x549   : > { %v1223_v60 = vmul.f32 %v2016_v55, %v1222_v59 }
 0x54b   : > { %v1227_v62 = vsel %vm1226_vm8, %v2016_v55, %v1223_v60 }
 0x54c   : > { %v1228_v63 = vmul.f32 %v1227_v62, %v1211_v41 }
 0x54e   : > { %v1232_v1 = vmul.f32 %v1988_v61, %v1228_v63 }
 0x550   : > { %v2521_v2 = vadd.f32 %v1989_v0, %v1232_v1 }
 0x552   : > { %1911 = vmatmul.msk.f32.vlgmr.msrb.gmra.mxu3 %vm825_vm0, %v2521_v2 }
 0x5d5   : > { %v1274_v5 = vpop.f32.mrf.mxu3 }
 0x5d6   : > { %1517 = vrot.lane.b32.xlu1 %v1274_v5, %s2752_s3  ;;  %1450 = vrot.lane.b32.xlu2 %v1274_v5, %s2750_s27 }
 0x5d7   : > { %1915 = vmatmul.msk.f32.vlgmr.msra.gmra.mxu2 %vm889_vm1, %v1274_v5 }
 0x5d8   : > { %1617 = vmatpush.msra.mxu2 %v1252_v15 }
 0x5da   : > { %1618 = vmatpush.msra.mxu2 %v1251_v16 }
 0x5de   : > { %1382 = vrot.lane.b32.xlu2 %v1274_v5, %s2751_s29 }
 0x5e6   : > { %1519 = vrot.lane.b32.xlu2 %v1297_v3, %s2752_s3 }
 0x630   : > { %v1451_v8 = vpop.permute.xlu2 %1450 }
 0x631   : > { %1921 = vmatmul.msk.f32.vlgmr.msrb.gmra.mxu2 %vm889_vm1, %v1451_v8 }
 0x638   : > { %v1383_v9 = vpop.permute.xlu2 %1382 }
 0x639   : > { %1918 = vmatmul.msk.f32.vlgmr.msra.gmra.mxu0 %vm889_vm1, %v1383_v9 }
 0x640   : > { %v1520_v10 = vpop.permute.xlu2 %1519 }
 0x641   : > { %1923 = vmatpush.xpose.msk.msrb.mxu0 %vm889_vm1, %v1520_v10 }
 0x648   : > { %v1518_v11 = vpop.permute.xlu1 %1517 }
 0x649   : > { %1924 = vmatmul.msk.f32.vlgmr.msrb.gmra.mxu0 %vm889_vm1, %v1518_v11 }
 0x65a   : > { %v1343_v17 = vpop.f32.mrf.mxu2 }
 0x65b   : > { %v1346_v18 = vsel %vm2543_vm10, %v1343_v17, -1e+20  ;;  %v1250_v17 = vld [vmem:[%s2703_s13 + $0x8] sm:$0xff] }
 0x65c   : > { %v1347_v19 = vmul.f32 0.17677669, %v1346_v18  ;;  %1619 = vmatpush.msra.mxu2 %v1250_v17  ;;  %v1249_v18 = vld [vmem:[%s2703_s13] sm:$0xff] }
 0x65e   : > { %v1348_v20 = vsel %vm889_vm1, %v1347_v19, -inf  ;;  %1620 = vmatpush.msra.mxu2 %v1249_v18 }
 0x65f   : > { %1349 = vmax.xlane.f32.xlu0 %v1348_v20 }
 0x6b4   : > { %v1475_v24 = vpop.f32.mrf.mxu2 }
 0x6b5   : > { %v1478_v25 = vsel %vm2543_vm10, %v1475_v24, -1e+20 }
 0x6b6   : > { %v1479_v27 = vmul.f32 0.17677669, %v1478_v25  ;;  %v1407_v28 = vpop.f32.mrf.mxu0  ;;  %v1990_v25 = vld [vmem:[#allocation2] ss:$0 sm:$0xff] }
 0x6b7   : > { %v1410_v29 = vsel %vm2543_vm10, %v1407_v28, -1e+20 }
 0x6b8   : > { %v1411_v30 = vmul.f32 0.17677669, %v1410_v29  ;;  %v1480_v31 = vsel %vm889_vm1, %v1479_v27, -inf }
 0x6b9   : > { %1481 = vmax.xlane.f32.xlu0 %v1480_v31 }
 0x6ba   : > { %v1412_v32 = vsel %vm889_vm1, %v1411_v30, -inf }
 0x6bb   : > { %1413 = vmax.xlane.f32.xlu2 %v1412_v32 }
 0x6c6   : > { %v1542_v33 = vpop.f32.mrf.mxu0 }
 0x6c7   : > { %v1545_v34 = vsel %vm2543_vm10, %v1542_v33, -1e+20 }
 0x6c8   : > { %v1546_v35 = vmul.f32 0.17677669, %v1545_v34 }
 0x6ca   : > { %v1547_v36 = vsel %vm889_vm1, %v1546_v35, -inf }
 0x6cb   : > { %1548 = vmax.xlane.f32.xlu0 %v1547_v36  ;;  %v1659_v36 = vld [vmem:[%s2707_s17 + $0x8] sm:$0xff] }
 0x6d2   : > { %v1350_v37 = vpop.xlane.xlu0 %1349 }
 0x6d3   : > { %v1351_v39 = vsub.f32 %v1347_v19, %v1350_v37  ;;  %1424 = vrot.lane.b32.xlu2 %v1317_v47, %s2751_s29  ;;  %s2757_s29 = smov 24   ;;  %v1658_v37 = vld [vmem:[%s2707_s17] sm:$0xff] }
 0x6d5   : > { %v1352_v40 = vmul.f32 1.442695, %v1351_v39  ;;  %v1705_v39 = vld [vmem:[%s2709_s19 + $0x78] sm:$0xff] }
 0x6d6   : > { %1710 = vmatpush.msra.mxu0 %v1705_v39 }
 0x6d7   : > { %2017 = vpow2.f32 %v1352_v40  ;;  %v1704_v40 = vld [vmem:[%s2709_s19 + $0x70] sm:$0xff] }
 0x6d8   : > { %1711 = vmatpush.msra.mxu0 %v1704_v40 }
 0x6dd   : > { %v2018_v41 = vpop.eup %2017 }
 0x6de   : > { %v1354_v42 = vsel %vm889_vm1, %v2018_v41, 0.0 }
 0x6df   : > { %1355 = vadd.xlane.f32.xlu1 %v1354_v42 }
 0x6f8   : > { %1558 = vrot.lane.b32.xlu1 %v1317_v47, %s2752_s3  ;;  %s2758_s3 = smov 16  }
 0x72c   : > { %v1482_v4 = vpop.xlane.xlu0 %1481 }
 0x72d   : > { %v1483_v45 = vsub.f32 %v1479_v27, %v1482_v4 }
 0x72e   : > { %v1414_v43 = vpop.xlane.xlu2 %1413 }
 0x72f   : > { %v1415_v44 = vsub.f32 %v1411_v30, %v1414_v43  ;;  %v1484_v48 = vmul.f32 1.442695, %v1483_v45  ;;  %v1702_v43 = vld [vmem:[%s2709_s19 + $0x60] sm:$0xff]  ;;  %v1701_v45 = vld [vmem:[%s2709_s19 + $0x58] sm:$0xff] }
 0x731   : > { %v1416_v46 = vmul.f32 1.442695, %v1415_v44 }
 0x733   : > { %2019 = vpow2.f32 %v1416_v46  ;;  %v1700_v46 = vld [vmem:[%s2709_s19 + $0x50] sm:$0xff] }
 0x734   : > { %2021 = vpow2.f32 %v1484_v48  ;;  %v1698_v48 = vld [vmem:[%s2709_s19 + $0x40] sm:$0xff] }
 0x736   : > { %v1425_v61 = vpop.permute.xlu2 %1424 }
 0x737   : > { %1445 = vmatpush.msrb.mxu1 %v1425_v61 }
 0x739   : > { %v2020_v49 = vpop.eup %2019 }
 0x73a   : > { %v1418_v50 = vsel %vm889_vm1, %v2020_v49, 0.0  ;;  %v2022_v52 = vpop.eup %2021 }
 0x73b   : > { %1419 = vadd.xlane.f32.xlu0 %v1418_v50  ;;  %v1486_v55 = vsel %vm889_vm1, %v2022_v52, 0.0  ;;  %v1697_v50 = vld [vmem:[%s2709_s19 + $0x38] sm:$0xff] }
 0x73e   : > { %v1549_v51 = vpop.xlane.xlu0 %1548 }
 0x73f   : > { %v1550_v53 = vsub.f32 %v1546_v35, %v1549_v51  ;;  %v1661_v35 = vld [vmem:[%s2707_s17 + $0x18] sm:$0xff] }
 0x741   : > { %v1551_v54 = vmul.f32 1.442695, %v1550_v53 }
 0x743   : > { %2023 = vpow2.f32 %v1551_v54  ;;  %1487 = vadd.xlane.f32.xlu0 %v1486_v55  ;;  %v1695_v54 = vld [vmem:[%s2709_s19 + $0x28] sm:$0xff] }
 0x749   : > { %v2024_v56 = vpop.eup %2023 }
 0x74a   : > { %v1553_v57 = vsel %vm889_vm1, %v2024_v56, 0.0 }
 0x74b   : > { %1554 = vadd.xlane.f32.xlu0 %v1553_v57 }
 0x752   : > { %v1356_v58 = vpop.xlane.xlu1 %1355 }
 0x753   : > { %2025 = vrcp.f32 %v1356_v58  ;;  %v1693_v58 = vld [vmem:[%s2709_s19 + $0x18] sm:$0xff] }
 0x759   : > { %v2026_v59 = vpop.eup %2025 }
 0x75a   : > { %v1358_v60 = vmul.f32 %v2026_v59, %v2018_v41  ;;  %v1703_v41 = vld [vmem:[%s2709_s19 + $0x68] sm:$0xff] }
 0x75b   : > { %1712 = vmatpush.msra.mxu0 %v1703_v41 }
 0x75c   : > { %1916 = vmatmul.msk.f32.vlgmr.msra.gmra.mxu3 %vm889_vm1, %v1358_v60  ;;  %v1991_v60 = vld [vmem:[%s2705_s15] ss:$0 sm:$0xff] }
 0x75d   : > { %1713 = vmatpush.msra.mxu0 %v1702_v43 }
 0x75f   : > { %1491 = vrot.lane.b32.xlu0 %v1317_v47, %s2750_s27  ;;  %s2756_s27 = smov 8   ;;  %1714 = vmatpush.msra.mxu0 %v1701_v45  ;;  %v1699_v47 = vld [vmem:[%s2709_s19 + $0x48] sm:$0xff] }
 0x761   : > { %1715 = vmatpush.msra.mxu0 %v1700_v46 }
 0x763   : > { %1716 = vmatpush.msra.mxu0 %v1699_v47 }
 0x765   : > { %1717 = vmatpush.msra.mxu0 %v1698_v48 }
 0x767   : > { %1718 = vmatpush.msra.mxu0 %v1697_v50 }
 0x76a   : > { %v1559_v62 = vpop.permute.xlu1 %1558 }
 0x76b   : > { %1579 = vmatpush.msra.mxu1 %v1559_v62 }
 0x7ae   : > { %v1420_v63 = vpop.xlane.xlu0 %1419 }
 0x7af   : > { %2027 = vrcp.f32 %v1420_v63  ;;  %v1992_v63 = vld [vmem:[%s2706_s16] ss:$0 sm:$0xff] }
 0x7b5   : > { %v2028_v0 = vpop.eup %2027 }
 0x7b6   : > { %v1422_v1 = vmul.f32 %v2028_v0, %v2020_v49  ;;  %v1488_v3 = vpop.xlane.xlu0 %1487 }
 0x7b8   : > { %1919 = vmatmul.msk.f32.vlgmr.msrb.gmra.mxu1 %vm889_vm1, %v1422_v1 }
 0x7be   : > { %v1555_v5 = vpop.xlane.xlu0 %1554 }
 0x7bf   : > { %2029 = vrcp.f32 %v1555_v5  ;;  %v1691_v5 = vld [vmem:[%s2709_s19 + $0x8] sm:$0xff] }
 0x7c0   : > { %2031 = vrcp.f32 %v1488_v3  ;;  %v1692_v3 = vld [vmem:[%s2709_s19 + $0x10] sm:$0xff] }
 0x7c5   : > { %v2030_v6 = vpop.eup %2029 }
 0x7c6   : > { %v1557_v7 = vmul.f32 %v2030_v6, %v2024_v56  ;;  %v2032_v8 = vpop.eup %2031  ;;  %v1694_v56 = vld [vmem:[%s2709_s19 + $0x20] sm:$0xff] }
 0x7c7   : > { %v1490_v9 = vmul.f32 %v2032_v8, %v2022_v52  ;;  %v1696_v52 = vld [vmem:[%s2709_s19 + $0x30] sm:$0xff]  ;;  %v1690_v6 = vld [vmem:[%s2709_s19] sm:$0xff] }
 0x7c8   : > { %1925 = vmatmul.msk.f32.vlgmr.msra.gmra.mxu1 %vm889_vm1, %v1557_v7  ;;  %1719 = vmatpush.msra.mxu0 %v1696_v52  ;;  %v1993_v7 = vld [vmem:[#allocation4] ss:$0 sm:$0xff] }
 0x7ca   : > { %1720 = vmatpush.msra.mxu0 %v1695_v54 }
 0x7cc   : > { %1721 = vmatpush.msra.mxu0 %v1694_v56 }
 0x7ce   : > { %1722 = vmatpush.msra.mxu0 %v1693_v58 }
 0x7d0   : > { %1723 = vmatpush.msra.mxu0 %v1692_v3 }
 0x7d1   : > { %v1492_v10 = vpop.permute.xlu0 %1491 }
 0x7d2   : > { %1512 = vmatpush.msrb.mxu3 %v1492_v10  ;;  %1724 = vmatpush.msra.mxu0 %v1691_v5 }
 0x7d3   : > { %1922 = vmatmul.msk.f32.vlgmr.msrb.gmra.mxu3 %vm889_vm1, %v1490_v9 }
 0x7d4   : > { %1681 = vmatpush.msra.mxu3 %v1661_v35  ;;  %1725 = vmatpush.msra.mxu0 %v1690_v6 }
 0x7df   : > { %v1379_v13 = vpop.f32.mrf.mxu3 }
 0x835   : > { %v1447_v11 = vpop.f32.mrf.mxu1 }
 0x836   : > { %1585 = vrot.lane.b32.xlu2 %v1447_v11, %s2756_s27  ;;  %v1994_v11 = vld [vmem:[#allocation6] ss:$0 sm:$0xff] }
 0x845   : > { %v1581_v12 = vpop.f32.mrf.mxu1 }
 0x846   : > { %1593 = vrot.lane.b32.xlu2 %v1581_v12, %s2757_s29 }
 0x856   : > { %v1514_v14 = vpop.f32.mrf.mxu3 }
 0x857   : > { %1589 = vrot.lane.b32.xlu0 %v1514_v14, %s2758_s3 }
 0x890   : > { %v1586_v19 = vpop.permute.xlu2 %1585 }
 0x891   : > { %v1596_v20 = vsel %vm889_vm1, %v1379_v13, %v1586_v19 }
 0x8a0   : > { %v1594_v22 = vpop.permute.xlu2 %1593 }
 0x8c9   : > { %v1590_v21 = vpop.permute.xlu0 %1589 }
 0x8ca   : > { %v1597_v23 = vsel %vm1167_vm3, %v1596_v20, %v1590_v21 }
 0x8cb   : > { %v1598_v24 = vsel %vm1169_vm4, %v1597_v23, %v1594_v22 }
 0x8cc   : > { %1926 = vmatmul.msk.f32.vlgmr.msra.gmra.mxu2 %vm825_vm0, %v1598_v24 }
 0x94f   : > { %v1622_v26 = vpop.f32.mrf.mxu2 }
 0x950   : > { %v1623_v27 = vadd.f32 %v1990_v25, %v1622_v26 }
 0x952   : > { %v1625_v28 = vadd.f32 %v1623_v27, %v2521_v2  ;;  %v1660_v2 = vld [vmem:[%s2707_s17 + $0x10] sm:$0xff] }
 0x953   : > { %1682 = vmatpush.msra.mxu3 %v1660_v2 }
 0x954   : > { %v1628_v29 = vsel %vm825_vm0, %v1625_v28, 0.0 }
 0x955   : > { %1629 = vadd.xlane.f32.xlu0 %v1628_v29  ;;  %1683 = vmatpush.msra.mxu3 %v1659_v36 }
 0x957   : > { %1684 = vmatpush.msra.mxu3 %v1658_v37 }
 0x9c8   : > { %v1630_v30 = vpop.xlane.xlu0 %1629 }
 0x9c9   : > { %v1631_v31 = vmul.f32 %v1630_v30, %v2478_v38  ;;  %v1995_v30 = vld [vmem:[%s2711_s21] ss:$0 sm:$0xff] }
 0x9cb   : > { %v1632_v32 = vsub.f32 %v1625_v28, %v1631_v31 }
 0x9cd   : > { %v1633_v33 = vmul.f32 %v1632_v32, %v1632_v32 }
 0x9cf   : > { %v1634_v34 = vsel %vm825_vm0, %v1633_v33, 0.0 }
 0x9d0   : > { %1635 = vadd.xlane.f32.xlu2 %v1634_v34 }
 0xa43   : > { %v1636_v42 = vpop.xlane.xlu2 %1635 }
 0xa44   : > { %v1637_v4 = vmul.f32 %v1636_v42, %v2478_v38 }
 0xa46   : > { %v1638_v44 = vadd.f32 1e-05, %v1637_v4 }
 0xa48   : > { %2033 = vrsqrt.f32 %v1638_v44  ;;  %vm1645_vm12 = vweird.f32 %v1638_v44 }
 0xa4e   : > { %v2034_v49 = vpop.eup %2033 }
 0xa4f   : > { %v1640_v51 = vmul.f32 %v2034_v49, %v1638_v44  ;;  %vm1646_vm11 = vweird.f32 %v2034_v49 }
 0xa50   : > { %vm1647_vm13 = vmor %vm1645_vm12, %vm1646_vm11 }
 0xa51   : > { %v1641_v53 = vmul.f32 %v2034_v49, %v1640_v51 }
 0xa53   : > { %v1642_v55 = vmul.f32 0.5, %v1641_v53 }
 0xa55   : > { %v1643_v57 = vsub.f32 1.5, %v1642_v55 }
 0xa57   : > { %v1644_v59 = vmul.f32 %v2034_v49, %v1643_v57 }
 0xa59   : > { %v1648_v61 = vsel %vm1647_vm13, %v2034_v49, %v1644_v59 }
 0xa5a   : > { %v1649_v62 = vmul.f32 %v1648_v61, %v1632_v32  ;;  %v1996_v32 = vld [vmem:[#allocation7] ss:$0 sm:$0xff] }
 0xa5c   : > { %v1653_v0 = vmul.f32 %v1991_v60, %v1649_v62 }
 0xa5e   : > { %v1657_v1 = vadd.f32 %v1992_v63, %v1653_v0 }
 0xa60   : > { %1927 = vmatmul.msk.f32.vlgmr.msra.gmra.mxu3 %vm825_vm0, %v1657_v1 }
 0xae3   : > { %v1686_v8 = vpop.f32.mrf.mxu3 }
 0xae4   : > { %v1687_v9 = vadd.f32 %v1993_v7, %v1686_v8 }
 0xae6   : > { %v1689_v10 = vmax.f32 %v1687_v9, 0.0 }
 0xae8   : > { %1726 = vmatmul.f32.vlgmr.msra.gmra.mxu0 %v1689_v10 }
 0xb65   : > { %v1727_v12 = vpop.f32.mrf.mxu0 }
 0xb66   : > { %v1728_v13 = vadd.f32 %v1994_v11, %v1727_v12 }
 0xb68   : > { %v1730_v14 = vadd.f32 %v1728_v13, %v1657_v1 }
 0xb6a   : > { %v1733_v15 = vsel %vm825_vm0, %v1730_v14, 0.0 }
 0xb6b   : > { %1734 = vadd.xlane.f32.xlu1 %v1733_v15 }
 0xbde   : > { %v1735_v16 = vpop.xlane.xlu1 %1734 }
 0xbdf   : > { %v1736_v17 = vmul.f32 %v1735_v16, %v2478_v38 }
 0xbe1   : > { %v1737_v18 = vsub.f32 %v1730_v14, %v1736_v17 }
 0xbe3   : > { %v1738_v19 = vmul.f32 %v1737_v18, %v1737_v18 }
 0xbe5   : > { %v1739_v20 = vsel %vm825_vm0, %v1738_v19, 0.0 }
 0xbe6   : > { %1740 = vadd.xlane.f32.xlu0 %v1739_v20 }
 0xc59   : > { %v1741_v21 = vpop.xlane.xlu0 %1740 }
 0xc5a   : > { %v1742_v22 = vmul.f32 %v1741_v21, %v2478_v38 }
 0xc5c   : > { %v1743_v23 = vadd.f32 1e-05, %v1742_v22 }
 0xc5e   : > { %2035 = vrsqrt.f32 %v1743_v23  ;;  %vm1750_vm15 = vweird.f32 %v1743_v23 }
 0xc64   : > { %v2036_v24 = vpop.eup %2035 }
 0xc65   : > { %v1745_v25 = vmul.f32 %v2036_v24, %v1743_v23  ;;  %vm1751_vm14 = vweird.f32 %v2036_v24 }
 0xc66   : > { %vm1752_vm1 = vmor %vm1750_vm15, %vm1751_vm14 }
 0xc67   : > { %v1746_v26 = vmul.f32 %v2036_v24, %v1745_v25 }
 0xc69   : > { %v1747_v27 = vmul.f32 0.5, %v1746_v26 }
 0xc6b   : > { %v1748_v28 = vsub.f32 1.5, %v1747_v27 }
 0xc6d   : > { %v1749_v29 = vmul.f32 %v2036_v24, %v1748_v28 }
 0xc6f   : > { %v1753_v31 = vsel %vm1752_vm1, %v2036_v24, %v1749_v29 }
 0xc70   : > { %v1754_v33 = vmul.f32 %v1753_v31, %v1737_v18 }
 0xc72   : > { %v1758_v38 = vmul.f32 %v1995_v30, %v1754_v33 }
 0xc74   : > { %v1762_v34 = vadd.f32 %v1996_v32, %v1758_v38 }
 0xc76   : > { %1763 = vst.msk [vmem:[%s795_s0] sm:$0xff] %vm825_vm0, %v1762_v34 }
 0xc77 PF: > { %s36_s4 = sadd.s32 1, %s2175_s4  }
 0xc78   : > { %p33_p7 = scmp.ge.s32.totalorder %s36_s4, 4  }
 0xc7a   :  { %35 = sbr.rel (!%p33_p7) target bundleno = 14 (0xe), region = 165 }
 0xc7f   :  { %1783 = vsyncpa [#allocation3], 1 }
 0xc80   :  { %1785 = vsyncpa [#allocation3 + $0x1], 1 }
 0xc81   :  { %1786 = vsyncpa [#allocation5], 1 }
 0xc82   :  { %1787 = vsyncpa [#allocation8], 1 }

</bundles_post_ra>
